<compile_context>
chip_gen: v6e
topology: v6e:2x2x1
jax: 0.10.0
libtpu: 0.0.40
codegen_flags: <defaults>
</compile_context>

<pallas_src>
import functools

import jax
import jax.numpy as jnp
from jax.experimental import pallas as pl
from jax.experimental.pallas import tpu as pltpu


# ----------------------------------------------------------------------------
# Fused Pallas kernel: both GATConv layers, all heads, single invocation.
# ----------------------------------------------------------------------------
def _gat_fused_kernel(x_ref, maskb_ref, wp0_ref, wa0_ref, b0_ref,
                      wp1_ref, wa1_ref, b1_ref, out_ref,
                      *, heads0, dim0, heads1, dim1):
    x = x_ref[...]                         # (N, F0)
    mask_bias = maskb_ref[...]             # (N, N), 0.0 on edges / -1e30 off-edge
    n = x.shape[0]
    ones_col = jnp.ones((n, 1), jnp.float32)

    def gat_layer(feat, w_proj, w_att, bias, nheads, dim):
        # Lane-dense projection (exactly nheads*dim lanes) + a separate narrow
        # matmul for the folded attention logits [a_l.z | a_r.z].
        z = jnp.dot(feat, w_proj, preferred_element_type=jnp.float32)      # (N, H*D)
        logits = jnp.dot(feat, w_att, preferred_element_type=jnp.float32)  # (N, 2H)
        el = logits[:, :nheads]            # (N, H) source logits
        er = logits[:, nheads:]            # (N, H) destination logits
        el_t = el.T                        # (H, N): ONE XLU transpose per layer

        # Analytic softmax shift: m[i,h] = leaky(er[i,h] + max_j el[j,h]) is an
        # upper bound of every (masked or not) row entry, so exp(e - m) <= 1;
        # softmax is shift-invariant so the normalized result is unchanged.
        el_max = jnp.max(el, axis=0, keepdims=True)                        # (1, H)
        m_all = er + el_max
        m_all = jnp.maximum(m_all, 0.2 * m_all)                            # (N, H)

        aggs = []
        denoms = []
        for h in range(nheads):            # unrolled, nheads <= 4
            # e[i, j] = LeakyReLU(el[j] + er[i], slope=0.2) for edge j -> i.
            e = er[:, h:h + 1] + el_t[h:h + 1, :]                          # (N, N)
            e = jnp.maximum(e, 0.2 * e)                                    # LeakyReLU
            # Additive mask: off-edge entries get -1e30 and underflow to 0 in
            # the exp — no where-selects needed.
            p = jnp.exp(e + mask_bias - m_all[:, h:h + 1])                 # (N, N)
            z_h = z[:, h * dim:(h + 1) * dim]                              # (N, D)
            # Aggregate with unnormalized weights; the row-sum (softmax denom)
            # rides along on the MXU as an (N,N)@(N,1) matmul instead of an
            # XLU cross-lane reduction.
            aggs.append(jnp.dot(p, z_h, preferred_element_type=jnp.float32))
            denoms.append(jnp.dot(p, ones_col,
                                  preferred_element_type=jnp.float32))

        denom = jnp.maximum(jnp.concatenate(denoms, axis=-1), 1e-30)       # (N, H)
        # EUP approximate reciprocal + one Newton refinement step: divide goes
        # to the otherwise-idle EUP slot while keeping ~f32 accuracy.
        inv = pl.reciprocal(denom, approx=True)
        inv = inv * (2.0 - denom * inv)
        out = jnp.concatenate(
            [aggs[h] * inv[:, h:h + 1] for h in range(nheads)], axis=-1)   # (N, H*D)
        return out + bias                  # single bias add on the full slab

    # --- Layer 0: ELU, heads concatenated (flatten(1)); stays in VMEM. ---
    h0 = gat_layer(x, wp0_ref[...], wa0_ref[...], b0_ref[...], heads0, dim0)
    h0 = jnp.where(h0 > 0, h0, jnp.exp(jnp.minimum(h0, 0.0)) - 1.0)        # ELU

    # --- Layer 1: no activation, mean over heads computed in-kernel. ---
    h1 = gat_layer(h0, wp1_ref[...], wa1_ref[...], b1_ref[...], heads1, dim1)
    acc = h1[:, :dim1]
    for h in range(1, heads1):
        acc = acc + h1[:, h * dim1:(h + 1) * dim1]
    # (N, 16) store is a single masked vst at this size — irrelevant; a tiled
    # large-N variant should emit the pre-mean lane-dense slab instead.
    out_ref[...] = acc * (1.0 / heads1)                                    # (N, D1)


# ----------------------------------------------------------------------------
# Wrapper: one-time parameter folding + single pallas_call.
# ----------------------------------------------------------------------------
def _prepare_layer_params(w, al, ar, b):
    """Fold per-head weights and attention vectors.

    w: (H, F, D), al/ar: (H, 1, D), b: (H, 1, D)
    Returns w_proj (F, H*D)   — lane-dense per-head projection,
            w_att  (F, 2H)    — columns [W@a_l (H) | W@a_r (H)],
            b_cat  (1, H*D).
    """
    H, F, D = w.shape
    hi = jax.lax.Precision.HIGHEST
    w_proj = jnp.transpose(w, (1, 0, 2)).reshape(F, H * D)
    wl = jnp.einsum("hfd,hd->fh", w, al[:, 0, :], precision=hi)    # (F, H)
    wr = jnp.einsum("hfd,hd->fh", w, ar[:, 0, :], precision=hi)    # (F, H)
    w_att = jnp.concatenate([wl, wr], axis=1)                       # (F, 2H)
    b_cat = b[:, 0, :].reshape(1, H * D)
    return w_proj, w_att, b_cat


def gat_forward(adj, inputs, params):
    N, _ = inputs.shape
    H0, _, D0 = params["w0"].shape
    H1, _, D1 = params["w1"].shape

    wp0, wa0, b0 = _prepare_layer_params(params["w0"], params["al0"],
                                         params["ar0"], params["b0"])
    wp1, wa1, b1 = _prepare_layer_params(params["w1"], params["al1"],
                                         params["ar1"], params["b1"])
    # Additive softmax mask built once outside the kernel (0 on edges, -1e30
    # elsewhere); could be stored as bf16 at large N to halve DMA bytes.
    mask_bias = jnp.where(adj > 0.0, 0.0, -1e30).astype(jnp.float32)

    kernel = functools.partial(_gat_fused_kernel,
                               heads0=H0, dim0=D0, heads1=H1, dim1=D1)
    vmem = pl.BlockSpec(memory_space=pltpu.MemorySpace.VMEM)
    return pl.pallas_call(
        kernel,
        out_shape=jax.ShapeDtypeStruct((N, D1), jnp.float32),
        in_specs=[vmem] * 8,           # whole arrays in VMEM, no grid/pipeline
        out_specs=vmem,
    )(inputs, mask_bias, wp0, wa0, b0, wp1, wa1, b1)


# ----------------------------------------------------------------------------
# Pure-JAX reference (same math as the PyTorch module) for verification.
# ----------------------------------------------------------------------------
def _ref_layer(x, adj, w, al, ar, b, apply_elu):
    z = jnp.einsum("nf,hfd->hnd", x, w)
    el = jnp.sum(z * al, axis=-1)                       # (H, N)
    er = jnp.sum(z * ar, axis=-1)                       # (H, N)
    e = er[:, :, None] + el[:, None, :]                 # e[h,i,j]
    e = jnp.where(e > 0, e, 0.2 * e)
    mask = (adj > 0)[None]
    e = jnp.where(mask, e, -1e30)
    p = jnp.where(mask, jnp.exp(e - jnp.max(e, -1, keepdims=True)), 0.0)
    alpha = p / jnp.sum(p, -1, keepdims=True)
    rst = jnp.einsum("hij,hjd->hid", alpha, z) + b
    if apply_elu:
        rst = jnp.where(rst > 0, rst, jnp.exp(jnp.minimum(rst, 0.0)) - 1.0)
    return rst


def gat_forward_ref(adj, x, params):
    h0 = _ref_layer(x, adj, params["w0"], params["al0"], params["ar0"],
                    params["b0"], True)
    N = x.shape[0]
    h = jnp.transpose(h0, (1, 0, 2)).reshape(N, -1)
    h1 = _ref_layer(h, adj, params["w1"], params["al1"], params["ar1"],
                    params["b1"], False)
    return jnp.mean(h1, axis=0)


# ----------------------------------------------------------------------------
# Deterministic parameter / input construction.
# ----------------------------------------------------------------------------
def init_params(key, in_size, hid_size, out_size, heads):
    ks = jax.random.split(key, 8)
    h0, h1 = heads

    def xavier(k, shape, fan_in, fan_out):
        std = jnp.sqrt(2.0) * jnp.sqrt(2.0 / (fan_in + fan_out))  # gain=sqrt(2)
        return std * jax.random.normal(k, shape, dtype=jnp.float32)

    return {
        "w0":  xavier(ks[0], (h0, in_size, hid_size), in_size, h0 * hid_size),
        "al0": xavier(ks[1], (h0, 1, hid_size), hid_size, 1),
        "ar0": xavier(ks[2], (h0, 1, hid_size), hid_size, 1),
        "b0":  jnp.zeros((h0, 1, hid_size), jnp.float32),
        "w1":  xavier(ks[3], (h1, hid_size * h0, out_size),
                      hid_size * h0, h1 * out_size),
        "al1": xavier(ks[4], (h1, 1, out_size), out_size, 1),
        "ar1": xavier(ks[5], (h1, 1, out_size), out_size, 1),
        "b1":  jnp.zeros((h1, 1, out_size), jnp.float32),
    }


if __name__ == "__main__":
    key = jax.random.PRNGKey(0)
    N, in_size, hid_size, out_size = 128, 64, 32, 16
    heads = (4, 2)

    k_feat, k_adj, k_param = jax.random.split(key, 3)
    x = jax.random.normal(k_feat, (N, in_size), dtype=jnp.float32)

    # Deterministic sparse-ish adjacency with guaranteed self loops
    # (avoids 0-in-degree nodes, matching DGL's allow_zero_in_degree=False).
    adj = (jax.random.uniform(k_adj, (N, N)) < 0.1).astype(jnp.float32)
    adj = jnp.maximum(adj, jnp.eye(N, dtype=jnp.float32))

    params = init_params(k_param, in_size, hid_size, out_size, heads)

    out = jax.block_until_ready(jax.jit(gat_forward)(adj, x, params))
    ref = jax.block_until_ready(gat_forward_ref(adj, x, params))

    assert out.shape == (N, out_size)
    # 2e-3 tolerance: the fused kernel re-associates the attention projections
    # (a_l/a_r folded into a narrow matmul), uses an analytic softmax shift,
    # sums the denominator on the MXU, and uses a Newton-refined EUP
    # reciprocal — each a tiny (<=1e-4-ish) fp deviation from the reference.
    assert jnp.allclose(out, ref, atol=2e-3, rtol=2e-3), \
        float(jnp.max(jnp.abs(out - ref)))
    print("KERNEL_OK")
</pallas_src>

<mosaic_0001>
module attributes {stable_mosaic.version = 11 : i64} {
  func.func @_gat_fused_kernel(%arg0: memref<128x64xf32, #tpu.memory_space<vmem>>, %arg1: memref<128x128xf32, #tpu.memory_space<vmem>>, %arg2: memref<64x128xf32, #tpu.memory_space<vmem>>, %arg3: memref<64x8xf32, #tpu.memory_space<vmem>>, %arg4: memref<1x128xf32, #tpu.memory_space<vmem>>, %arg5: memref<128x32xf32, #tpu.memory_space<vmem>>, %arg6: memref<128x4xf32, #tpu.memory_space<vmem>>, %arg7: memref<1x32xf32, #tpu.memory_space<vmem>>, %arg8: memref<128x16xf32, #tpu.memory_space<vmem>>) attributes {dimension_semantics = [], scalar_prefetch = 0 : i64, scratch_operands = 0 : i64, tpu.core_type = #tpu.core_type<tc>} {
    %c0 = arith.constant 0 : index
    %c0_0 = arith.constant 0 : index
    %0 = vector.load %arg0[%c0, %c0_0] : memref<128x64xf32, #tpu.memory_space<vmem>>, vector<128x64xf32>
    %c0_1 = arith.constant 0 : index
    %c0_2 = arith.constant 0 : index
    %1 = vector.load %arg1[%c0_1, %c0_2] : memref<128x128xf32, #tpu.memory_space<vmem>>, vector<128x128xf32>
    %cst = arith.constant 1.000000e+00 : f32
    %2 = vector.broadcast %cst : f32 to vector<128x1xf32>
    %c0_3 = arith.constant 0 : index
    %c0_4 = arith.constant 0 : index
    %3 = vector.load %arg2[%c0_3, %c0_4] : memref<64x128xf32, #tpu.memory_space<vmem>>, vector<64x128xf32>
    %c0_5 = arith.constant 0 : index
    %c0_6 = arith.constant 0 : index
    %4 = vector.load %arg3[%c0_5, %c0_6] : memref<64x8xf32, #tpu.memory_space<vmem>>, vector<64x8xf32>
    %c0_7 = arith.constant 0 : index
    %c0_8 = arith.constant 0 : index
    %5 = vector.load %arg4[%c0_7, %c0_8] : memref<1x128xf32, #tpu.memory_space<vmem>>, vector<1x128xf32>
    %cst_9 = arith.constant dense<0.000000e+00> : vector<128x128xf32>
    %6 = tpu.matmul %0, %3, %cst_9 {dimension_numbers = #tpu.dot_dimension_numbers<[1], [0], [0], [1], [0, 0, 1, 1], [], []>} : vector<128x64xf32>, vector<64x128xf32>, vector<128x128xf32> -> vector<128x128xf32>
    %cst_10 = arith.constant dense<0.000000e+00> : vector<128x8xf32>
    %7 = tpu.matmul %0, %4, %cst_10 {dimension_numbers = #tpu.dot_dimension_numbers<[1], [0], [0], [1], [0, 0, 1, 1], [], []>} : vector<128x64xf32>, vector<64x8xf32>, vector<128x8xf32> -> vector<128x8xf32>
    %8 = vector.extract_strided_slice %7 {offsets = [0, 0], sizes = [128, 4], strides = [1, 1]} : vector<128x8xf32> to vector<128x4xf32>
    %9 = vector.extract_strided_slice %7 {offsets = [0, 4], sizes = [128, 4], strides = [1, 1]} : vector<128x8xf32> to vector<128x4xf32>
    %10 = tpu.transpose %8, [1, 0] : vector<128x4xf32> -> vector<4x128xf32>
    %cst_11 = arith.constant dense<0xFF800000> : vector<4xf32>
    %11 = vector.multi_reduction <maximumf>, %8, %cst_11 [0] : vector<128x4xf32> to vector<4xf32>
    %12 = vector.shape_cast %11 : vector<4xf32> to vector<1x4xf32>
    %13 = vector.broadcast %12 : vector<1x4xf32> to vector<128x4xf32>
    %14 = arith.addf %9, %13 : vector<128x4xf32>
    %cst_12 = arith.constant 2.000000e-01 : f32
    %15 = vector.broadcast %cst_12 : f32 to vector<128x4xf32>
    %16 = arith.mulf %15, %14 : vector<128x4xf32>
    %17 = arith.maximumf %14, %16 : vector<128x4xf32>
    %18 = vector.extract_strided_slice %9 {offsets = [0, 0], sizes = [128, 1], strides = [1, 1]} : vector<128x4xf32> to vector<128x1xf32>
    %19 = vector.extract_strided_slice %10 {offsets = [0, 0], sizes = [1, 128], strides = [1, 1]} : vector<4x128xf32> to vector<1x128xf32>
    %20 = vector.broadcast %18 : vector<128x1xf32> to vector<128x128xf32>
    %21 = vector.broadcast %19 : vector<1x128xf32> to vector<128x128xf32>
    %22 = arith.addf %20, %21 : vector<128x128xf32>
    %cst_13 = arith.constant 2.000000e-01 : f32
    %23 = vector.broadcast %cst_13 : f32 to vector<128x128xf32>
    %24 = arith.mulf %23, %22 : vector<128x128xf32>
    %25 = arith.maximumf %22, %24 : vector<128x128xf32>
    %26 = arith.addf %25, %1 : vector<128x128xf32>
    %27 = vector.extract_strided_slice %17 {offsets = [0, 0], sizes = [128, 1], strides = [1, 1]} : vector<128x4xf32> to vector<128x1xf32>
    %28 = vector.broadcast %27 : vector<128x1xf32> to vector<128x128xf32>
    %29 = arith.subf %26, %28 : vector<128x128xf32>
    %30 = math.exp %29 : vector<128x128xf32>
    %31 = vector.extract_strided_slice %6 {offsets = [0, 0], sizes = [128, 32], strides = [1, 1]} : vector<128x128xf32> to vector<128x32xf32>
    %cst_14 = arith.constant dense<0.000000e+00> : vector<128x32xf32>
    %32 = tpu.matmul %30, %31, %cst_14 {dimension_numbers = #tpu.dot_dimension_numbers<[1], [0], [0], [1], [0, 0, 1, 1], [], []>} : vector<128x128xf32>, vector<128x32xf32>, vector<128x32xf32> -> vector<128x32xf32>
    %cst_15 = arith.constant dense<0.000000e+00> : vector<128x1xf32>
    %33 = tpu.matmul %30, %2, %cst_15 {dimension_numbers = #tpu.dot_dimension_numbers<[1], [0], [0], [1], [0, 0, 1, 1], [], []>} : vector<128x128xf32>, vector<128x1xf32>, vector<128x1xf32> -> vector<128x1xf32>
    %34 = vector.extract_strided_slice %9 {offsets = [0, 1], sizes = [128, 1], strides = [1, 1]} : vector<128x4xf32> to vector<128x1xf32>
    %35 = vector.extract_strided_slice %10 {offsets = [1, 0], sizes = [1, 128], strides = [1, 1]} : vector<4x128xf32> to vector<1x128xf32>
    %36 = vector.broadcast %34 : vector<128x1xf32> to vector<128x128xf32>
    %37 = vector.broadcast %35 : vector<1x128xf32> to vector<128x128xf32>
    %38 = arith.addf %36, %37 : vector<128x128xf32>
    %cst_16 = arith.constant 2.000000e-01 : f32
    %39 = vector.broadcast %cst_16 : f32 to vector<128x128xf32>
    %40 = arith.mulf %39, %38 : vector<128x128xf32>
    %41 = arith.maximumf %38, %40 : vector<128x128xf32>
    %42 = arith.addf %41, %1 : vector<128x128xf32>
    %43 = vector.extract_strided_slice %17 {offsets = [0, 1], sizes = [128, 1], strides = [1, 1]} : vector<128x4xf32> to vector<128x1xf32>
    %44 = vector.broadcast %43 : vector<128x1xf32> to vector<128x128xf32>
    %45 = arith.subf %42, %44 : vector<128x128xf32>
    %46 = math.exp %45 : vector<128x128xf32>
    %47 = vector.extract_strided_slice %6 {offsets = [0, 32], sizes = [128, 32], strides = [1, 1]} : vector<128x128xf32> to vector<128x32xf32>
    %cst_17 = arith.constant dense<0.000000e+00> : vector<128x32xf32>
    %48 = tpu.matmul %46, %47, %cst_17 {dimension_numbers = #tpu.dot_dimension_numbers<[1], [0], [0], [1], [0, 0, 1, 1], [], []>} : vector<128x128xf32>, vector<128x32xf32>, vector<128x32xf32> -> vector<128x32xf32>
    %cst_18 = arith.constant dense<0.000000e+00> : vector<128x1xf32>
    %49 = tpu.matmul %46, %2, %cst_18 {dimension_numbers = #tpu.dot_dimension_numbers<[1], [0], [0], [1], [0, 0, 1, 1], [], []>} : vector<128x128xf32>, vector<128x1xf32>, vector<128x1xf32> -> vector<128x1xf32>
    %50 = vector.extract_strided_slice %9 {offsets = [0, 2], sizes = [128, 1], strides = [1, 1]} : vector<128x4xf32> to vector<128x1xf32>
    %51 = vector.extract_strided_slice %10 {offsets = [2, 0], sizes = [1, 128], strides = [1, 1]} : vector<4x128xf32> to vector<1x128xf32>
    %52 = vector.broadcast %50 : vector<128x1xf32> to vector<128x128xf32>
    %53 = vector.broadcast %51 : vector<1x128xf32> to vector<128x128xf32>
    %54 = arith.addf %52, %53 : vector<128x128xf32>
    %cst_19 = arith.constant 2.000000e-01 : f32
    %55 = vector.broadcast %cst_19 : f32 to vector<128x128xf32>
    %56 = arith.mulf %55, %54 : vector<128x128xf32>
    %57 = arith.maximumf %54, %56 : vector<128x128xf32>
    %58 = arith.addf %57, %1 : vector<128x128xf32>
    %59 = vector.extract_strided_slice %17 {offsets = [0, 2], sizes = [128, 1], strides = [1, 1]} : vector<128x4xf32> to vector<128x1xf32>
    %60 = vector.broadcast %59 : vector<128x1xf32> to vector<128x128xf32>
    %61 = arith.subf %58, %60 : vector<128x128xf32>
    %62 = math.exp %61 : vector<128x128xf32>
    %63 = vector.extract_strided_slice %6 {offsets = [0, 64], sizes = [128, 32], strides = [1, 1]} : vector<128x128xf32> to vector<128x32xf32>
    %cst_20 = arith.constant dense<0.000000e+00> : vector<128x32xf32>
    %64 = tpu.matmul %62, %63, %cst_20 {dimension_numbers = #tpu.dot_dimension_numbers<[1], [0], [0], [1], [0, 0, 1, 1], [], []>} : vector<128x128xf32>, vector<128x32xf32>, vector<128x32xf32> -> vector<128x32xf32>
    %cst_21 = arith.constant dense<0.000000e+00> : vector<128x1xf32>
    %65 = tpu.matmul %62, %2, %cst_21 {dimension_numbers = #tpu.dot_dimension_numbers<[1], [0], [0], [1], [0, 0, 1, 1], [], []>} : vector<128x128xf32>, vector<128x1xf32>, vector<128x1xf32> -> vector<128x1xf32>
    %66 = vector.extract_strided_slice %9 {offsets = [0, 3], sizes = [128, 1], strides = [1, 1]} : vector<128x4xf32> to vector<128x1xf32>
    %67 = vector.extract_strided_slice %10 {offsets = [3, 0], sizes = [1, 128], strides = [1, 1]} : vector<4x128xf32> to vector<1x128xf32>
    %68 = vector.broadcast %66 : vector<128x1xf32> to vector<128x128xf32>
    %69 = vector.broadcast %67 : vector<1x128xf32> to vector<128x128xf32>
    %70 = arith.addf %68, %69 : vector<128x128xf32>
    %cst_22 = arith.constant 2.000000e-01 : f32
    %71 = vector.broadcast %cst_22 : f32 to vector<128x128xf32>
    %72 = arith.mulf %71, %70 : vector<128x128xf32>
    %73 = arith.maximumf %70, %72 : vector<128x128xf32>
    %74 = arith.addf %73, %1 : vector<128x128xf32>
    %75 = vector.extract_strided_slice %17 {offsets = [0, 3], sizes = [128, 1], strides = [1, 1]} : vector<128x4xf32> to vector<128x1xf32>
    %76 = vector.broadcast %75 : vector<128x1xf32> to vector<128x128xf32>
    %77 = arith.subf %74, %76 : vector<128x128xf32>
    %78 = math.exp %77 : vector<128x128xf32>
    %79 = vector.extract_strided_slice %6 {offsets = [0, 96], sizes = [128, 32], strides = [1, 1]} : vector<128x128xf32> to vector<128x32xf32>
    %cst_23 = arith.constant dense<0.000000e+00> : vector<128x32xf32>
    %80 = tpu.matmul %78, %79, %cst_23 {dimension_numbers = #tpu.dot_dimension_numbers<[1], [0], [0], [1], [0, 0, 1, 1], [], []>} : vector<128x128xf32>, vector<128x32xf32>, vector<128x32xf32> -> vector<128x32xf32>
    %cst_24 = arith.constant dense<0.000000e+00> : vector<128x1xf32>
    %81 = tpu.matmul %78, %2, %cst_24 {dimension_numbers = #tpu.dot_dimension_numbers<[1], [0], [0], [1], [0, 0, 1, 1], [], []>} : vector<128x128xf32>, vector<128x1xf32>, vector<128x1xf32> -> vector<128x1xf32>
    %82 = tpu.concatenate %33, %49, %65, %81 in 1 : vector<128x1xf32>, vector<128x1xf32>, vector<128x1xf32>, vector<128x1xf32> -> vector<128x4xf32>
    %cst_25 = arith.constant 1.000000e-30 : f32
    %83 = vector.broadcast %cst_25 : f32 to vector<128x4xf32>
    %84 = arith.maximumf %82, %83 : vector<128x4xf32>
    %85 = tpu.reciprocal %84 {approx = true} : vector<128x4xf32> -> vector<128x4xf32>
    %86 = arith.mulf %84, %85 : vector<128x4xf32>
    %cst_26 = arith.constant 2.000000e+00 : f32
    %87 = vector.broadcast %cst_26 : f32 to vector<128x4xf32>
    %88 = arith.subf %87, %86 : vector<128x4xf32>
    %89 = arith.mulf %85, %88 : vector<128x4xf32>
    %90 = vector.extract_strided_slice %89 {offsets = [0, 0], sizes = [128, 1], strides = [1, 1]} : vector<128x4xf32> to vector<128x1xf32>
    %91 = vector.broadcast %90 : vector<128x1xf32> to vector<128x32xf32>
    %92 = arith.mulf %32, %91 : vector<128x32xf32>
    %93 = vector.extract_strided_slice %89 {offsets = [0, 1], sizes = [128, 1], strides = [1, 1]} : vector<128x4xf32> to vector<128x1xf32>
    %94 = vector.broadcast %93 : vector<128x1xf32> to vector<128x32xf32>
    %95 = arith.mulf %48, %94 : vector<128x32xf32>
    %96 = vector.extract_strided_slice %89 {offsets = [0, 2], sizes = [128, 1], strides = [1, 1]} : vector<128x4xf32> to vector<128x1xf32>
    %97 = vector.broadcast %96 : vector<128x1xf32> to vector<128x32xf32>
    %98 = arith.mulf %64, %97 : vector<128x32xf32>
    %99 = vector.extract_strided_slice %89 {offsets = [0, 3], sizes = [128, 1], strides = [1, 1]} : vector<128x4xf32> to vector<128x1xf32>
    %100 = vector.broadcast %99 : vector<128x1xf32> to vector<128x32xf32>
    %101 = arith.mulf %80, %100 : vector<128x32xf32>
    %102 = tpu.concatenate %92, %95, %98, %101 in 1 : vector<128x32xf32>, vector<128x32xf32>, vector<128x32xf32>, vector<128x32xf32> -> vector<128x128xf32>
    %103 = vector.broadcast %5 : vector<1x128xf32> to vector<128x128xf32>
    %104 = arith.addf %102, %103 : vector<128x128xf32>
    %cst_27 = arith.constant 0.000000e+00 : f32
    %105 = vector.broadcast %cst_27 : f32 to vector<128x128xf32>
    %106 = arith.cmpf ogt, %104, %105 : vector<128x128xf32>
    %cst_28 = arith.constant 0.000000e+00 : f32
    %107 = vector.broadcast %cst_28 : f32 to vector<128x128xf32>
    %108 = arith.minimumf %104, %107 : vector<128x128xf32>
    %109 = math.exp %108 : vector<128x128xf32>
    %cst_29 = arith.constant 1.000000e+00 : f32
    %110 = vector.broadcast %cst_29 : f32 to vector<128x128xf32>
    %111 = arith.subf %109, %110 : vector<128x128xf32>
    %112 = arith.select %106, %104, %111 : vector<128x128xi1>, vector<128x128xf32>
    %c0_30 = arith.constant 0 : index
    %c0_31 = arith.constant 0 : index
    %113 = vector.load %arg5[%c0_30, %c0_31] : memref<128x32xf32, #tpu.memory_space<vmem>>, vector<128x32xf32>
    %c0_32 = arith.constant 0 : index
    %c0_33 = arith.constant 0 : index
    %114 = vector.load %arg6[%c0_32, %c0_33] : memref<128x4xf32, #tpu.memory_space<vmem>>, vector<128x4xf32>
    %c0_34 = arith.constant 0 : index
    %c0_35 = arith.constant 0 : index
    %115 = vector.load %arg7[%c0_34, %c0_35] : memref<1x32xf32, #tpu.memory_space<vmem>>, vector<1x32xf32>
    %cst_36 = arith.constant dense<0.000000e+00> : vector<128x32xf32>
    %116 = tpu.matmul %112, %113, %cst_36 {dimension_numbers = #tpu.dot_dimension_numbers<[1], [0], [0], [1], [0, 0, 1, 1], [], []>} : vector<128x128xf32>, vector<128x32xf32>, vector<128x32xf32> -> vector<128x32xf32>
    %cst_37 = arith.constant dense<0.000000e+00> : vector<128x4xf32>
    %117 = tpu.matmul %112, %114, %cst_37 {dimension_numbers = #tpu.dot_dimension_numbers<[1], [0], [0], [1], [0, 0, 1, 1], [], []>} : vector<128x128xf32>, vector<128x4xf32>, vector<128x4xf32> -> vector<128x4xf32>
    %118 = vector.extract_strided_slice %117 {offsets = [0, 0], sizes = [128, 2], strides = [1, 1]} : vector<128x4xf32> to vector<128x2xf32>
    %119 = vector.extract_strided_slice %117 {offsets = [0, 2], sizes = [128, 2], strides = [1, 1]} : vector<128x4xf32> to vector<128x2xf32>
    %120 = tpu.transpose %118, [1, 0] : vector<128x2xf32> -> vector<2x128xf32>
    %cst_38 = arith.constant dense<0xFF800000> : vector<2xf32>
    %121 = vector.multi_reduction <maximumf>, %118, %cst_38 [0] : vector<128x2xf32> to vector<2xf32>
    %122 = vector.shape_cast %121 : vector<2xf32> to vector<1x2xf32>
    %123 = vector.broadcast %122 : vector<1x2xf32> to vector<128x2xf32>
    %124 = arith.addf %119, %123 : vector<128x2xf32>
    %cst_39 = arith.constant 2.000000e-01 : f32
    %125 = vector.broadcast %cst_39 : f32 to vector<128x2xf32>
    %126 = arith.mulf %125, %124 : vector<128x2xf32>
    %127 = arith.maximumf %124, %126 : vector<128x2xf32>
    %128 = vector.extract_strided_slice %119 {offsets = [0, 0], sizes = [128, 1], strides = [1, 1]} : vector<128x2xf32> to vector<128x1xf32>
    %129 = vector.extract_strided_slice %120 {offsets = [0, 0], sizes = [1, 128], strides = [1, 1]} : vector<2x128xf32> to vector<1x128xf32>
    %130 = vector.broadcast %128 : vector<128x1xf32> to vector<128x128xf32>
    %131 = vector.broadcast %129 : vector<1x128xf32> to vector<128x128xf32>
    %132 = arith.addf %130, %131 : vector<128x128xf32>
    %cst_40 = arith.constant 2.000000e-01 : f32
    %133 = vector.broadcast %cst_40 : f32 to vector<128x128xf32>
    %134 = arith.mulf %133, %132 : vector<128x128xf32>
    %135 = arith.maximumf %132, %134 : vector<128x128xf32>
    %136 = arith.addf %135, %1 : vector<128x128xf32>
    %137 = vector.extract_strided_slice %127 {offsets = [0, 0], sizes = [128, 1], strides = [1, 1]} : vector<128x2xf32> to vector<128x1xf32>
    %138 = vector.broadcast %137 : vector<128x1xf32> to vector<128x128xf32>
    %139 = arith.subf %136, %138 : vector<128x128xf32>
    %140 = math.exp %139 : vector<128x128xf32>
    %141 = vector.extract_strided_slice %116 {offsets = [0, 0], sizes = [128, 16], strides = [1, 1]} : vector<128x32xf32> to vector<128x16xf32>
    %cst_41 = arith.constant dense<0.000000e+00> : vector<128x16xf32>
    %142 = tpu.matmul %140, %141, %cst_41 {dimension_numbers = #tpu.dot_dimension_numbers<[1], [0], [0], [1], [0, 0, 1, 1], [], []>} : vector<128x128xf32>, vector<128x16xf32>, vector<128x16xf32> -> vector<128x16xf32>
    %cst_42 = arith.constant dense<0.000000e+00> : vector<128x1xf32>
    %143 = tpu.matmul %140, %2, %cst_42 {dimension_numbers = #tpu.dot_dimension_numbers<[1], [0], [0], [1], [0, 0, 1, 1], [], []>} : vector<128x128xf32>, vector<128x1xf32>, vector<128x1xf32> -> vector<128x1xf32>
    %144 = vector.extract_strided_slice %119 {offsets = [0, 1], sizes = [128, 1], strides = [1, 1]} : vector<128x2xf32> to vector<128x1xf32>
    %145 = vector.extract_strided_slice %120 {offsets = [1, 0], sizes = [1, 128], strides = [1, 1]} : vector<2x128xf32> to vector<1x128xf32>
    %146 = vector.broadcast %144 : vector<128x1xf32> to vector<128x128xf32>
    %147 = vector.broadcast %145 : vector<1x128xf32> to vector<128x128xf32>
    %148 = arith.addf %146, %147 : vector<128x128xf32>
    %cst_43 = arith.constant 2.000000e-01 : f32
    %149 = vector.broadcast %cst_43 : f32 to vector<128x128xf32>
    %150 = arith.mulf %149, %148 : vector<128x128xf32>
    %151 = arith.maximumf %148, %150 : vector<128x128xf32>
    %152 = arith.addf %151, %1 : vector<128x128xf32>
    %153 = vector.extract_strided_slice %127 {offsets = [0, 1], sizes = [128, 1], strides = [1, 1]} : vector<128x2xf32> to vector<128x1xf32>
    %154 = vector.broadcast %153 : vector<128x1xf32> to vector<128x128xf32>
    %155 = arith.subf %152, %154 : vector<128x128xf32>
    %156 = math.exp %155 : vector<128x128xf32>
    %157 = vector.extract_strided_slice %116 {offsets = [0, 16], sizes = [128, 16], strides = [1, 1]} : vector<128x32xf32> to vector<128x16xf32>
    %cst_44 = arith.constant dense<0.000000e+00> : vector<128x16xf32>
    %158 = tpu.matmul %156, %157, %cst_44 {dimension_numbers = #tpu.dot_dimension_numbers<[1], [0], [0], [1], [0, 0, 1, 1], [], []>} : vector<128x128xf32>, vector<128x16xf32>, vector<128x16xf32> -> vector<128x16xf32>
    %cst_45 = arith.constant dense<0.000000e+00> : vector<128x1xf32>
    %159 = tpu.matmul %156, %2, %cst_45 {dimension_numbers = #tpu.dot_dimension_numbers<[1], [0], [0], [1], [0, 0, 1, 1], [], []>} : vector<128x128xf32>, vector<128x1xf32>, vector<128x1xf32> -> vector<128x1xf32>
    %160 = tpu.concatenate %143, %159 in 1 : vector<128x1xf32>, vector<128x1xf32> -> vector<128x2xf32>
    %cst_46 = arith.constant 1.000000e-30 : f32
    %161 = vector.broadcast %cst_46 : f32 to vector<128x2xf32>
    %162 = arith.maximumf %160, %161 : vector<128x2xf32>
    %163 = tpu.reciprocal %162 {approx = true} : vector<128x2xf32> -> vector<128x2xf32>
    %164 = arith.mulf %162, %163 : vector<128x2xf32>
    %cst_47 = arith.constant 2.000000e+00 : f32
    %165 = vector.broadcast %cst_47 : f32 to vector<128x2xf32>
    %166 = arith.subf %165, %164 : vector<128x2xf32>
    %167 = arith.mulf %163, %166 : vector<128x2xf32>
    %168 = vector.extract_strided_slice %167 {offsets = [0, 0], sizes = [128, 1], strides = [1, 1]} : vector<128x2xf32> to vector<128x1xf32>
    %169 = vector.broadcast %168 : vector<128x1xf32> to vector<128x16xf32>
    %170 = arith.mulf %142, %169 : vector<128x16xf32>
    %171 = vector.extract_strided_slice %167 {offsets = [0, 1], sizes = [128, 1], strides = [1, 1]} : vector<128x2xf32> to vector<128x1xf32>
    %172 = vector.broadcast %171 : vector<128x1xf32> to vector<128x16xf32>
    %173 = arith.mulf %158, %172 : vector<128x16xf32>
    %174 = tpu.concatenate %170, %173 in 1 : vector<128x16xf32>, vector<128x16xf32> -> vector<128x32xf32>
    %175 = vector.broadcast %115 : vector<1x32xf32> to vector<128x32xf32>
    %176 = arith.addf %174, %175 : vector<128x32xf32>
    %177 = vector.extract_strided_slice %176 {offsets = [0, 0], sizes = [128, 16], strides = [1, 1]} : vector<128x32xf32> to vector<128x16xf32>
    %178 = vector.extract_strided_slice %176 {offsets = [0, 16], sizes = [128, 16], strides = [1, 1]} : vector<128x32xf32> to vector<128x16xf32>
    %179 = arith.addf %177, %178 : vector<128x16xf32>
    %cst_48 = arith.constant 5.000000e-01 : f32
    %180 = vector.broadcast %cst_48 : f32 to vector<128x16xf32>
    %181 = arith.mulf %179, %180 : vector<128x16xf32>
    %c0_49 = arith.constant 0 : index
    %c0_50 = arith.constant 0 : index
    %182 = vector.load %arg8[%c0_49, %c0_50] : memref<128x16xf32, #tpu.memory_space<vmem>>, vector<128x16xf32>
    tpu.vector_store %arg8[%c0_49, %c0_50], %181 {strides = array<i32>} : memref<128x16xf32, #tpu.memory_space<vmem>>, vector<128x16xf32>,
    return
  }
}

</mosaic_0001>

<bundles_post_ra>
// kernel: squeeze.11
= control target key start
LH: loop header
LB: loop body
LE: loop exit
PB: predicated region body
PF: predicated region fallthrough
CT: control target
= control target key end

     0   :  { %vm8_vm0 = vcmask 130048   ;;  %vm14_vm1 = vcmask 261248   ;;  %s42_s0 = inlined_call_operand.vmem [shape: f32[2,16], index: 0, kind: input, shape index: {}]   ;;  %s43_s1 = inlined_call_operand.vmem [shape: f32[1,32], index: 1, kind: output, shape index: {}]  }
   0x1   :  { %v5_v0 = vld [vmem:[%s42_s0] sm:$0x3]  ;;  %s25_s0 = smov 16  }
   0x2   :  { %6 = vst [vmem:[#allocation1] sm:$0x3] %v5_v0 }
   0x9   :  { %v11_v1 = vld [vmem:[#allocation1 + $0x1] sm:$0x1]   ;;  %v7_v2 = vld [vmem:[#allocation1] sm:$0x1]  }
   0xa   :  { %12 = vrot.lane.b32.xlu0 %v11_v1, %s25_s0  ;;  %9 = vst.msk [vmem:[#allocation0] sm:$0x1] %vm8_vm0, %v7_v2  }
  0x7c   :  { %v13_v3 = vpop.permute.xlu0 %12  }
  0x7d   :  { %15 = vst.msk [vmem:[#allocation0] sm:$0x1] %vm14_vm1, %v13_v3  }
  0x84   :  { %v20_v4 = vld [vmem:[#allocation0] sm:$0x1] }
  0x85   :  { %23 = vst [vmem:[%s43_s1] sm:$0x1] %v20_v4 }

// kernel: squeeze.8
= control target key start
LH: loop header
LB: loop body
LE: loop exit
PB: predicated region body
PF: predicated region fallthrough
CT: control target
= control target key end

     0   :  { %vm8_vm0 = vcmask 261120   ;;  %s40_s8 = smov 32   ;;  %s41_s9 = smov 64   ;;  %vm14_vm1 = vcmask 1048320   ;;  %vm20_vm2 = vcmask 785920   ;;  %vm26_vm3 = vcmask 523520   ;;  %s58_s0 = inlined_call_operand.vmem [shape: f32[4,32], index: 0, kind: input, shape index: {}]   ;;  %s59_s1 = inlined_call_operand.vmem [shape: f32[1,128], index: 1, kind: output, shape index: {}]  }
   0x1   :  { %v5_v0 = vld [vmem:[%s58_s0] sm:$0xf]  ;;  %s39_s0 = smov 96  }
   0x2   :  { %6 = vst [vmem:[#allocation1] sm:$0xf] %v5_v0 }
   0x9   :  { %v11_v1 = vld [vmem:[#allocation1 + $0x3] sm:$0x1]   ;;  %v23_v2 = vld [vmem:[#allocation1 + $0x1] sm:$0x1]   ;;  %v7_v3 = vld [vmem:[#allocation1] sm:$0x1]  }
   0xa   :  { %12 = vrot.lane.b32.xlu0 %v11_v1, %s39_s0  ;;  %24 = vrot.lane.b32.xlu1 %v23_v2, %s40_s8  ;;  %v17_v4 = vld [vmem:[#allocation1 + $0x2] sm:$0x1]   ;;  %9 = vst.msk [vmem:[#allocation0] sm:$0x1] %vm8_vm0, %v7_v3  }
   0xe   :  { %18 = vrot.lane.b32.xlu0 %v17_v4, %s41_s9 }
  0x7c   :  { %v13_v5 = vpop.permute.xlu0 %12   ;;  %v25_v6 = vpop.permute.xlu1 %24  }
  0x7d   :  { %15 = vst.msk [vmem:[#allocation0] sm:$0x1] %vm14_vm1, %v13_v5  }
  0x80   :  { %v19_v7 = vpop.permute.xlu0 %18  }
  0x81   :  { %21 = vst.msk [vmem:[#allocation0] sm:$0x1] %vm20_vm2, %v19_v7  }
  0x82   :  { %27 = vst.msk [vmem:[#allocation0] sm:$0x1] %vm26_vm3, %v25_v6  }
  0x89   :  { %v32_v8 = vld [vmem:[#allocation0] sm:$0x1] }
  0x8a   :  { %35 = vst [vmem:[%s59_s1] sm:$0x1] %v32_v8 }

// kernel: gat_forward.1
= control target key start
LH: loop header
LB: loop body
LE: loop exit
PB: predicated region body
PF: predicated region fallthrough
CT: control target
= control target key end

     0   :  { %vm78_vm0 = vcmask 523264   ;;  %v11537_v2 = vmov 5   ;;  %v11541_v3 = vmov 4   ;;  %v11535_v37 = vmov 7   ;;  %s7952_s22 = smov 4   ;;  %s7954_s23 = smov 64   ;;  %s11526_s3 = inlined_call_operand.vmem [shape: f32[64,8], index: 3, kind: input, shape index: {}]   ;;  %s11527_s0 = inlined_call_operand.vmem [shape: f32[128,64], index: 0, kind: input, shape index: {}]   ;;  %s11528_s2 = inlined_call_operand.vmem [shape: f32[64,128], index: 2, kind: input, shape index: {}]   ;;  %s11529_s1 = inlined_call_operand.vmem [shape: f32[128,128], index: 1, kind: input, shape index: {}]   ;;  %s11530_s5 = inlined_call_operand.vmem [shape: f32[128,32], index: 5, kind: input, shape index: {}]   ;;  %s11531_s6 = inlined_call_operand.vmem [shape: f32[128,4], index: 6, kind: input, shape index: {}]   ;;  %s11532_s4 = inlined_call_operand.vmem [shape: f32[1,128], index: 4, kind: input, shape index: {}]   ;;  %s11533_s7 = inlined_call_operand.vmem [shape: f32[1,32], index: 7, kind: input, shape index: {}]   ;;  %s11534_s8 = inlined_call_operand.vmem [shape: f32[128,16], index: 8, kind: output, shape index: {}]  }
   0x1   :  { %v76_v0 = vld [vmem:[%s11526_s3 + $0x38] sm:$0xff]  ;;  %v75_v1 = vld [vmem:[%s11526_s3 + $0x30] sm:$0xff]  ;;  %7478 = vset.pattern.permute.xlu0 %v11537_v2  ;;  %7477 = vset.pattern.permute.xlu1 %v11541_v3  ;;  %v74_v4 = vld [vmem:[%s11526_s3 + $0x28] sm:$0xff]  ;;  %v11539_v38 = vmov 6   ;;  %vm449_vm1 = vcmask 31744   ;;  %s7956_s21 = smov 1  }
   0x2   :  { %6635 = vmatprep.subr.mxu1 %v76_v0  ;;  %v29_v5 = vld [vmem:[%s11527_s0] sm:$0xff]  ;;  %v72_v7 = vld [vmem:[%s11526_s3 + $0x18] sm:$0xff]  ;;  %v71_v8 = vld [vmem:[%s11526_s3 + $0x10] sm:$0xff]  ;;  %s7958_s24 = smov 3   ;;  %vm3059_vm2 = vcmask 7168   ;;  %vm3076_vm3 = vcmask 15360  }
   0x3   :  { %6636 = vmatpush3.msra.mxu1 %v76_v0  ;;  %6651 = vmatprep.mubr.msk.f32.mxu1 %vm78_vm0, %v29_v5  ;;  %v73_v6 = vld [vmem:[%s11526_s3 + $0x20] sm:$0xff]  ;;  %v68_v9 = vld [vmem:[%s11528_s2 + $0x38] sm:$0xff]  ;;  %v67_v10 = vld [vmem:[%s11528_s2 + $0x30] sm:$0xff]  ;;  %vm3093_vm4 = vcmask 23552   ;;  %vm3718_vm5 = vcmask 261120   ;;  %vm3751_vm6 = vcmask 785408  }
   0x4   :  { %6637 = vmatprep.subr.mxu1 %v75_v1  ;;  %6611 = vmatprep.mubr.msk.f32.mxu0 %vm78_vm0, %v29_v5  ;;  %v70_v11 = vld [vmem:[%s11526_s3 + $0x8] sm:$0xff]  ;;  %v69_v13 = vld [vmem:[%s11526_s3] sm:$0xff]  ;;  %v64_v16 = vld [vmem:[%s11528_s2 + $0x18] sm:$0xff] }
   0x5   :  { %6638 = vmatpush3.msra.mxu1 %v75_v1  ;;  %6595 = vmatprep.subr.mxu0 %v68_v9  ;;  %v66_v12 = vld [vmem:[%s11528_s2 + $0x28] sm:$0xff]  ;;  %v65_v14 = vld [vmem:[%s11528_s2 + $0x20] sm:$0xff]  ;;  %v31_v17 = vld [vmem:[%s11527_s0 + $0x10] sm:$0xff] }
   0x6   :  { %6639 = vmatprep.subr.mxu1 %v74_v4  ;;  %6596 = vmatpush3.msra.mxu0 %v68_v9  ;;  %v30_v15 = vld [vmem:[%s11527_s0 + $0x8] sm:$0xff]  ;;  %v63_v18 = vld [vmem:[%s11528_s2 + $0x10] sm:$0xff]  ;;  %v32_v19 = vld [vmem:[%s11527_s0 + $0x18] sm:$0xff] }
   0x7   :  { %6640 = vmatpush3.msra.mxu1 %v74_v4  ;;  %6597 = vmatprep.subr.mxu0 %v67_v10  ;;  %v62_v20 = vld [vmem:[%s11528_s2 + $0x8] sm:$0xff]  ;;  %v33_v21 = vld [vmem:[%s11527_s0 + $0x20] sm:$0xff]  ;;  %v35_v24 = vld [vmem:[%s11527_s0 + $0x30] sm:$0xff] }
   0x8   :  { %6641 = vmatprep.subr.mxu1 %v73_v6  ;;  %6598 = vmatpush3.msra.mxu0 %v67_v10  ;;  %v61_v22 = vld [vmem:[%s11528_s2] sm:$0xff]  ;;  %v34_v23 = vld [vmem:[%s11527_s0 + $0x28] sm:$0xff]  ;;  %v36_v25 = vld [vmem:[%s11527_s0 + $0x38] sm:$0xff]  ;;  %s7955_s2 = smov 32  }
   0x9   :  { %6642 = vmatpush3.msra.mxu1 %v73_v6  ;;  %6599 = vmatprep.subr.mxu0 %v66_v12  ;;  %v37_v26 = vld [vmem:[%s11527_s0 + $0x40] sm:$0xff]  ;;  %v38_v27 = vld [vmem:[%s11527_s0 + $0x48] sm:$0xff]  ;;  %v39_v28 = vld [vmem:[%s11527_s0 + $0x50] sm:$0xff] }
   0xa   :  { %6643 = vmatprep.subr.mxu1 %v72_v7  ;;  %6600 = vmatpush3.msra.mxu0 %v66_v12  ;;  %v40_v29 = vld [vmem:[%s11527_s0 + $0x58] sm:$0xff]  ;;  %v41_v30 = vld [vmem:[%s11527_s0 + $0x60] sm:$0xff]  ;;  %v42_v31 = vld [vmem:[%s11527_s0 + $0x68] sm:$0xff] }
   0xb   :  { %6644 = vmatpush3.msra.mxu1 %v72_v7  ;;  %6601 = vmatprep.subr.mxu0 %v65_v14  ;;  %v43_v32 = vld [vmem:[%s11527_s0 + $0x70] sm:$0xff]  ;;  %v44_v33 = vld [vmem:[%s11527_s0 + $0x78] sm:$0xff]  ;;  %s7951_s0 = smov 96  }
   0xc   :  { %6645 = vmatprep.subr.mxu1 %v71_v8  ;;  %6602 = vmatpush3.msra.mxu0 %v65_v14 }
   0xd   :  { %6646 = vmatpush3.msra.mxu1 %v71_v8  ;;  %6603 = vmatprep.subr.mxu0 %v64_v16 }
   0xe   :  { %6647 = vmatprep.subr.mxu1 %v70_v11  ;;  %6604 = vmatpush3.msra.mxu0 %v64_v16 }
   0xf   :  { %6648 = vmatpush3.msra.mxu1 %v70_v11  ;;  %6605 = vmatprep.subr.mxu0 %v63_v18 }
  0x10   :  { %6649 = vmatprep.subr.mxu1 %v69_v13  ;;  %6606 = vmatpush3.msra.mxu0 %v63_v18 }
  0x11   :  { %6650 = vmatpush3.msra.mxu1 %v69_v13  ;;  %6607 = vmatprep.subr.mxu0 %v62_v20 }
  0x12   :  { %6652 = vmatmul.mubr.msk.f32.vlgmr.msra.gmra.mxu1 %vm78_vm0, %v30_v15  ;;  %6608 = vmatpush3.msra.mxu0 %v62_v20 }
  0x13   :  { %6654 = vmatprep.mubr.msk.f32.mxu1 %vm78_vm0, %v31_v17  ;;  %6609 = vmatprep.subr.mxu0 %v61_v22 }
  0x14   :  { %6610 = vmatpush3.msra.mxu0 %v61_v22 }
  0x15   :  { %6612 = vmatmul.mubr.msk.f32.vlgmr.msra.gmra.mxu0 %vm78_vm0, %v30_v15 }
  0x16   :  { %6655 = vmatmul.mubr.msk.f32.gmra.mxu1 %vm78_vm0, %v32_v19  ;;  %6614 = vmatprep.mubr.msk.f32.mxu0 %vm78_vm0, %v31_v17 }
  0x17   :  { %6657 = vmatprep.mubr.msk.f32.mxu1 %vm78_vm0, %v33_v21 }
  0x19   :  { %6615 = vmatmul.mubr.msk.f32.gmra.mxu0 %vm78_vm0, %v32_v19 }
  0x1a   :  { %6658 = vmatmul.mubr.msk.f32.gmra.mxu1 %vm78_vm0, %v34_v23  ;;  %6617 = vmatprep.mubr.msk.f32.mxu0 %vm78_vm0, %v33_v21 }
  0x1b   :  { %6660 = vmatprep.mubr.msk.f32.mxu1 %vm78_vm0, %v35_v24 }
  0x1d   :  { %6618 = vmatmul.mubr.msk.f32.gmra.mxu0 %vm78_vm0, %v34_v23 }
  0x1e   :  { %6661 = vmatmul.mubr.msk.f32.gmra.mxu1 %vm78_vm0, %v36_v25  ;;  %6620 = vmatprep.mubr.msk.f32.mxu0 %vm78_vm0, %v35_v24 }
  0x1f   :  { %6663 = vmatprep.mubr.msk.f32.mxu1 %vm78_vm0, %v37_v26 }
  0x21   :  { %6621 = vmatmul.mubr.msk.f32.gmra.mxu0 %vm78_vm0, %v36_v25 }
  0x22   :  { %6664 = vmatmul.mubr.msk.f32.gmra.mxu1 %vm78_vm0, %v38_v27  ;;  %6623 = vmatprep.mubr.msk.f32.mxu0 %vm78_vm0, %v37_v26 }
  0x23   :  { %6666 = vmatprep.mubr.msk.f32.mxu1 %vm78_vm0, %v39_v28 }
  0x25   :  { %6624 = vmatmul.mubr.msk.f32.gmra.mxu0 %vm78_vm0, %v38_v27 }
  0x26   :  { %6667 = vmatmul.mubr.msk.f32.gmra.mxu1 %vm78_vm0, %v40_v29  ;;  %6626 = vmatprep.mubr.msk.f32.mxu0 %vm78_vm0, %v39_v28 }
  0x27   :  { %6669 = vmatprep.mubr.msk.f32.mxu1 %vm78_vm0, %v41_v30 }
  0x29   :  { %6627 = vmatmul.mubr.msk.f32.gmra.mxu0 %vm78_vm0, %v40_v29 }
  0x2a   :  { %6670 = vmatmul.mubr.msk.f32.gmra.mxu1 %vm78_vm0, %v42_v31  ;;  %6629 = vmatprep.mubr.msk.f32.mxu0 %vm78_vm0, %v41_v30 }
  0x2b   :  { %6672 = vmatprep.mubr.msk.f32.mxu1 %vm78_vm0, %v43_v32 }
  0x2d   :  { %6630 = vmatmul.mubr.msk.f32.gmra.mxu0 %vm78_vm0, %v42_v31 }
  0x2e   :  { %6673 = vmatmul.mubr.msk.f32.gmra.mxu1 %vm78_vm0, %v44_v33  ;;  %6632 = vmatprep.mubr.msk.f32.mxu0 %vm78_vm0, %v43_v32 }
  0x31   :  { %6633 = vmatmul.mubr.msk.f32.gmra.mxu0 %vm78_vm0, %v44_v33 }
  0xd2   :  { %v8140_v34 = vpop.f32.mrf.mxu1 }
  0xd3   :  { %1110 = vperm.xlu0 %7478, %v8140_v34   ;;  %546 = vperm.xlu1 %7477, %v8140_v34  }
  0xd4   :  { %v8144_v35 = vpop.f32.mrf.mxu1 }
  0xd5   :  { %v8152_v39 = vpop.f32.mrf.mxu0  ;;  %v450_v25 = vsel %vm449_vm1, %v8144_v35, -inf }
  0xd6   :  { %v8146_v36 = vpop.f32.mrf.mxu1 }
  0xd7   :  { %7484 = vset.pattern.permute.xlu0 %v11535_v37  ;;  %7479 = vset.pattern.permute.xlu1 %v11539_v38  ;;  %v8158_v41 = vpop.f32.mrf.mxu0  ;;  %v453_v13 = vsel %vm449_vm1, %v8146_v36, -inf }
  0xd8   :  { %1708 = vperm.xlu1 %7479, %v8140_v34   ;;  %2286 = vperm.xlu0 %7484, %v8144_v35   ;;  %v8154_v40 = vpop.f32.mrf.mxu1  ;;  %11573 = vst [vmem:[#allocation2_spill] sm:$0xff] %v8158_v41 }
  0xd9   :  { %v8161_v42 = vpop.f32.mrf.mxu0  ;;  %v452_v16 = vsel %vm449_vm1, %v8154_v40, -inf }
  0xda   :  { %v8163_v43 = vpop.f32.mrf.mxu1 }
  0xdb   :  { %v8166_v44 = vpop.f32.mrf.mxu0  ;;  %v456_v28 = vsel %vm449_vm1, %v8163_v43, -inf }
  0xdc   :  { %7480 = vset.pattern.permute.xlu1 %v11535_v37  ;;  %2298 = vperm.xlu0 %7484, %v8146_v36   ;;  %11574 = vst [vmem:[#allocation3_spill] sm:$0xff] %v8166_v44  ;;  %v8172_v46 = vpop.f32.mrf.mxu1 }
  0xdd   :  { %2290 = vperm.xlu1 %7480, %v8140_v34   ;;  %v8170_v45 = vpop.f32.mrf.mxu0  ;;  %v454_v24 = vsel %vm449_vm1, %v8172_v46, -inf }
  0xde   :  { %v8192_v52 = vpop.f32.mrf.mxu1  ;;  %v455_v33 = vmax.f32 %v450_v25, %v454_v24 }
  0xdf   :  { %v8175_v47 = vpop.f32.mrf.mxu0  ;;  %v460_v14 = vsel %vm449_vm1, %v8192_v52, -inf }
  0xe0   :  { %2306 = vperm.xlu0 %7484, %v8163_v43   ;;  %11575 = vst [vmem:[#allocation4_spill] sm:$0xff] %v8175_v47  ;;  %v8213_v58 = vpop.f32.mrf.mxu1  ;;  %v461_v18 = vmax.f32 %v453_v13, %v460_v14  ;;  %v451_v13 = vsel %vm449_vm1, %v8140_v34, -inf }
  0xe1   :  { %7481 = vset.pattern.permute.xlu1 %v11541_v3  ;;  %v8179_v48 = vpop.f32.mrf.mxu0  ;;  %v458_v17 = vsel %vm449_vm1, %v8213_v58, -inf }
  0xe2   :  { %541 = vperm.xlu1 %7481, %v8144_v35   ;;  %v8235_v60 = vpop.f32.mrf.mxu1  ;;  %v459_v20 = vmax.f32 %v452_v16, %v458_v17 }
  0xe3   :  { %v8182_v49 = vpop.f32.mrf.mxu0  ;;  %v464_v14 = vsel %vm449_vm1, %v8235_v60, -inf }
  0xe4   :  { %7496 = vset.pattern.permute.xlu0 %v11537_v2  ;;  %11576 = vst [vmem:[#allocation5_spill] sm:$0xff] %v8182_v49  ;;  %v8255_v61 = vpop.f32.mrf.mxu1 }
  0xe5   :  { %1122 = vperm.xlu0 %7496, %v8172_v46   ;;  %v8186_v50 = vpop.f32.mrf.mxu0  ;;  %v462_v30 = vsel %vm449_vm1, %v8255_v61, -inf }
  0xe6   :  { %7482 = vset.pattern.permute.xlu1 %v11537_v2  ;;  %v8275_v62 = vpop.f32.mrf.mxu1 }
  0xe7   :  { %1106 = vperm.xlu1 %7482, %v8144_v35   ;;  %v8190_v51 = vpop.f32.mrf.mxu0  ;;  %v468_v21 = vsel %vm449_vm1, %v8275_v62, -inf }
  0xe8   :  { %11577 = vst [vmem:[#allocation6_spill] sm:$0xff] %v8190_v51  ;;  %v8286_v63 = vpop.f32.mrf.mxu1  ;;  %v469_v27 = vmax.f32 %v461_v18, %v468_v21  ;;  %v457_v18 = vmax.f32 %v451_v13, %v456_v28 }
  0xe9   :  { %7497 = vset.pattern.permute.xlu0 %v11539_v38  ;;  %v8195_v53 = vpop.f32.mrf.mxu0  ;;  %v466_v22 = vsel %vm449_vm1, %v8286_v63, -inf }
  0xea   :  { %1720 = vperm.xlu0 %7497, %v8172_v46   ;;  %v8296_v0 = vpop.f32.mrf.mxu1  ;;  %v467_v26 = vmax.f32 %v459_v20, %v466_v22  ;;  %v463_v20 = vmax.f32 %v455_v33, %v462_v30 }
  0xeb   :  { %7483 = vset.pattern.permute.xlu1 %v11539_v38  ;;  %v8199_v54 = vpop.f32.mrf.mxu0  ;;  %v472_v24 = vsel %vm449_vm1, %v8296_v0, -inf }
  0xec   :  { %1704 = vperm.xlu1 %7483, %v8144_v35   ;;  %11578 = vst [vmem:[#allocation7_spill] sm:$0xff] %v8199_v54  ;;  %v8306_v1 = vpop.f32.mrf.mxu1 }
  0xed   :  { %v8202_v55 = vpop.f32.mrf.mxu0  ;;  %v470_v17 = vsel %vm449_vm1, %v8306_v1, -inf }
  0xee   :  { %7500 = vset.pattern.permute.xlu0 %v11537_v2  ;;  %v8316_v4 = vpop.f32.mrf.mxu1 }
  0xef   :  { %1134 = vperm.xlu0 %7500, %v8192_v52   ;;  %v8206_v56 = vpop.f32.mrf.mxu0  ;;  %v476_v32 = vsel %vm449_vm1, %v8316_v4, -inf }
  0xf0   :  { %7485 = vset.pattern.permute.xlu1 %v11541_v3  ;;  %11579 = vst [vmem:[#allocation8_spill] sm:$0xff] %v8206_v56  ;;  %v8338_v7 = vpop.f32.mrf.mxu1  ;;  %v477_v22 = vmax.f32 %v469_v27, %v476_v32  ;;  %v11593_v32 = vmov 4  }
  0xf1   :  { %556 = vperm.xlu1 %7485, %v8146_v36   ;;  %v8210_v57 = vpop.f32.mrf.mxu0  ;;  %v474_v31 = vsel %vm449_vm1, %v8338_v7, -inf }
  0xf2   :  { %6675 = vmatprep.subr.mxu0 %v8210_v57  ;;  %v475_v21 = vmax.f32 %v467_v26, %v474_v31 }
  0xf3   :  { %7502 = vset.pattern.permute.xlu0 %v11535_v37  ;;  %v8216_v59 = vpop.f32.mrf.mxu0  ;;  %6676 = vmatpush3.msra.mxu0 %v8210_v57 }
  0xf4   :  { %2314 = vperm.xlu0 %7502, %v8192_v52   ;;  %11580 = vst [vmem:[#allocation9_spill] sm:$0xff] %v8216_v59  ;;  %6677 = vmatprep.subr.mxu0 %v8216_v59  ;;  %v479_v13 = vmax.f32 %v475_v21, %v477_v22 }
  0xf5   :  { %7486 = vset.pattern.permute.xlu1 %v11537_v2  ;;  %6678 = vmatpush3.msra.mxu0 %v8216_v59 }
  0xf6   :  { %1118 = vperm.xlu1 %7486, %v8146_v36   ;;  %6679 = vmatprep.subr.mxu0 %v8202_v55 }
  0xf7   :  { %6680 = vmatpush3.msra.mxu0 %v8202_v55 }
  0xf8   :  { %7504 = vset.pattern.permute.xlu0 %v11537_v2  ;;  %6681 = vmatprep.subr.mxu0 %v8206_v56 }
  0xf9   :  { %1130 = vperm.xlu0 %7504, %v8213_v58   ;;  %6682 = vmatpush3.msra.mxu0 %v8206_v56 }
  0xfa   :  { %7487 = vset.pattern.permute.xlu1 %v11539_v38  ;;  %6683 = vmatprep.subr.mxu0 %v8195_v53 }
  0xfb   :  { %1716 = vperm.xlu1 %7487, %v8146_v36   ;;  %6684 = vmatpush3.msra.mxu0 %v8195_v53 }
  0xfc   :  { %6685 = vmatprep.subr.mxu0 %v8199_v54 }
  0xfd   :  { %7506 = vset.pattern.permute.xlu0 %v11535_v37  ;;  %6686 = vmatpush3.msra.mxu0 %v8199_v54 }
  0xfe   :  { %2310 = vperm.xlu0 %7506, %v8213_v58   ;;  %6687 = vmatprep.subr.mxu0 %v8186_v50 }
  0xff   :  { %7488 = vset.pattern.permute.xlu1 %v11541_v3  ;;  %6688 = vmatpush3.msra.mxu0 %v8186_v50 }
 0x100   :  { %551 = vperm.xlu1 %7488, %v8154_v40   ;;  %6689 = vmatprep.subr.mxu0 %v8190_v51 }
 0x101   :  { %6690 = vmatpush3.msra.mxu0 %v8190_v51 }
 0x102   :  { %7508 = vset.pattern.permute.xlu0 %v11537_v2  ;;  %6691 = vmatprep.subr.mxu0 %v8179_v48 }
 0x103   :  { %1142 = vperm.xlu0 %7508, %v8235_v60   ;;  %6692 = vmatpush3.msra.mxu0 %v8179_v48 }
 0x104   :  { %7489 = vset.pattern.permute.xlu1 %v11537_v2  ;;  %6693 = vmatprep.subr.mxu0 %v8182_v49 }
 0x105   :  { %1114 = vperm.xlu1 %7489, %v8154_v40   ;;  %6694 = vmatpush3.msra.mxu0 %v8182_v49 }
 0x106   :  { %6695 = vmatprep.subr.mxu0 %v8170_v45 }
 0x107   :  { %7510 = vset.pattern.permute.xlu0 %v11535_v37  ;;  %6696 = vmatpush3.msra.mxu0 %v8170_v45 }
 0x108   :  { %2322 = vperm.xlu0 %7510, %v8235_v60   ;;  %6697 = vmatprep.subr.mxu0 %v8175_v47 }
 0x109   :  { %7490 = vset.pattern.permute.xlu1 %v11539_v38  ;;  %6698 = vmatpush3.msra.mxu0 %v8175_v47 }
 0x10a   :  { %1712 = vperm.xlu1 %7490, %v8154_v40   ;;  %6699 = vmatprep.subr.mxu0 %v8161_v42 }
 0x10b   :  { %6700 = vmatpush3.msra.mxu0 %v8161_v42 }
 0x10c   :  { %7512 = vset.pattern.permute.xlu0 %v11537_v2  ;;  %6701 = vmatprep.subr.mxu0 %v8166_v44 }
 0x10d   :  { %1138 = vperm.xlu0 %7512, %v8255_v61   ;;  %6702 = vmatpush3.msra.mxu0 %v8166_v44 }
 0x10e   :  { %7491 = vset.pattern.permute.xlu1 %v11535_v37  ;;  %6703 = vmatprep.subr.mxu0 %v8152_v39 }
 0x10f   :  { %2294 = vperm.xlu1 %7491, %v8154_v40   ;;  %6704 = vmatpush3.msra.mxu0 %v8152_v39 }
 0x110   :  { %6705 = vmatprep.subr.mxu0 %v8158_v41 }
 0x111   :  { %7514 = vset.pattern.permute.xlu0 %v11535_v37  ;;  %6706 = vmatpush3.msra.mxu0 %v8158_v41 }
 0x112   :  { %2318 = vperm.xlu0 %7514, %v8255_v61  }
 0x113   :  { %7492 = vset.pattern.permute.xlu1 %v11541_v3 }
 0x114   :  { %566 = vperm.xlu1 %7492, %v8163_v43  }
 0x116   :  { %7516 = vset.pattern.permute.xlu0 %v11537_v2 }
 0x117   :  { %1150 = vperm.xlu0 %7516, %v8275_v62  }
 0x118   :  { %7493 = vset.pattern.permute.xlu1 %v11537_v2 }
 0x119   :  { %1126 = vperm.xlu1 %7493, %v8163_v43  }
 0x11b   :  { %7518 = vset.pattern.permute.xlu0 %v11535_v37 }
 0x11c   :  { %2330 = vperm.xlu0 %7518, %v8275_v62  }
 0x11d   :  { %7494 = vset.pattern.permute.xlu1 %v11539_v38 }
 0x11e   :  { %1724 = vperm.xlu1 %7494, %v8163_v43  }
 0x120   :  { %7520 = vset.pattern.permute.xlu0 %v11537_v2 }
 0x121   :  { %1146 = vperm.xlu0 %7520, %v8286_v63  }
 0x122   :  { %7495 = vset.pattern.permute.xlu1 %v11541_v3 }
 0x123   :  { %561 = vperm.xlu1 %7495, %v8172_v46  }
 0x125   :  { %7522 = vset.pattern.permute.xlu0 %v11535_v37 }
 0x126   :  { %2326 = vperm.xlu0 %7522, %v8286_v63  }
 0x127   :  { %7498 = vset.pattern.permute.xlu1 %v11535_v37 }
 0x128   :  { %2302 = vperm.xlu1 %7498, %v8172_v46  }
 0x12a   :  { %7524 = vset.pattern.permute.xlu0 %v11537_v2 }
 0x12b   :  { %1158 = vperm.xlu0 %7524, %v8296_v0  }
 0x12c   :  { %7499 = vset.pattern.permute.xlu1 %v11541_v3 }
 0x12d   :  { %576 = vperm.xlu1 %7499, %v8192_v52  }
 0x12f   :  { %7526 = vset.pattern.permute.xlu0 %v11535_v37 }
 0x130   :  { %2338 = vperm.xlu0 %7526, %v8296_v0  }
 0x131   :  { %7501 = vset.pattern.permute.xlu1 %v11539_v38 }
 0x132   :  { %1732 = vperm.xlu1 %7501, %v8192_v52  }
 0x134   :  { %7528 = vset.pattern.permute.xlu0 %v11537_v2 }
 0x135   :  { %1154 = vperm.xlu0 %7528, %v8306_v1  }
 0x136   :  { %7503 = vset.pattern.permute.xlu1 %v11541_v3 }
 0x137   :  { %571 = vperm.xlu1 %7503, %v8213_v58  }
 0x139   :  { %7530 = vset.pattern.permute.xlu0 %v11535_v37 }
 0x13a   :  { %2334 = vperm.xlu0 %7530, %v8306_v1  }
 0x13b   :  { %7505 = vset.pattern.permute.xlu1 %v11539_v38 }
 0x13c   :  { %1728 = vperm.xlu1 %7505, %v8213_v58  }
 0x13e   :  { %7531 = vset.pattern.permute.xlu0 %v11541_v3 }
 0x13f   :  { %616 = vperm.xlu0 %7531, %v8316_v4  }
 0x140   :  { %7507 = vset.pattern.permute.xlu1 %v11541_v3 }
 0x141   :  { %586 = vperm.xlu1 %7507, %v8235_v60  }
 0x143   :  { %7532 = vset.pattern.permute.xlu0 %v11537_v2 }
 0x144   :  { %1166 = vperm.xlu0 %7532, %v8316_v4  }
 0x145   :  { %7509 = vset.pattern.permute.xlu1 %v11539_v38 }
 0x146   :  { %1740 = vperm.xlu1 %7509, %v8235_v60  }
 0x148   :  { %7533 = vset.pattern.permute.xlu0 %v11535_v37 }
 0x149   :  { %2346 = vperm.xlu0 %7533, %v8316_v4  }
 0x14a   :  { %7511 = vset.pattern.permute.xlu1 %v11541_v3 }
 0x14b   :  { %581 = vperm.xlu1 %7511, %v8255_v61  }
 0x14d   :  { %1395 = vrot.lane.b32.xlu0 %v8210_v57, %s7951_s0 }
 0x14e   :  { %v8332_v5 = vpop.permute.xlu0 %1110  ;;  %v8334_v6 = vpop.permute.xlu1 %546  ;;  %7535 = vset.pattern.permute.xlu0 %v11537_v2  ;;  %v471_v2 = vmax.f32 %v463_v20, %v470_v17 }
 0x14f   :  { %7513 = vset.pattern.permute.xlu1 %v11539_v38 }
 0x150   :  { %1736 = vperm.xlu1 %7513, %v8255_v61  }
 0x151   :  { %1162 = vperm.xlu0 %7535, %v8338_v7  }
 0x153   :  { %v8342_v8 = vpop.permute.xlu1 %1708  ;;  %v8344_v9 = vpop.permute.xlu0 %2286 }
 0x154   :  { %11581 = vst [vmem:[#allocation10_spill] sm:$0xff] %v8342_v8  ;;  %11582 = vst [vmem:[#allocation11_spill] sm:$0xff] %v8344_v9  ;;  %7515 = vset.pattern.permute.xlu1 %v11541_v3 }
 0x155   :  { %596 = vperm.xlu1 %7515, %v8275_v62   ;;  %7537 = vset.pattern.permute.xlu0 %v11535_v37  ;;  %v465_v37 = vmax.f32 %v457_v18, %v464_v14 }
 0x156   :  { %2342 = vperm.xlu0 %7537, %v8338_v7  }
 0x157   :  { %v8350_v10 = vpop.permute.xlu0 %2298  ;;  %v473_v28 = vmax.f32 %v465_v37, %v472_v24 }
 0x158   :  { %11583 = vst [vmem:[#allocation12_spill] sm:$0xff] %v8350_v10  ;;  %v8352_v11 = vpop.permute.xlu1 %2290 }
 0x159   :  { %11584 = vst [vmem:[#allocation13_spill] sm:$0xff] %v8352_v11  ;;  %7517 = vset.pattern.permute.xlu1 %v11539_v38  ;;  %v478_v26 = vmax.f32 %v471_v2, %v473_v28 }
 0x15a   :  { %1748 = vperm.xlu1 %7517, %v8275_v62   ;;  %1391 = vrot.lane.b32.xlu0 %v8202_v55, %s7951_s0 }
 0x15b   :  { %v8358_v12 = vpop.permute.xlu0 %2306  ;;  %v480_v30 = vmax.f32 %v478_v26, %v479_v13 }
 0x15c   :  { %11585 = vst [vmem:[#allocation14_spill] sm:$0xff] %v8358_v12 }
 0x15d   :  { %v8364_v15 = vpop.permute.xlu1 %541  ;;  %v481_v33 = vrot.slane %v480_v30, 4 }
 0x15e   :  { %7519 = vset.pattern.permute.xlu1 %v11541_v3  ;;  %1387 = vrot.lane.b32.xlu0 %v8195_v53, %s7951_s0 }
 0x15f   :  { %591 = vperm.xlu1 %7519, %v8286_v63   ;;  %v482_v17 = vmax.f32 %v480_v30, %v481_v33 }
 0x160   :  { %v8374_v19 = vpop.permute.xlu0 %1122 }
 0x161   :  { %11586 = vst [vmem:[#allocation15_spill] sm:$0xff] %v8374_v19  ;;  %v483_v20 = vrot.slane %v482_v17, 2 }
 0x162   :  { %v8380_v23 = vpop.permute.xlu1 %1106  ;;  %1383 = vrot.lane.b32.xlu0 %v8186_v50, %s7951_s0 }
 0x163   :  { %7521 = vset.pattern.permute.xlu1 %v11539_v38  ;;  %v484_v24 = vmax.f32 %v482_v17, %v483_v20 }
 0x164   :  { %1744 = vperm.xlu1 %7521, %v8286_v63  }
 0x165   :  { %v8392_v29 = vpop.permute.xlu0 %1720  ;;  %v485_v13 = vrot.slane %v484_v24, 1 }
 0x166   :  { %11587 = vst [vmem:[#allocation16_spill] sm:$0xff] %v8392_v29  ;;  %1379 = vrot.lane.b32.xlu0 %v8179_v48, %s7951_s0 }
 0x167   :  { %v8406_v16 = vpop.permute.xlu1 %1704  ;;  %v486_v30 = vmax.f32 %v484_v24, %v485_v13 }
 0x168   :  { %11588 = vst [vmem:[#allocation17_spill] sm:$0xff] %v8406_v16  ;;  %7523 = vset.pattern.permute.xlu1 %v11541_v3  ;;  %v11590_v3 = vmov 6  }
 0x169   :  { %606 = vperm.xlu1 %7523, %v8296_v0  }
 0x16a   :  { %1375 = vrot.lane.b32.xlu0 %v8170_v45, %s7951_s0  ;;  %v8416_v25 = vpop.permute.xlu0 %1134 }
 0x16b   :  { %11589 = vst [vmem:[#allocation18_spill] sm:$0xff] %v8416_v25 }
 0x16c   :  { %v8418_v38 = vpop.permute.xlu1 %556 }
 0x16d   :  { %7525 = vset.pattern.permute.xlu1 %v11590_v3 }
 0x16e   :  { %1756 = vperm.xlu1 %7525, %v8296_v0   ;;  %1371 = vrot.lane.b32.xlu0 %v8161_v42, %s7951_s0 }
 0x16f   :  { %v8424_v27 = vpop.permute.xlu0 %2314 }
 0x170   :  { %11591 = vst [vmem:[#allocation19_spill] sm:$0xff] %v8424_v27 }
 0x171   :  { %v8426_v31 = vpop.permute.xlu1 %1118 }
 0x172   :  { %11592 = vst [vmem:[#allocation20_spill] sm:$0xff] %v8426_v31  ;;  %7527 = vset.pattern.permute.xlu1 %v11593_v32 }
 0x173   :  { %601 = vperm.xlu1 %7527, %v8306_v1  }
 0x174   :  { %v8430_v37 = vpop.permute.xlu0 %1130 }
 0x175   :  { %11594 = vst [vmem:[#allocation21_spill] sm:$0xff] %v8430_v37 }
 0x176   :  { %v8432_v14 = vpop.permute.xlu1 %1716 }
 0x177   :  { %11595 = vst [vmem:[#allocation22_spill] sm:$0xff] %v8432_v14  ;;  %7529 = vset.pattern.permute.xlu1 %v11590_v3 }
 0x178   :  { %1752 = vperm.xlu1 %7529, %v8306_v1  }
 0x179   :  { %v8436_v2 = vpop.permute.xlu0 %2310 }
 0x17a   :  { %11596 = vst [vmem:[#allocation23_spill] sm:$0xff] %v8436_v2 }
 0x17b   :  { %v8438_v18 = vpop.permute.xlu1 %551 }
 0x17c   :  { %1764 = vperm.xlu1 %7529, %v8316_v4  }
 0x17e   :  { %v8441_v21 = vpop.permute.xlu0 %1142 }
 0x17f   :  { %11597 = vst [vmem:[#allocation24_spill] sm:$0xff] %v8441_v21  ;;  %v11553_v21 = vmov 1.0  }
 0x180   :  { %v8443_v22 = vpop.permute.xlu1 %1114  ;;  %7534 = vset.pattern.permute.xlu1 %v11593_v32  ;;  %6731 = vmatprep.subr.mxu1 %v11553_v21 }
 0x181   :  { %611 = vperm.xlu1 %7534, %v8338_v7   ;;  %6732 = vmatpush3.msra.mxu1 %v11553_v21 }
 0x182   :  { %6733 = vmatprep.subr.mxu1 %v11553_v21 }
 0x183   :  { %v8447_v28 = vpop.permute.xlu0 %2322  ;;  %6734 = vmatpush3.msra.mxu1 %v11553_v21 }
 0x184   :  { %11598 = vst [vmem:[#allocation25_spill] sm:$0xff] %v8447_v28  ;;  %6735 = vmatprep.subr.mxu1 %v11553_v21 }
 0x185   :  { %v8449_v26 = vpop.permute.xlu1 %1712  ;;  %7536 = vset.pattern.permute.xlu1 %v11590_v3  ;;  %6736 = vmatpush3.msra.mxu1 %v11553_v21 }
 0x186   :  { %11599 = vst [vmem:[#allocation26_spill] sm:$0xff] %v8449_v26  ;;  %1760 = vperm.xlu1 %7536, %v8338_v7   ;;  %6737 = vmatprep.subr.mxu1 %v11553_v21 }
 0x187   :  { %6738 = vmatpush3.msra.mxu1 %v11553_v21 }
 0x188   :  { %v8453_v33 = vpop.permute.xlu0 %1138  ;;  %6739 = vmatprep.subr.mxu1 %v11553_v21 }
 0x189   :  { %11600 = vst [vmem:[#allocation27_spill] sm:$0xff] %v8453_v33  ;;  %6740 = vmatpush3.msra.mxu1 %v11553_v21 }
 0x18a   :  { %v8455_v27 = vpop.permute.xlu1 %2294  ;;  %488 = vrot.lane.b32.xlu1 %v486_v30, %s7952_s22  ;;  %6741 = vmatprep.subr.mxu1 %v11553_v21  ;;  %s7957_s22 = smov 2  }
 0x18b   :  { %11601 = vst [vmem:[#allocation28_spill] sm:$0xff] %v8455_v27  ;;  %7538 = vset.pattern.permute.xlu1 %v11593_v32  ;;  %6742 = vmatpush3.msra.mxu1 %v11553_v21 }
 0x18c   :  { %417 = vxpose.xlu0.b32.start [1/16] (narrow) %v8144_v35, 8  ;;  %6743 = vmatprep.subr.mxu1 %v11553_v21 }
 0x18d   :  { %v8459_v17 = vpop.permute.xlu0 %2318  ;;  %6744 = vmatpush3.msra.mxu1 %v11553_v21 }
 0x18e   :  { %11602 = vst [vmem:[#allocation29_spill] sm:$0xff] %v8459_v17  ;;  %1393 = vrot.lane.b32.xlu1 %v8216_v59, %s7951_s0  ;;  %6745 = vmatprep.subr.mxu1 %v11553_v21 }
 0x18f   :  { %v8463_v20 = vpop.permute.xlu1 %566  ;;  %6746 = vmatpush3.msra.mxu1 %v11553_v21 }
 0x190   :  { %418 = vxpose.xlu0.b32.cont [2/16] (narrow) %v8140_v34, 8  ;;  %6747 = vmatprep.subr.mxu1 %v11553_v21 }
 0x191   :  { %6748 = vmatpush3.msra.mxu1 %v11553_v21 }
 0x192   :  { %1389 = vrot.lane.b32.xlu1 %v8206_v56, %s7951_s0  ;;  %v8468_v24 = vpop.permute.xlu0 %1150  ;;  %6749 = vmatprep.subr.mxu1 %v11553_v21 }
 0x193   :  { %11603 = vst [vmem:[#allocation30_spill] sm:$0xff] %v8468_v24  ;;  %6750 = vmatpush3.msra.mxu1 %v11553_v21 }
 0x194   :  { %v8470_v13 = vpop.permute.xlu1 %1126  ;;  %419 = vxpose.xlu0.b32.cont [3/16] (narrow) %v8154_v40, 8  ;;  %6751 = vmatprep.subr.mxu1 %v11553_v21 }
 0x195   :  { %11604 = vst [vmem:[#allocation31_spill] sm:$0xff] %v8470_v13  ;;  %6752 = vmatpush3.msra.mxu1 %v11553_v21 }
 0x196   :  { %1385 = vrot.lane.b32.xlu1 %v8199_v54, %s7951_s0  ;;  %6753 = vmatprep.subr.mxu1 %v11553_v21 }
 0x197   :  { %v8475_v30 = vpop.permute.xlu0 %2330  ;;  %6754 = vmatpush3.msra.mxu1 %v11553_v21 }
 0x198   :  { %11605 = vst [vmem:[#allocation32_spill] sm:$0xff] %v8475_v30  ;;  %420 = vxpose.xlu0.b32.cont [4/16] (narrow) %v8146_v36, 8  ;;  %6755 = vmatprep.subr.mxu1 %v11553_v21 }
 0x199   :  { %v8478_v28 = vpop.permute.xlu1 %1724  ;;  %6756 = vmatpush3.msra.mxu1 %v11553_v21 }
 0x19a   :  { %11606 = vst [vmem:[#allocation33_spill] sm:$0xff] %v8478_v28  ;;  %1381 = vrot.lane.b32.xlu1 %v8190_v51, %s7951_s0  ;;  %6757 = vmatprep.subr.mxu1 %v11553_v21 }
 0x19b   :  { %6758 = vmatpush3.msra.mxu1 %v11553_v21 }
 0x19c   :  { %421 = vxpose.xlu0.b32.cont [5/16] (narrow) %v8172_v46, 8  ;;  %v8483_v17 = vpop.permute.xlu0 %1146  ;;  %6759 = vmatprep.subr.mxu1 %v11553_v21 }
 0x19d   :  { %11607 = vst [vmem:[#allocation34_spill] sm:$0xff] %v8483_v17  ;;  %6760 = vmatpush3.msra.mxu1 %v11553_v21 }
 0x19e   :  { %v8485_v2 = vpop.permute.xlu1 %561  ;;  %1377 = vrot.lane.b32.xlu1 %v8182_v49, %s7951_s0  ;;  %6761 = vmatprep.subr.mxu1 %v11553_v21 }
 0x19f   :  { %6762 = vmatpush3.msra.mxu1 %v11553_v21 }
 0x1a0   :  { %422 = vxpose.xlu0.b32.cont [6/16] (narrow) %v8163_v43, 8  ;;  %6843 = vmatprep.subr.mxu1 %v11553_v21 }
 0x1a1   :  { %v8490_v12 = vpop.permute.xlu0 %2326 }
 0x1a2   :  { %11608 = vst [vmem:[#allocation35_spill] sm:$0xff] %v8490_v12  ;;  %1373 = vrot.lane.b32.xlu1 %v8175_v47, %s7951_s0 }
 0x1a3   :  { %v8494_v30 = vpop.permute.xlu1 %2302 }
 0x1a4   :  { %11609 = vst [vmem:[#allocation36_spill] sm:$0xff] %v8494_v30  ;;  %423 = vxpose.xlu0.b32.cont [7/16] (narrow) %v8213_v58, 8 }
 0x1a6   :  { %v8497_v10 = vpop.permute.xlu0 %1158 }
 0x1a7   :  { %11610 = vst [vmem:[#allocation37_spill] sm:$0xff] %v8497_v10 }
 0x1a8   :  { %v8499_v27 = vpop.permute.xlu1 %576  ;;  %424 = vxpose.xlu0.b32.cont [8/16] (narrow) %v8192_v52, 8 }
 0x1ab   :  { %v8502_v11 = vpop.permute.xlu0 %2338 }
 0x1ac   :  { %11611 = vst [vmem:[#allocation38_spill] sm:$0xff] %v8502_v11  ;;  %425 = vxpose.xlu0.b32.cont [9/16] (narrow) %v8255_v61, 8 }
 0x1ad   :  { %v8505_v9 = vpop.permute.xlu1 %1732 }
 0x1ae   :  { %11612 = vst [vmem:[#allocation39_spill] sm:$0xff] %v8505_v9 }
 0x1b0   :  { %426 = vxpose.xlu0.b32.cont [10/16] (narrow) %v8235_v60, 8  ;;  %v8508_v12 = vpop.permute.xlu0 %1154 }
 0x1b1   :  { %11613 = vst [vmem:[#allocation40_spill] sm:$0xff] %v8508_v12 }
 0x1b2   :  { %v8510_v28 = vpop.permute.xlu1 %571 }
 0x1b4   :  { %427 = vxpose.xlu0.b32.cont [11/16] (narrow) %v8286_v63, 8 }
 0x1b5   :  { %v8513_v30 = vpop.permute.xlu0 %2334 }
 0x1b6   :  { %11614 = vst [vmem:[#allocation41_spill] sm:$0xff] %v8513_v30 }
 0x1b7   :  { %v8515_v29 = vpop.permute.xlu1 %1728 }
 0x1b8   :  { %11615 = vst [vmem:[#allocation42_spill] sm:$0xff] %v8515_v29  ;;  %428 = vxpose.xlu0.b32.cont [12/16] (narrow) %v8275_v62, 8 }
 0x1ba   :  { %v8518_v14 = vpop.permute.xlu0 %616 }
 0x1bc   :  { %v8520_v11 = vpop.permute.xlu1 %586  ;;  %429 = vxpose.xlu0.b32.cont [13/16] (narrow) %v8306_v1, 8 }
 0x1bf   :  { %v8523_v9 = vpop.permute.xlu0 %1166 }
 0x1c0   :  { %11616 = vst [vmem:[#allocation43_spill] sm:$0xff] %v8523_v9  ;;  %430 = vxpose.xlu0.b32.cont [14/16] (narrow) %v8296_v0, 8 }
 0x1c1   :  { %v8526_v26 = vpop.permute.xlu1 %1740 }
 0x1c2   :  { %11617 = vst [vmem:[#allocation44_spill] sm:$0xff] %v8526_v26 }
 0x1c4   :  { %431 = vxpose.xlu0.b32.cont [15/16] (narrow) %v8338_v7, 8  ;;  %v8529_v8 = vpop.permute.xlu0 %2346 }
 0x1c5   :  { %11618 = vst [vmem:[#allocation45_spill] sm:$0xff] %v8529_v8 }
 0x1c6   :  { %v8531_v30 = vpop.permute.xlu1 %581 }
 0x1c8   :  { %432 = vxpose.xlu0.b32.end [16/16] (narrow) %v8316_v4, 8  ;;  %v8534_v29 = vpop.permute.xlu0 %1395 }
 0x1c9   :  { %6787 = vmatprep.subr.mxu0 %v8534_v29 }
 0x1cb   :  { %v8537_v16 = vpop.permute.xlu1 %1736 }
 0x1cc   :  { %11619 = vst [vmem:[#allocation46_spill] sm:$0xff] %v8537_v16 }
 0x1d0   :  { %v8539_v47 = vpop.permute.xlu1 %596 }
 0x1d5   :  { %v8541_v9 = vpop.permute.xlu1 %1748 }
 0x1d6   :  { %11620 = vst [vmem:[#allocation47_spill] sm:$0xff] %v8541_v9 }
 0x1da   :  { %v8543_v24 = vpop.permute.xlu1 %591 }
 0x1df   :  { %v8545_v26 = vpop.permute.xlu1 %1744 }
 0x1e0   :  { %11621 = vst [vmem:[#allocation48_spill] sm:$0xff] %v8545_v26 }
 0x1e4   :  { %v8547_v10 = vpop.permute.xlu1 %606 }
 0x1e9   :  { %v8549_v8 = vpop.permute.xlu1 %1756 }
 0x1ea   :  { %11622 = vst [vmem:[#allocation49_spill] sm:$0xff] %v8549_v8 }
 0x1ee   :  { %v8551_v12 = vpop.permute.xlu1 %601 }
 0x1f1   :  { %7539 = vset.pattern.permute.xlu0 %v11593_v32 }
 0x1f3   :  { %v8554_v17 = vpop.permute.xlu1 %1752 }
 0x1f4   :  { %11623 = vst [vmem:[#allocation50_spill] sm:$0xff] %v8554_v17 }
 0x1f7   :  { %v8556_v49 = vpop.permute.xlu1 %1764 }
 0x1f8   :  { %11624 = vst [vmem:[#allocation51_spill] sm:$0xff] %v8556_v49 }
 0x1fc   :  { %v8558_v16 = vpop.permute.xlu1 %611 }
 0x201   :  { %v8565_v8 = vpop.permute.xlu1 %1760 }
 0x202   :  { %11625 = vst [vmem:[#allocation52_spill] sm:$0xff] %v8565_v8 }
 0x205   :  { %v8571_v32 = vpop.permute.xlu1 %488 }
 0x206   :  { %v502_v49 = vadd.f32 %v8275_v62, %v8571_v32  ;;  %v491_v17 = vadd.f32 %v8571_v32, %v8144_v35  ;;  %v504_v8 = vadd.f32 %v8296_v0, %v8571_v32  ;;  %v492_v9 = vadd.f32 %v8140_v34, %v8571_v32 }
 0x207   :  { %v506_v62 = vadd.f32 %v8316_v4, %v8571_v32  ;;  %v493_v35 = vadd.f32 %v8571_v32, %v8154_v40  ;;  %v494_v4 = vadd.f32 %v8146_v36, %v8571_v32  ;;  %v500_v56 = vadd.f32 %v8235_v60, %v8571_v32 }
 0x208   :  { %v518_v26 = vmul.f32 0.2, %v502_v49  ;;  %v507_v51 = vmul.f32 0.2, %v491_v17  ;;  %v520_v34 = vmul.f32 0.2, %v504_v8 }
 0x209   :  { %v508_v54 = vmul.f32 0.2, %v492_v9 }
 0x20a   :  { %v8590_v0 = vmax.f32 %v502_v49, %v518_v26  ;;  %v8592_v33 = vmax.f32 %v491_v17, %v507_v51  ;;  %v8601_v40 = vmax.f32 %v504_v8, %v520_v34  ;;  %v522_v51 = vmul.f32 0.2, %v506_v62 }
 0x20b   :  { %v8603_v49 = vmax.f32 %v492_v9, %v508_v54  ;;  %v509_v26 = vmul.f32 0.2, %v493_v35  ;;  %v510_v8 = vmul.f32 0.2, %v494_v4  ;;  %v495_v54 = vadd.f32 %v8571_v32, %v8172_v46 }
 0x20c   :  { %744 = vperm.xlu0 %7539, %v8590_v0   ;;  %689 = vperm.xlu1 %7538, %v8592_v33   ;;  %v8610_v17 = vmax.f32 %v506_v62, %v522_v51  ;;  %v503_v9 = vadd.f32 %v8571_v32, %v8306_v1  ;;  %v496_v34 = vadd.f32 %v8163_v43, %v8571_v32  ;;  %v11627_v1 = vmov 5  }
 0x20d   :  { %v8612_v36 = vmax.f32 %v493_v35, %v509_v26  ;;  %v8623_v62 = vmax.f32 %v494_v4, %v510_v8  ;;  %v511_v35 = vmul.f32 0.2, %v495_v54  ;;  %v497_v26 = vadd.f32 %v8571_v32, %v8213_v58 }
 0x20e   :  { %11626 = vst [vmem:[#allocation53_spill] sm:$0xff] %v8610_v17  ;;  %v519_v46 = vmul.f32 0.2, %v503_v9  ;;  %v512_v4 = vmul.f32 0.2, %v496_v34  ;;  %v505_v8 = vadd.f32 %v8571_v32, %v8338_v7 }
 0x20f   :  { %v8633_v51 = vmax.f32 %v495_v54, %v511_v35  ;;  %v513_v58 = vmul.f32 0.2, %v497_v26 }
 0x210   :  { %754 = vperm.xlu0 %7539, %v8601_v40   ;;  %694 = vperm.xlu1 %7538, %v8603_v49   ;;  %v8638_v43 = vmax.f32 %v503_v9, %v519_v46  ;;  %v8647_v54 = vmax.f32 %v496_v34, %v512_v4  ;;  %v498_v9 = vadd.f32 %v8192_v52, %v8571_v32  ;;  %v521_v35 = vmul.f32 0.2, %v505_v8 }
 0x211   :  { %v8656_v7 = vmax.f32 %v497_v26, %v513_v58  ;;  %v499_v34 = vadd.f32 %v8571_v32, %v8255_v61  ;;  %v516_v58 = vmul.f32 0.2, %v500_v56  ;;  %v501_v61 = vadd.f32 %v8571_v32, %v8286_v63 }
 0x212   :  { %v514_v46 = vmul.f32 0.2, %v498_v9  ;;  %v537_v4 = vmax.f32 %v505_v8, %v521_v35  ;;  %v11630_v35 = vmov 7  }
 0x213   :  { %v515_v25 = vmul.f32 0.2, %v499_v34  ;;  %v8674_v8 = vmax.f32 %v500_v56, %v516_v58  ;;  %v8688_v56 = vpop.permute.xlu0 %1162 }
 0x214   :  { %764 = vperm.xlu0 %7539, %v8610_v17   ;;  %699 = vperm.xlu1 %7538, %v8612_v36   ;;  %v8661_v52 = vmax.f32 %v498_v9, %v514_v46  ;;  %v517_v9 = vmul.f32 0.2, %v501_v61  ;;  %11628 = vst [vmem:[#allocation54_spill] sm:$0xff] %v8688_v56 }
 0x215   :  { %v8667_v26 = vmax.f32 %v499_v34, %v515_v25  ;;  %v8715_v34 = vpop.permute.xlu1 %1393 }
 0x216   :  { %v8678_v60 = vmax.f32 %v501_v61, %v517_v9  ;;  %v619_v61 = vlaneseq }
 0x217   :  { %v8694_v63 = vpop.permute.xlu0 %2342 }
 0x218   :  { %7540 = vset.pattern.permute.xlu0 %v11627_v1  ;;  %704 = vperm.xlu1 %7538, %v8623_v62   ;;  %11629 = vst [vmem:[#allocation55_spill] sm:$0xff] %v8694_v63 }
 0x219   :  { %1238 = vperm.xlu0 %7540, %v8592_v33   ;;  %v8723_v9 = vpop.permute.xlu1 %1389 }
 0x21b   :  { %v8698_v25 = vpop.permute.xlu0 %1391 }
 0x21c   :  { %709 = vperm.xlu1 %7538, %v8633_v51  }
 0x21d   :  { %1286 = vperm.xlu0 %7540, %v8638_v43   ;;  %v8735_v63 = vpop.permute.xlu1 %1385 }
 0x21f   :  { %v8704_v32 = vpop.permute.xlu0 %1387 }
 0x220   :  { %714 = vperm.xlu1 %7538, %v8647_v54  }
 0x221   :  { %1290 = vperm.xlu0 %7540, %v8601_v40  }
 0x224   :  { %719 = vperm.xlu1 %7538, %v8656_v7  }
 0x225   :  { %1294 = vperm.xlu0 %7540, %v537_v4  }
 0x228   :  { %724 = vperm.xlu1 %7538, %v8661_v52  }
 0x229   :  { %1298 = vperm.xlu0 %7540, %v8610_v17  }
 0x22c   :  { %729 = vperm.xlu1 %7538, %v8667_v26  }
 0x22d   :  { %7543 = vset.pattern.permute.xlu0 %v11590_v3 }
 0x22e   :  { %1840 = vperm.xlu0 %7543, %v8603_v49  }
 0x230   :  { %734 = vperm.xlu1 %7538, %v8674_v8  }
 0x232   :  { %1844 = vperm.xlu0 %7543, %v8612_v36  }
 0x234   :  { %739 = vperm.xlu1 %7538, %v8678_v60  }
 0x236   :  { %1848 = vperm.xlu0 %7543, %v8623_v62  }
 0x238   :  { %749 = vperm.xlu1 %7538, %v8638_v43  }
 0x23a   :  { %1852 = vperm.xlu0 %7543, %v8633_v51  }
 0x23c   :  { %759 = vperm.xlu1 %7538, %v537_v4  }
 0x23e   :  { %1856 = vperm.xlu0 %7543, %v8647_v54  }
 0x240   :  { %7541 = vset.pattern.permute.xlu1 %v11627_v1  ;;  %v8707_v1 = vpop.permute.xlu0 %1383 }
 0x241   :  { %1242 = vperm.xlu1 %7541, %v8603_v49  }
 0x242   :  { %1860 = vperm.xlu0 %7543, %v8656_v7  }
 0x244   :  { %v8713_v46 = vpop.permute.xlu0 %1379 }
 0x245   :  { %1246 = vperm.xlu1 %7541, %v8612_v36  }
 0x246   :  { %1864 = vperm.xlu0 %7543, %v8661_v52  }
 0x248   :  { %v8720_v58 = vpop.permute.xlu0 %1375 }
 0x249   :  { %1250 = vperm.xlu1 %7541, %v8623_v62  }
 0x24a   :  { %1868 = vperm.xlu0 %7543, %v8667_v26  }
 0x24c   :  { %v8731_v21 = vpop.permute.xlu0 %1371 }
 0x24d   :  { %1254 = vperm.xlu1 %7541, %v8633_v51   ;;  %11632 = vst [vmem:[#allocation57_spill] sm:$0xff] %v8731_v21 }
 0x24e   :  { %1872 = vperm.xlu0 %7543, %v8674_v8  }
 0x250   :  { %v8739_v37 = vpop.trf.xlu0 }
 0x251   :  { %1258 = vperm.xlu1 %7541, %v8647_v54  }
 0x252   :  { %1876 = vperm.xlu0 %7543, %v8678_v60  }
 0x255   :  { %1262 = vperm.xlu1 %7541, %v8656_v7  }
 0x256   :  { %1880 = vperm.xlu0 %7543, %v8590_v0  }
 0x259   :  { %1266 = vperm.xlu1 %7541, %v8661_v52  }
 0x25a   :  { %1892 = vperm.xlu0 %7543, %v537_v4  }
 0x25d   :  { %1270 = vperm.xlu1 %7541, %v8667_v26  }
 0x25e   :  { %7545 = vset.pattern.permute.xlu0 %v11630_v35 }
 0x25f   :  { %2466 = vperm.xlu0 %7545, %v8638_v43  }
 0x261   :  { %1274 = vperm.xlu1 %7541, %v8674_v8  }
 0x263   :  { %2474 = vperm.xlu0 %7545, %v537_v4   ;;  %v8728_v4 = vshrl.u32 %v619_v61, 7  ;;  %v8749_v61 = vpop.permute.xlu1 %1381 }
 0x265   :  { %1278 = vperm.xlu1 %7541, %v8678_v60   ;;  %11631 = vst [vmem:[#allocation56_spill] sm:$0xff] %v8728_v4  ;;  %v11557_v56 = vsub.s32 0, %v8728_v4 }
 0x267   :  { %1367 = vrot.lane.b32.xlu0 %v8152_v39, %s7951_s0  ;;  %v8758_v59 = vpop.permute.xlu1 %1377 }
 0x269   :  { %1282 = vperm.xlu1 %7541, %v8590_v0  }
 0x26b   :  { %1977 = vrot.lane.b32.xlu0 %v8210_v57, %s7954_s23  ;;  %v8768_v44 = vpop.permute.xlu1 %1373 }
 0x26c   :  { %11633 = vst [vmem:[#allocation58_spill] sm:$0xff] %v8768_v44 }
 0x26d   :  { %7542 = vset.pattern.permute.xlu1 %v11590_v3  ;;  %v8746_v3 = vrot.slane %v8739_v37, %v11557_v56 }
 0x26e   :  { %1836 = vperm.xlu1 %7542, %v8592_v33  }
 0x26f   :  { %1973 = vrot.lane.b32.xlu0 %v8202_v55, %s7954_s23  ;;  %v624_v13 = vadd.f32 %v8746_v3, %v8334_v6  ;;  %v8776_v6 = vld [vmem:[%s11529_s1] sm:$0xff] }
 0x271   :  { %v640_v19 = vmul.f32 0.2, %v624_v13 }
 0x272   :  { %1884 = vperm.xlu1 %7542, %v8638_v43   ;;  %v623_v43 = vadd.f32 %v8746_v3, %v8364_v15  ;;  %v625_v15 = vadd.f32 %v8746_v3, %v8438_v18 }
 0x273   :  { %1969 = vrot.lane.b32.xlu0 %v8195_v53, %s7954_s23 }
 0x274   :  { %v639_v56 = vmul.f32 0.2, %v623_v43 }
 0x276   :  { %1888 = vperm.xlu1 %7542, %v8601_v40   ;;  %v655_v41 = vmax.f32 %v623_v43, %v639_v56  ;;  %v641_v43 = vmul.f32 0.2, %v625_v15 }
 0x277   :  { %1965 = vrot.lane.b32.xlu0 %v8186_v50, %s7954_s23 }
 0x278   :  { %v671_v56 = vadd.f32 %v655_v41, %v8776_v6  ;;  %v627_v41 = vadd.f32 %v8746_v3, %v8485_v2  ;;  %v8804_v2 = vld [vmem:[%s11529_s1 + $0x18] sm:$0xff] }
 0x27a   :  { %1896 = vperm.xlu1 %7542, %v8610_v17   ;;  %v657_v17 = vmax.f32 %v625_v15, %v641_v43 }
 0x27b   :  { %1961 = vrot.lane.b32.xlu0 %v8179_v48, %s7954_s23 }
 0x27e   :  { %7544 = vset.pattern.permute.xlu1 %v11630_v35  ;;  %v656_v35 = vmax.f32 %v624_v13, %v640_v19  ;;  %v8798_v13 = vld [vmem:[%s11529_s1 + $0x10] sm:$0xff] }
 0x27f   :  { %1957 = vrot.lane.b32.xlu0 %v8170_v45, %s7954_s23  ;;  %2418 = vperm.xlu1 %7544, %v8592_v33   ;;  %v626_v33 = vadd.f32 %v8746_v3, %v8418_v38  ;;  %v673_v15 = vadd.f32 %v657_v17, %v8798_v13 }
 0x281   :  { %v642_v31 = vmul.f32 0.2, %v626_v33 }
 0x283   :  { %1953 = vrot.lane.b32.xlu0 %v8161_v42, %s7954_s23  ;;  %2422 = vperm.xlu1 %7544, %v8603_v49   ;;  %v8787_v49 = vld [vmem:[%s11529_s1 + $0x8] sm:$0xff] }
 0x284   :  { %v672_v38 = vadd.f32 %v656_v35, %v8787_v49 }
 0x287   :  { %1949 = vrot.lane.b32.xlu0 %v8152_v39, %s7954_s23  ;;  %2426 = vperm.xlu1 %7544, %v8612_v36   ;;  %v690_v18 = vpop.permute.xlu1 %689 }
 0x288   :  { %v767_v21 = vsub.f32 %v671_v56, %v690_v18 }
 0x28a   :  { %v783_v44 = vmul.f32 1.442695, %v767_v21  ;;  %v658_v21 = vmax.f32 %v626_v33, %v642_v31  ;;  %v8811_v31 = vpop.permute.xlu0 %744 }
 0x28b   :  { %2559 = vrot.lane.b32.xlu0 %v8210_v57, %s7955_s2  ;;  %2430 = vperm.xlu1 %7544, %v8623_v62   ;;  %v695_v19 = vpop.permute.xlu1 %694  ;;  %v643_v57 = vmul.f32 0.2, %v627_v41  ;;  %v628_v62 = vadd.f32 %v8746_v3, %v8463_v20  ;;  %v8822_v20 = vld [vmem:[%s11529_s1 + $0x20] sm:$0xff] }
 0x28c   :  { %v768_v36 = vsub.f32 %v672_v38, %v695_v19  ;;  %7627 = vpow2.f32 %v783_v44  ;;  %v674_v17 = vadd.f32 %v658_v21, %v8804_v2  ;;  %v629_v38 = vadd.f32 %v8746_v3, %v8510_v28 }
 0x28d   :  { %v659_v43 = vmax.f32 %v627_v41, %v643_v57  ;;  %v644_v18 = vmul.f32 0.2, %v628_v62  ;;  %v630_v41 = vadd.f32 %v8746_v3, %v8499_v27 }
 0x28e   :  { %v785_v56 = vmul.f32 1.442695, %v768_v36  ;;  %v645_v21 = vmul.f32 0.2, %v629_v38 }
 0x28f   :  { %2555 = vrot.lane.b32.xlu0 %v8202_v55, %s7955_s2  ;;  %2434 = vperm.xlu1 %7544, %v8633_v51   ;;  %v700_v35 = vpop.permute.xlu1 %699  ;;  %v675_v36 = vadd.f32 %v659_v43, %v8822_v20  ;;  %v660_v28 = vmax.f32 %v628_v62, %v644_v18 }
 0x290   :  { %v769_v44 = vsub.f32 %v673_v15, %v700_v35  ;;  %7629 = vpow2.f32 %v785_v56  ;;  %v8827_v56 = vpop.permute.xlu0 %754  ;;  %v646_v15 = vmul.f32 0.2, %v630_v41 }
 0x292   :  { %v787_v33 = vmul.f32 1.442695, %v769_v44  ;;  %v661_v44 = vmax.f32 %v629_v38, %v645_v21  ;;  %v662_v18 = vmax.f32 %v630_v41, %v646_v15  ;;  %v8863_v41 = vadd.f32 %v8746_v3, %v8539_v47  ;;  %v8880_v15 = vld [vmem:[%s11529_s1 + $0x40] sm:$0xff] }
 0x293   :  { %2551 = vrot.lane.b32.xlu0 %v8195_v53, %s7955_s2  ;;  %2438 = vperm.xlu1 %7544, %v8647_v54   ;;  %v705_v55 = vpop.permute.xlu1 %704  ;;  %v8835_v54 = vld [vmem:[%s11529_s1 + $0x28] sm:$0xff] }
 0x294   :  { %v770_v51 = vsub.f32 %v674_v17, %v705_v55  ;;  %7631 = vpow2.f32 %v787_v33  ;;  %v676_v62 = vadd.f32 %v660_v28, %v8835_v54  ;;  %v631_v17 = vadd.f32 %v8746_v3, %v8531_v30  ;;  %v8848_v43 = vpop.permute.xlu0 %764 }
 0x296   :  { %v789_v19 = vmul.f32 1.442695, %v770_v51  ;;  %v8854_v51 = vld [vmem:[%s11529_s1 + $0x38] sm:$0xff] }
 0x297   :  { %2547 = vrot.lane.b32.xlu0 %v8186_v50, %s7955_s2  ;;  %2442 = vperm.xlu1 %7544, %v8656_v7   ;;  %v710_v53 = vpop.permute.xlu1 %709  ;;  %v8843_v7 = vld [vmem:[%s11529_s1 + $0x30] sm:$0xff] }
 0x298   :  { %7633 = vpow2.f32 %v789_v19  ;;  %v771_v27 = vsub.f32 %v675_v36, %v710_v53  ;;  %v677_v55 = vadd.f32 %v661_v44, %v8843_v7  ;;  %v647_v19 = vmul.f32 0.2, %v631_v17  ;;  %v8874_v47 = vpop.permute.xlu0 %1238 }
 0x299   :  { %v7628_v57 = vpop.eup %7627  ;;  %v632_v36 = vadd.f32 %v8746_v3, %v8520_v11  ;;  %v678_v11 = vadd.f32 %v662_v18, %v8854_v51  ;;  %v8894_v44 = vadd.f32 %v8746_v3, %v8551_v12 }
 0x29a   :  { %v791_v35 = vmul.f32 1.442695, %v771_v27  ;;  %6707 = vmatprep.mubr.f32.mxu0 %v7628_v57  ;;  %6763 = vmatprep.mubr.f32.mxu1 %v7628_v57  ;;  %v663_v53 = vmax.f32 %v631_v17, %v647_v19  ;;  %v11634_v27 = vmov 1.0   ;;  %v11565_v57 = vsub.s32 1, %v8728_v4  ;;  %v8923_v19 = vld [vmem:[%s11529_s1 + $0x58] sm:$0xff] }
 0x29b   :  { %v715_v50 = vpop.permute.xlu1 %714  ;;  %2543 = vrot.lane.b32.xlu0 %v8179_v48, %s7955_s2  ;;  %2446 = vperm.xlu1 %7544, %v8661_v52  }
 0x29c   :  { %7635 = vpow2.f32 %v791_v35  ;;  %v772_v33 = vsub.f32 %v676_v62, %v715_v50  ;;  %v650_v35 = vmul.f32 0.2, %v8863_v41  ;;  %v8887_v62 = vadd.f32 %v8746_v3, %v8547_v10 }
 0x29d   :  { %v7630_v38 = vpop.eup %7629  ;;  %v679_v17 = vadd.f32 %v663_v53, %v8880_v15  ;;  %v8910_v18 = vrot.slane %v8739_v37, %v11565_v57 }
 0x29e   :  { %v793_v30 = vmul.f32 1.442695, %v772_v33  ;;  %6708 = vmatmul.mubr.f32.vlgmr.msra.gmra.mxu0 %v7630_v38  ;;  %6764 = vmatmul.mubr.f32.vlgmr.msra.gmra.mxu1 %v7630_v38  ;;  %v652_v38 = vmul.f32 0.2, %v8887_v62 }
 0x29f   :  { %v720_v48 = vpop.permute.xlu1 %719  ;;  %6788 = vmatpush3.msra.mxu0 %v8534_v29  ;;  %2539 = vrot.lane.b32.xlu0 %v8170_v45, %s7955_s2  ;;  %v648_v29 = vmul.f32 0.2, %v632_v36  ;;  %v8871_v45 = vadd.f32 %v8746_v3, %v8543_v24 }
 0x2a0   :  { %7637 = vpow2.f32 %v793_v30  ;;  %v773_v52 = vsub.f32 %v677_v55, %v720_v48  ;;  %2450 = vperm.xlu1 %7544, %v8667_v26   ;;  %6789 = vmatprep.subr.mxu0 %v8715_v34  ;;  %v8914_v30 = vpop.permute.xlu0 %1286  ;;  %v651_v55 = vmul.f32 0.2, %v8894_v44 }
 0x2a1   :  { %v7632_v28 = vpop.eup %7631  ;;  %6790 = vmatpush3.msra.mxu0 %v8715_v34  ;;  %6844 = vmatpush3.msra.mxu1 %v11634_v27  ;;  %v664_v50 = vmax.f32 %v632_v36, %v648_v29  ;;  %v649_v33 = vmul.f32 0.2, %v8871_v45 }
 0x2a2   :  { %v795_v21 = vmul.f32 1.442695, %v773_v52  ;;  %6791 = vmatprep.subr.mxu0 %v8698_v25  ;;  %6710 = vmatprep.mubr.f32.mxu0 %v7632_v28  ;;  %v667_v53 = vmax.f32 %v8894_v44, %v651_v55 }
 0x2a3   :  { %v725_v26 = vpop.permute.xlu1 %724  ;;  %6766 = vmatprep.mubr.f32.mxu1 %v7632_v28  ;;  %6792 = vmatpush3.msra.mxu0 %v8698_v25  ;;  %v665_v52 = vmax.f32 %v8871_v45, %v649_v33 }
 0x2a4   :  { %7639 = vpow2.f32 %v795_v21  ;;  %v774_v34 = vsub.f32 %v678_v11, %v725_v26  ;;  %2535 = vrot.lane.b32.xlu0 %v8161_v42, %s7955_s2  ;;  %2454 = vperm.xlu1 %7544, %v8674_v8   ;;  %v8903_v42 = vld [vmem:[%s11529_s1 + $0x48] sm:$0xff]  ;;  %v8969_v26 = vpop.permute.xlu0 %1290 }
 0x2a5   :  { %v7634_v24 = vpop.eup %7633  ;;  %6793 = vmatprep.subr.mxu0 %v8723_v9  ;;  %6845 = vmatprep.subr.mxu1 %v11634_v27  ;;  %v680_v48 = vadd.f32 %v664_v50, %v8903_v42 }
 0x2a6   :  { %v797_v25 = vmul.f32 1.442695, %v774_v34  ;;  %6711 = vmatmul.mubr.f32.gmra.mxu0 %v7634_v24  ;;  %6767 = vmatmul.mubr.f32.gmra.mxu1 %v7634_v24 }
 0x2a7   :  { %6794 = vmatpush3.msra.mxu0 %v8723_v9  ;;  %v730_v10 = vpop.permute.xlu1 %729  ;;  %v666_v9 = vmax.f32 %v8863_v41, %v650_v35  ;;  %6846 = vmatpush3.msra.mxu1 %v11634_v27 }
 0x2a8   :  { %7641 = vpow2.f32 %v797_v25  ;;  %6795 = vmatprep.subr.mxu0 %v8704_v32  ;;  %v775_v12 = vsub.f32 %v679_v17, %v730_v10  ;;  %2531 = vrot.lane.b32.xlu0 %v8152_v39, %s7955_s2  ;;  %v8935_v39 = vadd.f32 %v8746_v3, %v8518_v14  ;;  %v668_v14 = vmax.f32 %v8887_v62, %v652_v38  ;;  %v9003_v55 = vpop.permute.xlu0 %1294 }
 0x2a9   :  { %v7636_v8 = vpop.eup %7635  ;;  %6796 = vmatpush3.msra.mxu0 %v8704_v32  ;;  %2458 = vperm.xlu1 %7544, %v8678_v60   ;;  %v8931_v32 = vadd.f32 %v8746_v3, %v8558_v16  ;;  %v8941_v60 = vld [vmem:[%s11529_s1 + $0x50] sm:$0xff]  ;;  %v682_v28 = vadd.f32 %v666_v9, %v8923_v19  ;;  %v1175_v10 = vadd.f32 %v8910_v18, %v8443_v22  ;;  %v11635_v22 = vld [vmem:[#allocation53_spill] sm:$0xff] }
 0x2aa   :  { %v799_v36 = vmul.f32 1.442695, %v775_v12  ;;  %6797 = vmatprep.subr.mxu0 %v8735_v63  ;;  %6713 = vmatprep.mubr.f32.mxu0 %v7636_v8  ;;  %v681_v21 = vadd.f32 %v665_v52, %v8941_v60  ;;  %v8998_v12 = vld [vmem:[%s11529_s1 + $0x78] sm:$0xff] }
 0x2ab   :  { %6798 = vmatpush3.msra.mxu0 %v8735_v63  ;;  %v735_v41 = vpop.permute.xlu1 %734  ;;  %6769 = vmatprep.mubr.f32.mxu1 %v7636_v8  ;;  %v8948_v63 = vadd.f32 %v8910_v18, %v8380_v23  ;;  %v653_v29 = vmul.f32 0.2, %v8931_v32  ;;  %v778_v45 = vsub.f32 %v682_v28, %v8811_v31  ;;  %v8961_v23 = vld [vmem:[%s11529_s1 + $0x68] sm:$0xff]  ;;  %v8974_v31 = vadd.f32 %v8910_v18, %v8332_v5 }
 0x2ac   :  { %7643 = vpow2.f32 %v799_v36  ;;  %6799 = vmatprep.subr.mxu0 %v8707_v1  ;;  %v776_v11 = vsub.f32 %v680_v48, %v735_v41  ;;  %6847 = vmatprep.subr.mxu1 %v11634_v27  ;;  %v11636_v48 = vld [vmem:[#allocation58_spill] sm:$0xff] }
 0x2ad   :  { %v7638_v16 = vpop.eup %7637  ;;  %6800 = vmatpush3.msra.mxu0 %v8707_v1  ;;  %2462 = vperm.xlu1 %7544, %v8590_v0   ;;  %v654_v1 = vmul.f32 0.2, %v8935_v39  ;;  %v8967_v0 = vld [vmem:[%s11529_s1 + $0x60] sm:$0xff]  ;;  %v1189_v62 = vmul.f32 0.2, %v8948_v63  ;;  %v669_v25 = vmax.f32 %v8931_v32, %v653_v29  ;;  %v11637_v32 = vld [vmem:[#allocation20_spill] sm:$0xff] }
 0x2ae   :  { %v801_v3 = vmul.f32 1.442695, %v776_v11  ;;  %6801 = vmatprep.subr.mxu0 %v8749_v61  ;;  %6770 = vmatmul.mubr.f32.gmra.mxu1 %v7638_v16  ;;  %v683_v5 = vadd.f32 %v667_v53, %v8967_v0  ;;  %v805_v17 = vmul.f32 1.442695, %v778_v45  ;;  %v1191_v11 = vmul.f32 0.2, %v1175_v10 }
 0x2af   :  { %6802 = vmatpush3.msra.mxu0 %v8749_v61  ;;  %v740_v34 = vpop.permute.xlu1 %739  ;;  %v684_v61 = vadd.f32 %v668_v14, %v8961_v23  ;;  %v670_v50 = vmax.f32 %v8935_v39, %v654_v1  ;;  %v1205_v38 = vmax.f32 %v8948_v63, %v1189_v62  ;;  %6848 = vmatpush3.msra.mxu1 %v11634_v27  ;;  %v11639_v53 = vld [vmem:[#allocation3_spill] sm:$0xff] }
 0x2b0   :  { %7645 = vpow2.f32 %v801_v3  ;;  %6803 = vmatprep.subr.mxu0 %v8713_v46  ;;  %6714 = vmatmul.mubr.f32.gmra.mxu0 %v7638_v16  ;;  %v777_v24 = vsub.f32 %v681_v21, %v740_v34  ;;  %v1176_v39 = vadd.f32 %v8910_v18, %v11637_v32  ;;  %v11638_v16 = vld [vmem:[#allocation57_spill] sm:$0xff]  ;;  %v11640_v1 = vld [vmem:[#allocation15_spill] sm:$0xff] }
 0x2b1   :  { %v7640_v35 = vpop.eup %7639  ;;  %6804 = vmatpush3.msra.mxu0 %v8713_v46  ;;  %2470 = vperm.xlu1 %7544, %v8601_v40   ;;  %v8989_v46 = vld [vmem:[%s11529_s1 + $0x70] sm:$0xff]  ;;  %v1190_v40 = vmul.f32 0.2, %v8974_v31  ;;  %v1221_v21 = vadd.f32 %v1205_v38, %v8776_v6  ;;  %v1177_v34 = vadd.f32 %v8910_v18, %v11640_v1 }
 0x2b2   :  { %v803_v44 = vmul.f32 1.442695, %v777_v24  ;;  %6805 = vmatprep.subr.mxu0 %v8758_v59  ;;  %6716 = vmatprep.mubr.f32.mxu0 %v7640_v35  ;;  %v685_v52 = vadd.f32 %v669_v25, %v8989_v46  ;;  %v1192_v45 = vmul.f32 0.2, %v1176_v39  ;;  %v9026_v24 = vpop.permute.xlu0 %1298 }
 0x2b3   :  { %6806 = vmatpush3.msra.mxu0 %v8758_v59  ;;  %v750_v33 = vpop.permute.xlu1 %749  ;;  %6772 = vmatprep.mubr.f32.mxu1 %v7640_v35  ;;  %v780_v59 = vsub.f32 %v684_v61, %v8827_v56  ;;  %v686_v56 = vadd.f32 %v670_v50, %v8998_v12  ;;  %v1206_v41 = vmax.f32 %v8974_v31, %v1190_v40  ;;  %v11642_v40 = vld [vmem:[#allocation31_spill] sm:$0xff] }
 0x2b4   :  { %7647 = vpow2.f32 %v803_v44  ;;  %6807 = vmatprep.subr.mxu0 %v8720_v58  ;;  %v779_v8 = vsub.f32 %v683_v5, %v750_v33  ;;  %6849 = vmatprep.subr.mxu1 %v11634_v27  ;;  %v1301_v31 = vsub.f32 %v1221_v21, %v8874_v47  ;;  %v1207_v35 = vmax.f32 %v1175_v10, %v1191_v11  ;;  %v11641_v47 = vld [vmem:[#allocation2_spill] sm:$0xff] }
 0x2b5   :  { %v7642_v9 = vpop.eup %7641  ;;  %6808 = vmatpush3.msra.mxu0 %v8720_v58  ;;  %2478 = vperm.xlu1 %7544, %v11635_v22   ;;  %7649 = vpow2.f32 %v805_v17  ;;  %v809_v63 = vmul.f32 1.442695, %v780_v59  ;;  %v782_v3 = vsub.f32 %v686_v56, %v8848_v43  ;;  %v1222_v43 = vadd.f32 %v1206_v41, %v8787_v49  ;;  %v11644_v56 = vld [vmem:[#allocation21_spill] sm:$0xff] }
 0x2b6   :  { %v807_v36 = vmul.f32 1.442695, %v779_v8  ;;  %6809 = vmatprep.subr.mxu0 %v11636_v48  ;;  %6717 = vmatmul.mubr.f32.gmra.mxu0 %v7642_v9  ;;  %v1208_v25 = vmax.f32 %v1176_v39, %v1192_v45  ;;  %v1193_v17 = vmul.f32 0.2, %v1177_v34  ;;  %v1317_v50 = vmul.f32 1.442695, %v1301_v31  ;;  %v9040_v38 = vpop.permute.xlu0 %1840 }
 0x2b7   :  { %6810 = vmatpush3.msra.mxu0 %v11636_v48  ;;  %v760_v58 = vpop.permute.xlu1 %759  ;;  %6773 = vmatmul.mubr.f32.gmra.mxu1 %v7642_v9  ;;  %v813_v44 = vmul.f32 1.442695, %v782_v3  ;;  %v1223_v33 = vadd.f32 %v1207_v35, %v8798_v13  ;;  %v1178_v10 = vadd.f32 %v8910_v18, %v11642_v40 }
 0x2b8   :  { %7651 = vpow2.f32 %v807_v36  ;;  %6811 = vmatprep.subr.mxu0 %v11638_v16  ;;  %v781_v28 = vsub.f32 %v685_v52, %v760_v58  ;;  %6850 = vmatpush3.msra.mxu1 %v11634_v27  ;;  %v11643_v36 = vld [vmem:[#allocation9_spill] sm:$0xff]  ;;  %v1224_v48 = vadd.f32 %v1208_v25, %v8804_v2  ;;  %v1209_v52 = vmax.f32 %v1177_v34, %v1193_v17 }
 0x2b9   :  { %v7644_v14 = vpop.eup %7643  ;;  %6812 = vmatpush3.msra.mxu0 %v11638_v16  ;;  %1369 = vrot.lane.b32.xlu1 %v11639_v53, %s7951_s0  ;;  %v1194_v39 = vmul.f32 0.2, %v1178_v10  ;;  %v1179_v58 = vadd.f32 %v8910_v18, %v11644_v56 }
 0x2ba   :  { %v811_v29 = vmul.f32 1.442695, %v781_v28  ;;  %6851 = vmatprep.subr.mxu1 %v11634_v27  ;;  %6719 = vmatprep.mubr.f32.mxu0 %v7644_v14  ;;  %v9057_v21 = vpop.permute.xlu0 %1844  ;;  %v1225_v45 = vadd.f32 %v1209_v52, %v8822_v20 }
 0x2bb   :  { %6852 = vmatpush3.msra.mxu1 %v11634_v27  ;;  %6775 = vmatprep.mubr.f32.mxu1 %v7644_v14  ;;  %v11645_v14 = vld [vmem:[#allocation8_spill] sm:$0xff]  ;;  %v1210_v1 = vmax.f32 %v1178_v10, %v1194_v39  ;;  %v1195_v34 = vmul.f32 0.2, %v1179_v58 }
 0x2bc   :  { %7653 = vpow2.f32 %v811_v29  ;;  %v1243_v62 = vpop.permute.xlu1 %1242  ;;  %6853 = vmatprep.subr.mxu1 %v11634_v27  ;;  %v11650_v39 = vld [vmem:[#allocation24_spill] sm:$0xff] }
 0x2bd   :  { %v7646_v61 = vpop.eup %7645  ;;  %7655 = vpow2.f32 %v809_v63  ;;  %v1302_v5 = vsub.f32 %v1222_v43, %v1243_v62  ;;  %6854 = vmatpush3.msra.mxu1 %v11634_v27  ;;  %1365 = vrot.lane.b32.xlu1 %v11641_v47, %s7951_s0  ;;  %v11646_v63 = vld [vmem:[#allocation18_spill] sm:$0xff]  ;;  %v1226_v25 = vadd.f32 %v1210_v1, %v8835_v54  ;;  %v1211_v17 = vmax.f32 %v1179_v58, %v1195_v34 }
 0x2be   :  { %6855 = vmatprep.subr.mxu1 %v11634_v27  ;;  %6720 = vmatmul.mubr.f32.gmra.mxu0 %v7646_v61  ;;  %7657 = vpow2.f32 %v813_v44  ;;  %v1180_v3 = vadd.f32 %v8910_v18, %v11646_v63  ;;  %v9070_v10 = vpop.permute.xlu0 %1848  ;;  %v1182_v56 = vadd.f32 %v8910_v18, %v11650_v39 }
 0x2bf   :  { %6856 = vmatpush3.msra.mxu1 %v11634_v27  ;;  %v1319_v8 = vmul.f32 1.442695, %v1302_v5  ;;  %7659 = vpow2.f32 %v1317_v50  ;;  %v11648_v50 = vld [vmem:[#allocation27_spill] sm:$0xff]  ;;  %v1227_v52 = vadd.f32 %v1211_v17, %v8843_v7 }
 0x2c0   :  { %v1247_v9 = vpop.permute.xlu1 %1246  ;;  %6857 = vmatprep.subr.mxu1 %v11634_v27  ;;  %6776 = vmatmul.mubr.f32.gmra.mxu1 %v7646_v61  ;;  %v11647_v61 = vld [vmem:[#allocation7_spill] sm:$0xff]  ;;  %v1196_v44 = vmul.f32 0.2, %v1180_v3  ;;  %v1198_v34 = vmul.f32 0.2, %v1182_v56 }
 0x2c1   :  { %v7648_v59 = vpop.eup %7647  ;;  %v1303_v22 = vsub.f32 %v1223_v33, %v1247_v9  ;;  %6858 = vmatpush3.msra.mxu1 %v11634_v27  ;;  %1975 = vrot.lane.b32.xlu1 %v11643_v36, %s7954_s23  ;;  %7661 = vpow2.f32 %v1319_v8  ;;  %v1181_v33 = vadd.f32 %v8910_v18, %v11648_v50  ;;  %v11654_v50 = vld [vmem:[#allocation37_spill] sm:$0xff] }
 0x2c2   :  { %6859 = vmatprep.subr.mxu1 %v11634_v27  ;;  %6722 = vmatprep.mubr.f32.mxu0 %v7648_v59  ;;  %v7650_v41 = vpop.eup %7649 }
 0x2c3   :  { %v1321_v32 = vmul.f32 1.442695, %v1303_v22  ;;  %6860 = vmatpush3.msra.mxu1 %v11634_v27  ;;  %6778 = vmatprep.mubr.f32.mxu1 %v7648_v59  ;;  %v11649_v59 = vld [vmem:[#allocation6_spill] sm:$0xff]  ;;  %v1212_v22 = vmax.f32 %v1180_v3, %v1196_v44  ;;  %v9088_v3 = vpop.permute.xlu0 %1852 }
 0x2c4   :  { %v1251_v11 = vpop.permute.xlu1 %1250  ;;  %6861 = vmatprep.subr.mxu1 %v11634_v27  ;;  %6723 = vmatmul.mubr.f32.gmra.mxu0 %v7650_v41 }
 0x2c5   :  { %v7652_v16 = vpop.eup %7651  ;;  %7663 = vpow2.f32 %v1321_v32  ;;  %v1304_v28 = vsub.f32 %v1224_v48, %v1251_v11  ;;  %6862 = vmatpush3.msra.mxu1 %v11634_v27  ;;  %1971 = vrot.lane.b32.xlu1 %v11645_v14, %s7954_s23  ;;  %v1197_v32 = vmul.f32 0.2, %v1181_v33  ;;  %v1228_v63 = vadd.f32 %v1212_v22, %v8854_v51 }
 0x2c6   :  { %6779 = vmatmul.mubr.f32.gmra.mxu1 %v7650_v41  ;;  %6863 = vmatprep.subr.mxu1 %v11634_v27 }
 0x2c7   :  { %v1323_v29 = vmul.f32 1.442695, %v1304_v28  ;;  %6864 = vmatpush3.msra.mxu1 %v11634_v27  ;;  %6725 = vmatprep.mubr.f32.mxu0 %v7652_v16  ;;  %v1213_v1 = vmax.f32 %v1181_v33, %v1197_v32  ;;  %v1186_v33 = vadd.f32 %v8910_v18, %v11654_v50 }
 0x2c8   :  { %v1255_v31 = vpop.permute.xlu1 %1254  ;;  %6865 = vmatprep.subr.mxu1 %v11634_v27  ;;  %6781 = vmatprep.mubr.f32.mxu1 %v7652_v16 }
 0x2c9   :  { %v7654_v43 = vpop.eup %7653  ;;  %7665 = vpow2.f32 %v1323_v29  ;;  %v1305_v35 = vsub.f32 %v1225_v45, %v1255_v31  ;;  %6866 = vmatpush3.msra.mxu1 %v11634_v27  ;;  %1967 = vrot.lane.b32.xlu1 %v11647_v61, %s7954_s23  ;;  %v11651_v29 = vld [vmem:[#allocation5_spill] sm:$0xff]  ;;  %v11652_v31 = vld [vmem:[#allocation34_spill] sm:$0xff] }
 0x2ca   :  { %v7656_v62 = vpop.eup %7655  ;;  %6867 = vmatprep.subr.mxu1 %v11634_v27 }
 0x2cb   :  { %6726 = vmatmul.mubr.f32.gmra.mxu0 %v7656_v62  ;;  %6782 = vmatmul.mubr.f32.gmra.mxu1 %v7656_v62  ;;  %v1325_v5 = vmul.f32 1.442695, %v1305_v35  ;;  %v7658_v9 = vpop.eup %7657  ;;  %v1769_v35 = vsub.s32 2, %v8728_v4  ;;  %v11653_v62 = vld [vmem:[#allocation40_spill] sm:$0xff] }
 0x2cc   :  { %6728 = vmatprep.mubr.f32.mxu0 %v7654_v43  ;;  %v1259_v40 = vpop.permute.xlu1 %1258  ;;  %6868 = vmatpush3.msra.mxu1 %v11634_v27  ;;  %v7660_v58 = vpop.eup %7659  ;;  %v1185_v44 = vadd.f32 %v8910_v18, %v11653_v62 }
 0x2cd   :  { %7667 = vpow2.f32 %v1325_v5  ;;  %6784 = vmatprep.mubr.f32.mxu1 %v7654_v43  ;;  %v1306_v8 = vsub.f32 %v1226_v25, %v1259_v40  ;;  %6869 = vmatprep.subr.mxu1 %v11634_v27  ;;  %v1183_v43 = vadd.f32 %v8910_v18, %v11652_v31  ;;  %v11655_v40 = vld [vmem:[#allocation30_spill] sm:$0xff]  ;;  %v9116_v39 = vrot.slane %v8739_v37, %v1769_v35  ;;  %v11659_v31 = vld [vmem:[#allocation43_spill] sm:$0xff] }
 0x2ce   :  { %1963 = vrot.lane.b32.xlu1 %v11649_v59, %s7954_s23  ;;  %6870 = vmatpush3.msra.mxu1 %v11634_v27  ;;  %v9081_v11 = vpop.eup %7661  ;;  %v1188_v35 = vadd.f32 %v8910_v18, %v11659_v31 }
 0x2cf   :  { %6729 = vmatmul.mubr.f32.gmra.mxu0 %v7658_v9  ;;  %v1327_v48 = vmul.f32 1.442695, %v1306_v8  ;;  %6785 = vmatmul.mubr.f32.gmra.mxu1 %v7658_v9  ;;  %v9109_v8 = vadd.f32 %v8910_v18, %v11655_v40  ;;  %v11656_v9 = vld [vmem:[#allocation4_spill] sm:$0xff]  ;;  %v1199_v32 = vmul.f32 0.2, %v1183_v43 }
 0x2d0   :  { %6871 = vmatprep.subr.mxu1 %v11634_v27  ;;  %v1263_v41 = vpop.permute.xlu1 %1262  ;;  %6875 = vmatprep.mubr.f32.mxu1 %v7660_v58  ;;  %v1204_v57 = vmul.f32 0.2, %v1188_v35 }
 0x2d1   :  { %6872 = vmatpush3.msra.mxu1 %v11634_v27  ;;  %7669 = vpow2.f32 %v1327_v48  ;;  %v1307_v16 = vsub.f32 %v1227_v52, %v1263_v41  ;;  %6819 = vmatprep.mubr.f32.mxu0 %v7660_v58  ;;  %v1229_v48 = vadd.f32 %v1213_v1, %v8880_v15  ;;  %v1214_v52 = vmax.f32 %v1182_v56, %v1198_v34  ;;  %v11657_v41 = vld [vmem:[#allocation54_spill] sm:$0xff] }
 0x2d2   :  { %v9084_v28 = vpop.eup %7663  ;;  %6873 = vmatprep.subr.mxu1 %v11634_v27  ;;  %1959 = vrot.lane.b32.xlu1 %v11651_v29, %s7954_s23  ;;  %v1201_v58 = vmul.f32 0.2, %v1185_v44  ;;  %v1202_v34 = vmul.f32 0.2, %v1186_v33  ;;  %v1200_v50 = vmul.f32 0.2, %v9109_v8 }
 0x2d3   :  { %6874 = vmatpush3.msra.mxu1 %v11634_v27  ;;  %v1329_v45 = vmul.f32 1.442695, %v1307_v16  ;;  %v1187_v16 = vadd.f32 %v8910_v18, %v11657_v41  ;;  %v11660_v41 = vld [vmem:[#allocation17_spill] sm:$0xff] }
 0x2d4   :  { %6876 = vmatmul.mubr.f32.vlgmr.msra.gmra.mxu1 %v9081_v11  ;;  %v1267_v5 = vpop.permute.xlu1 %1266  ;;  %6955 = vmatprep.subr.mxu1 %v11634_v27  ;;  %v1217_v40 = vmax.f32 %v1185_v44, %v1201_v58  ;;  %v1771_v18 = vadd.f32 %v9116_v39, %v11660_v41  ;;  %v1218_v31 = vmax.f32 %v1186_v33, %v1202_v34 }
 0x2d5   :  { %7671 = vpow2.f32 %v1329_v45  ;;  %6878 = vmatprep.mubr.f32.mxu1 %v9084_v28  ;;  %v1308_v25 = vsub.f32 %v1228_v63, %v1267_v5  ;;  %6956 = vmatpush3.msra.mxu1 %v11634_v27  ;;  %v9122_v45 = vpop.permute.xlu0 %1856  ;;  %v1230_v5 = vadd.f32 %v1214_v52, %v8903_v42 }
 0x2d6   :  { %v9102_v17 = vpop.eup %7665  ;;  %6957 = vmatprep.subr.mxu1 %v11634_v27  ;;  %1955 = vrot.lane.b32.xlu1 %v11656_v9, %s7954_s23  ;;  %v1233_v33 = vadd.f32 %v1217_v40, %v8967_v0  ;;  %v11663_v40 = vld [vmem:[#allocation22_spill] sm:$0xff] }
 0x2d7   :  { %v1331_v22 = vmul.f32 1.442695, %v1308_v25  ;;  %6958 = vmatpush3.msra.mxu1 %v11634_v27  ;;  %v1215_v25 = vmax.f32 %v1183_v43, %v1199_v32  ;;  %v11661_v43 = vld [vmem:[#allocation10_spill] sm:$0xff] }
 0x2d8   :  { %6879 = vmatmul.mubr.f32.gmra.mxu1 %v9102_v17  ;;  %v1271_v63 = vpop.permute.xlu1 %1270  ;;  %6959 = vmatprep.subr.mxu1 %v11634_v27  ;;  %v9144_v44 = vadd.f32 %v9116_v39, %v11661_v43  ;;  %v1787_v43 = vmul.f32 0.2, %v1771_v18 }
 0x2d9   :  { %7673 = vpow2.f32 %v1331_v22  ;;  %v1309_v1 = vsub.f32 %v1229_v48, %v1271_v63  ;;  %6960 = vmatpush3.msra.mxu1 %v11634_v27  ;;  %v1203_v22 = vmul.f32 0.2, %v1187_v16  ;;  %v9146_v52 = vpop.permute.xlu0 %1860  ;;  %v1231_v58 = vadd.f32 %v1215_v25, %v8941_v60 }
 0x2da   :  { %v9125_v56 = vpop.eup %7667  ;;  %6961 = vmatprep.subr.mxu1 %v11634_v27  ;;  %1951 = vrot.lane.b32.xlu1 %v11639_v53, %s7954_s23  ;;  %v1313_v25 = vsub.f32 %v1233_v33, %v8914_v30 }
 0x2db   :  { %11658 = vst [vmem:[#allocation53_spill] sm:$0xff] %v9125_v56  ;;  %v1333_v62 = vmul.f32 1.442695, %v1309_v1  ;;  %6881 = vmatprep.mubr.f32.mxu1 %v9125_v56  ;;  %6962 = vmatpush3.msra.mxu1 %v11634_v27  ;;  %v1219_v34 = vmax.f32 %v1187_v16, %v1203_v22  ;;  %v1788_v16 = vmul.f32 0.2, %v9144_v44  ;;  %v9168_v22 = vadd.f32 %v9116_v39, %v11663_v40 }
 0x2dc   :  { %v1275_v48 = vpop.permute.xlu1 %1274  ;;  %6963 = vmatprep.subr.mxu1 %v11634_v27 }
 0x2dd   :  { %7675 = vpow2.f32 %v1333_v62  ;;  %v1310_v63 = vsub.f32 %v1230_v5, %v1275_v48  ;;  %6964 = vmatpush3.msra.mxu1 %v11634_v27  ;;  %v1216_v62 = vmax.f32 %v9109_v8, %v1200_v50  ;;  %v11662_v5 = vld [vmem:[#allocation26_spill] sm:$0xff]  ;;  %v1234_v8 = vadd.f32 %v1218_v31, %v8961_v23 }
 0x2de   :  { %v9139_v1 = vpop.eup %7669  ;;  %1947 = vrot.lane.b32.xlu1 %v11641_v47, %s7954_s23  ;;  %v9156_v48 = vadd.f32 %v9116_v39, %v11662_v5  ;;  %6965 = vmatprep.subr.mxu1 %v11634_v27  ;;  %v1220_v50 = vmax.f32 %v1188_v35, %v1204_v57  ;;  %v1235_v30 = vadd.f32 %v1219_v34, %v8989_v46  ;;  %v11664_v35 = vld [vmem:[#allocation16_spill] sm:$0xff]  ;;  %v1341_v34 = vmul.f32 1.442695, %v1313_v25 }
 0x2df   :  { %v1335_v32 = vmul.f32 1.442695, %v1310_v63  ;;  %6882 = vmatmul.mubr.f32.gmra.mxu1 %v9139_v1  ;;  %v9178_v31 = vadd.f32 %v9116_v39, %v11664_v35  ;;  %v1803_v5 = vmax.f32 %v1771_v18, %v1787_v43  ;;  %v1804_v18 = vmax.f32 %v9144_v44, %v1788_v16 }
 0x2e0   :  { %v1279_v41 = vpop.permute.xlu1 %1278  ;;  %6966 = vmatpush3.msra.mxu1 %v11634_v27  ;;  %v1789_v57 = vmul.f32 0.2, %v9156_v48  ;;  %v1315_v40 = vsub.f32 %v1235_v30, %v9003_v55  ;;  %v1236_v35 = vadd.f32 %v1220_v50, %v8998_v12  ;;  %v1790_v43 = vmul.f32 0.2, %v9168_v22  ;;  %v11666_v50 = vld [vmem:[#allocation42_spill] sm:$0xff] }
 0x2e1   :  { %7677 = vpow2.f32 %v1335_v32  ;;  %v1311_v56 = vsub.f32 %v1231_v58, %v1279_v41  ;;  %6967 = vmatprep.subr.mxu1 %v11634_v27  ;;  %v1232_v58 = vadd.f32 %v1216_v62, %v8923_v19  ;;  %v1314_v41 = vsub.f32 %v1234_v8, %v8969_v26  ;;  %v11665_v26 = vld [vmem:[#allocation33_spill] sm:$0xff] }
 0x2e2   :  { %v9160_v63 = vpop.eup %7671  ;;  %2557 = vrot.lane.b32.xlu1 %v11643_v36, %s7955_s2  ;;  %6968 = vmatpush3.msra.mxu1 %v11634_v27  ;;  %v9182_v36 = vpop.permute.xlu0 %1864  ;;  %v9194_v8 = vadd.f32 %v9116_v39, %v11665_v26  ;;  %v1805_v55 = vmax.f32 %v9156_v48, %v1789_v57  ;;  %v1791_v25 = vmul.f32 0.2, %v9178_v31  ;;  %v1819_v44 = vadd.f32 %v1803_v5, %v8776_v6 }
 0x2e3   :  { %v1337_v32 = vmul.f32 1.442695, %v1311_v56  ;;  %6884 = vmatprep.mubr.f32.mxu1 %v9160_v63  ;;  %6969 = vmatprep.subr.mxu1 %v11634_v27  ;;  %v1343_v16 = vmul.f32 1.442695, %v1314_v41  ;;  %v1316_v30 = vsub.f32 %v1236_v35, %v9026_v24  ;;  %v1345_v48 = vmul.f32 1.442695, %v1315_v40 }
 0x2e4   :  { %v1283_v33 = vpop.permute.xlu1 %1282  ;;  %6970 = vmatpush3.msra.mxu1 %v11634_v27  ;;  %v1806_v6 = vmax.f32 %v9168_v22, %v1790_v43  ;;  %v1792_v5 = vmul.f32 0.2, %v9194_v8  ;;  %v11667_v41 = vld [vmem:[#allocation39_spill] sm:$0xff]  ;;  %v1807_v40 = vmax.f32 %v9178_v31, %v1791_v25  ;;  %v11668_v22 = vld [vmem:[#allocation46_spill] sm:$0xff] }
 0x2e5   :  { %7679 = vpow2.f32 %v1337_v32  ;;  %v1312_v56 = vsub.f32 %v1232_v58, %v1283_v33  ;;  %v9203_v58 = vadd.f32 %v9116_v39, %v11666_v50  ;;  %6971 = vmatprep.subr.mxu1 %v11634_v27  ;;  %v9217_v24 = vadd.f32 %v9116_v39, %v11667_v41 }
 0x2e6   :  { %v9185_v62 = vpop.eup %7673  ;;  %2553 = vrot.lane.b32.xlu1 %v11645_v14, %s7955_s2  ;;  %6972 = vmatpush3.msra.mxu1 %v11634_v27  ;;  %v9219_v35 = vpop.permute.xlu0 %1868  ;;  %v1347_v43 = vmul.f32 1.442695, %v1316_v30  ;;  %v1808_v25 = vmax.f32 %v9194_v8, %v1792_v5 }
 0x2e7   :  { %v1339_v32 = vmul.f32 1.442695, %v1312_v56  ;;  %6885 = vmatmul.mubr.f32.gmra.mxu1 %v9185_v62  ;;  %6973 = vmatprep.subr.mxu1 %v11634_v27  ;;  %v1820_v56 = vadd.f32 %v1804_v18, %v8787_v49  ;;  %v1793_v49 = vmul.f32 0.2, %v9203_v58  ;;  %v9229_v18 = vadd.f32 %v9116_v39, %v11668_v22 }
 0x2e8   :  { %6974 = vmatpush3.msra.mxu1 %v11634_v27  ;;  %v1794_v50 = vmul.f32 0.2, %v9217_v24  ;;  %v1824_v5 = vadd.f32 %v1808_v25, %v8835_v54  ;;  %v11672_v54 = vld [vmem:[#allocation50_spill] sm:$0xff] }
 0x2e9   :  { %7681 = vpow2.f32 %v1339_v32  ;;  %v1837_v14 = vpop.permute.xlu1 %1836  ;;  %v1900_v26 = vsub.f32 %v1820_v56, %v9040_v38  ;;  %6975 = vmatprep.subr.mxu1 %v11634_v27  ;;  %v1795_v30 = vmul.f32 0.2, %v9229_v18 }
 0x2ea   :  { %v9209_v33 = vpop.eup %7675  ;;  %7683 = vpow2.f32 %v1341_v34  ;;  %v1899_v57 = vsub.f32 %v1819_v44, %v1837_v14  ;;  %2549 = vrot.lane.b32.xlu1 %v11647_v61, %s7955_s2  ;;  %v1821_v34 = vadd.f32 %v1805_v55, %v8798_v13  ;;  %6976 = vmatpush3.msra.mxu1 %v11634_v27  ;;  %v1822_v55 = vadd.f32 %v1806_v6, %v8804_v2  ;;  %v11669_v44 = vld [vmem:[#allocation44_spill] sm:$0xff] }
 0x2eb   :  { %6887 = vmatprep.mubr.f32.mxu1 %v9209_v33  ;;  %7685 = vpow2.f32 %v1343_v16  ;;  %v9245_v38 = vadd.f32 %v9116_v39, %v11669_v44  ;;  %v1809_v16 = vmax.f32 %v9203_v58, %v1793_v49  ;;  %v11670_v2 = vld [vmem:[#allocation48_spill] sm:$0xff]  ;;  %6977 = vmatprep.subr.mxu1 %v11634_v27  ;;  %v1917_v14 = vmul.f32 1.442695, %v1900_v26 }
 0x2ec   :  { %7687 = vpow2.f32 %v1345_v48  ;;  %v1901_v13 = vsub.f32 %v1821_v34, %v9057_v21  ;;  %v1915_v31 = vmul.f32 1.442695, %v1899_v57  ;;  %v1823_v21 = vadd.f32 %v1807_v40, %v8822_v20  ;;  %v9259_v57 = vpop.permute.xlu0 %1872  ;;  %6978 = vmatpush3.msra.mxu1 %v11634_v27  ;;  %v11671_v34 = vld [vmem:[#allocation47_spill] sm:$0xff] }
 0x2ed   :  { %v9233_v32 = vpop.permute.xlu1 %1884  ;;  %v9255_v8 = vadd.f32 %v9116_v39, %v11670_v2  ;;  %7689 = vpow2.f32 %v1347_v43  ;;  %v1902_v48 = vsub.f32 %v1822_v55, %v9070_v10  ;;  %v2351_v58 = vsub.s32 3, %v8728_v4  ;;  %6979 = vmatprep.subr.mxu1 %v11634_v27 }
 0x2ee   :  { %v9236_v61 = vpop.eup %7677  ;;  %2545 = vrot.lane.b32.xlu1 %v11649_v59, %s7955_s2  ;;  %v1919_v56 = vmul.f32 1.442695, %v1901_v13  ;;  %v1903_v6 = vsub.f32 %v1823_v21, %v9088_v3  ;;  %7691 = vpow2.f32 %v1915_v31  ;;  %v1810_v10 = vmax.f32 %v9217_v24, %v1794_v50  ;;  %6980 = vmatpush3.msra.mxu1 %v11634_v27  ;;  %v11673_v21 = vld [vmem:[#allocation49_spill] sm:$0xff] }
 0x2ef   :  { %6888 = vmatmul.mubr.f32.gmra.mxu1 %v9236_v61  ;;  %v1796_v41 = vmul.f32 0.2, %v9245_v38  ;;  %v9274_v40 = vadd.f32 %v9116_v39, %v11671_v34  ;;  %v1825_v3 = vadd.f32 %v1809_v16, %v8843_v7  ;;  %v1811_v49 = vmax.f32 %v9229_v18, %v1795_v30  ;;  %6981 = vmatprep.subr.mxu1 %v11634_v27  ;;  %v11674_v30 = vld [vmem:[#allocation52_spill] sm:$0xff] }
 0x2f0   :  { %v1797_v22 = vmul.f32 0.2, %v9255_v8  ;;  %v9284_v24 = vadd.f32 %v9116_v39, %v11672_v54  ;;  %7693 = vpow2.f32 %v1917_v14  ;;  %v1921_v43 = vmul.f32 1.442695, %v1902_v48  ;;  %6982 = vmatpush3.msra.mxu1 %v11634_v27  ;;  %v1877_v50 = vpop.permute.xlu0 %1876 }
 0x2f1   :  { %v9261_v59 = vpop.permute.xlu1 %1888  ;;  %v1904_v26 = vsub.f32 %v1824_v5, %v9122_v45  ;;  %v9294_v7 = vrot.slane %v8739_v37, %v2351_v58  ;;  %7695 = vpow2.f32 %v1919_v56  ;;  %v1923_v18 = vmul.f32 1.442695, %v1903_v6  ;;  %6983 = vmatprep.subr.mxu1 %v11634_v27  ;;  %v11675_v5 = vld [vmem:[#allocation51_spill] sm:$0xff] }
 0x2f2   :  { %v9264_v20 = vpop.eup %7679  ;;  %2541 = vrot.lane.b32.xlu1 %v11651_v29, %s7955_s2  ;;  %v1905_v31 = vsub.f32 %v1825_v3, %v9146_v52  ;;  %v1826_v25 = vadd.f32 %v1810_v10, %v8854_v51  ;;  %v1812_v45 = vmax.f32 %v9245_v38, %v1796_v41  ;;  %v1798_v44 = vmul.f32 0.2, %v9274_v40  ;;  %6984 = vmatpush3.msra.mxu1 %v11634_v27 }
 0x2f3   :  { %6890 = vmatprep.mubr.f32.mxu1 %v9264_v20  ;;  %v9305_v16 = vadd.f32 %v9116_v39, %v11673_v21  ;;  %v1827_v37 = vadd.f32 %v1811_v49, %v8880_v15  ;;  %v1813_v52 = vmax.f32 %v9255_v8, %v1797_v22  ;;  %v9314_v51 = vadd.f32 %v9116_v39, %v11674_v30 }
 0x2f4   :  { %v1799_v38 = vmul.f32 0.2, %v9284_v24  ;;  %7697 = vpow2.f32 %v1921_v43  ;;  %v1925_v2 = vmul.f32 1.442695, %v1904_v26  ;;  %v1927_v15 = vmul.f32 1.442695, %v1905_v31  ;;  %6985 = vmatprep.subr.mxu1 %v11634_v27  ;;  %v1881_v3 = vpop.permute.xlu0 %1880 }
 0x2f5   :  { %v9288_v13 = vpop.permute.xlu1 %1896  ;;  %7699 = vpow2.f32 %v1923_v18  ;;  %v1907_v8 = vsub.f32 %v1827_v37, %v9219_v35  ;;  %v1828_v56 = vadd.f32 %v1812_v45, %v8903_v42  ;;  %v1814_v6 = vmax.f32 %v9274_v40, %v1798_v44  ;;  %v11676_v42 = vld [vmem:[#allocation11_spill] sm:$0xff]  ;;  %6986 = vmatpush3.msra.mxu1 %v11634_v27 }
 0x2f6   :  { %v9291_v29 = vpop.eup %7681  ;;  %2537 = vrot.lane.b32.xlu1 %v11656_v9, %s7955_s2  ;;  %v1906_v9 = vsub.f32 %v1826_v25, %v9182_v36  ;;  %v1800_v36 = vmul.f32 0.2, %v9305_v16  ;;  %v9334_v10 = vadd.f32 %v9116_v39, %v11675_v5  ;;  %v1829_v35 = vadd.f32 %v1813_v52, %v8941_v60  ;;  %7067 = vmatprep.subr.mxu1 %v11634_v27 }
 0x2f7   :  { %v9298_v55 = vpop.eup %7683  ;;  %6891 = vmatmul.mubr.f32.gmra.mxu1 %v9291_v29  ;;  %v1801_v41 = vmul.f32 0.2, %v9314_v51  ;;  %v1815_v34 = vmax.f32 %v9284_v24, %v1799_v38  ;;  %v9344_v40 = vadd.f32 %v9294_v7, %v11676_v42  ;;  %7701 = vpow2.f32 %v1925_v2 }
 0x2f8   :  { %6893 = vmatprep.mubr.f32.mxu1 %v9298_v55  ;;  %v9321_v14 = vpop.eup %7685  ;;  %v1929_v39 = vmul.f32 1.442695, %v1906_v9  ;;  %7703 = vpow2.f32 %v1927_v15  ;;  %v1931_v49 = vmul.f32 1.442695, %v1907_v8  ;;  %v1909_v22 = vsub.f32 %v1829_v35, %v1877_v50  ;;  %v11679_v15 = vld [vmem:[#allocation12_spill] sm:$0xff] }
 0x2f9   :  { %v9327_v58 = vpop.eup %7687  ;;  %v1830_v43 = vadd.f32 %v1814_v6, %v8923_v19  ;;  %v1816_v26 = vmax.f32 %v9305_v16, %v1800_v36  ;;  %v1802_v18 = vmul.f32 0.2, %v9334_v10  ;;  %v1817_v25 = vmax.f32 %v9314_v51, %v1801_v41  ;;  %v11678_v19 = vld [vmem:[#allocation28_spill] sm:$0xff]  ;;  %v1893_v51 = vpop.permute.xlu0 %1892 }
 0x2fa   :  { %v9324_v48 = vpop.permute.xlu1 %2418  ;;  %2533 = vrot.lane.b32.xlu1 %v11639_v53, %s7955_s2  ;;  %v1908_v53 = vsub.f32 %v1828_v56, %v9259_v57  ;;  %v9350_v60 = vpop.eup %7689  ;;  %v11677_v57 = vld [vmem:[#allocation13_spill] sm:$0xff]  ;;  %v1831_v45 = vadd.f32 %v1815_v34, %v8967_v0  ;;  %v2369_v50 = vmul.f32 0.2, %v9344_v40  ;;  %v9372_v44 = vadd.f32 %v9294_v7, %v11678_v19 }
 0x2fb   :  { %6894 = vmatmul.mubr.f32.gmra.mxu1 %v9321_v14  ;;  %v9354_v24 = vpop.eup %7691  ;;  %v9363_v31 = vadd.f32 %v9294_v7, %v11677_v57  ;;  %7705 = vpow2.f32 %v1929_v39  ;;  %v1910_v21 = vsub.f32 %v1830_v43, %v1881_v3  ;;  %v1935_v37 = vmul.f32 1.442695, %v1909_v22 }
 0x2fc   :  { %6896 = vmatprep.mubr.f32.mxu1 %v9327_v58  ;;  %7707 = vpow2.f32 %v1931_v49  ;;  %v1911_v52 = vsub.f32 %v1831_v45, %v9233_v32  ;;  %v1832_v38 = vadd.f32 %v1816_v26, %v8961_v23  ;;  %v1818_v2 = vmax.f32 %v9334_v10, %v1802_v18  ;;  %v11680_v23 = vld [vmem:[#allocation36_spill] sm:$0xff]  ;;  %v7915_v49 = vld [vmem:[%s11529_s1] sm:$0xff]  ;;  %v11682_v26 = vld [vmem:[#allocation23_spill] sm:$0xff] }
 0x2fd   :  { %v9374_v16 = vpop.eup %7693  ;;  %v2370_v9 = vmul.f32 0.2, %v9363_v31  ;;  %v9387_v8 = vadd.f32 %v9294_v7, %v11679_v15  ;;  %v1833_v56 = vadd.f32 %v1817_v25, %v8989_v46  ;;  %v2385_v32 = vmax.f32 %v9344_v40, %v2369_v50 }
 0x2fe   :  { %v9352_v54 = vpop.permute.xlu1 %2422  ;;  %2529 = vrot.lane.b32.xlu1 %v11641_v47, %s7955_s2  ;;  %v1933_v47 = vmul.f32 1.442695, %v1908_v53  ;;  %v9379_v0 = vpop.eup %7695  ;;  %v2371_v6 = vmul.f32 0.2, %v9372_v44  ;;  %v9396_v36 = vadd.f32 %v9294_v7, %v11680_v23  ;;  %v1937_v5 = vmul.f32 1.442695, %v1910_v21 }
 0x2ff   :  { %6897 = vmatmul.mubr.f32.gmra.mxu1 %v9350_v60  ;;  %v1912_v10 = vsub.f32 %v1832_v38, %v9261_v59  ;;  %v1913_v46 = vsub.f32 %v1833_v56, %v1893_v51  ;;  %v1939_v41 = vmul.f32 1.442695, %v1911_v52  ;;  %v1834_v40 = vadd.f32 %v1818_v2, %v8998_v12  ;;  %v11681_v53 = vld [vmem:[#allocation14_spill] sm:$0xff]  ;;  %v7917_v51 = vld [vmem:[%s11529_s1 + $0x10] sm:$0xff] }
 0x300   :  { %6987 = vmatprep.mubr.f32.mxu1 %v9354_v24  ;;  %7709 = vpow2.f32 %v1933_v47  ;;  %v2386_v39 = vmax.f32 %v9363_v31, %v2370_v9  ;;  %v2372_v59 = vmul.f32 0.2, %v9387_v8  ;;  %v9414_v3 = vadd.f32 %v9294_v7, %v11681_v53  ;;  %v7916_v47 = vld [vmem:[%s11529_s1 + $0x8] sm:$0xff] }
 0x301   :  { %v9400_v35 = vpop.eup %7697  ;;  %7711 = vpow2.f32 %v1935_v37  ;;  %v2401_v22 = vadd.f32 %v7915_v49, %v2385_v32  ;;  %v2387_v43 = vmax.f32 %v9372_v44, %v2371_v6  ;;  %v2373_v12 = vmul.f32 0.2, %v9396_v36  ;;  %v9459_v32 = vpop.permute.xlu0 %2466 }
 0x302   :  { %v9377_v30 = vpop.permute.xlu1 %2426  ;;  %v9405_v42 = vpop.eup %7699  ;;  %v9425_v18 = vadd.f32 %v9294_v7, %v11682_v26  ;;  %7713 = vpow2.f32 %v1937_v5  ;;  %v1941_v57 = vmul.f32 1.442695, %v1912_v10  ;;  %v1914_v31 = vsub.f32 %v1834_v40, %v9288_v13  ;;  %v7918_v10 = vld [vmem:[%s11529_s1 + $0x18] sm:$0xff] }
 0x303   :  { %6988 = vmatmul.mubr.f32.vlgmr.msra.gmra.mxu1 %v9374_v16  ;;  %v1943_v45 = vmul.f32 1.442695, %v1913_v46  ;;  %7715 = vpow2.f32 %v1939_v41  ;;  %v2481_v50 = vsub.f32 %v2401_v22, %v9324_v48  ;;  %v2402_v21 = vadd.f32 %v7916_v47, %v2386_v39  ;;  %v11683_v48 = vld [vmem:[#allocation19_spill] sm:$0xff]  ;;  %v11684_v40 = vld [vmem:[#allocation29_spill] sm:$0xff]  ;;  %v7919_v39 = vld [vmem:[%s11529_s1 + $0x20] sm:$0xff] }
 0x304   :  { %7068 = vmatpush3.msra.mxu1 %v11634_v27  ;;  %6990 = vmatprep.mubr.f32.mxu1 %v9379_v0  ;;  %v9429_v25 = vpop.eup %7701  ;;  %v2388_v13 = vmax.f32 %v9387_v8, %v2372_v59  ;;  %v2374_v37 = vmul.f32 0.2, %v9414_v3  ;;  %v9446_v52 = vadd.f32 %v9294_v7, %v11683_v48  ;;  %v2403_v38 = vadd.f32 %v7917_v51, %v2387_v43 }
 0x305   :  { %7069 = vmatprep.subr.mxu1 %v11634_v27  ;;  %v9435_v44 = vpop.eup %7703  ;;  %v2389_v2 = vmax.f32 %v9396_v36, %v2373_v12  ;;  %v2375_v9 = vmul.f32 0.2, %v9425_v18  ;;  %7717 = vpow2.f32 %v1941_v57  ;;  %v1945_v15 = vmul.f32 1.442695, %v1914_v31  ;;  %v9499_v47 = vpop.permute.xlu0 %2474 }
 0x306   :  { %7070 = vmatpush3.msra.mxu1 %v11634_v27  ;;  %v9403_v34 = vpop.permute.xlu1 %2430  ;;  %v2482_v8 = vsub.f32 %v2402_v21, %v9352_v54  ;;  %7719 = vpow2.f32 %v1943_v45  ;;  %v2497_v6 = vmul.f32 1.442695, %v2481_v50  ;;  %v2483_v23 = vsub.f32 %v2403_v38, %v9377_v30  ;;  %v11685_v50 = vld [vmem:[#allocation25_spill] sm:$0xff]  ;;  %v7921_v21 = vld [vmem:[%s11529_s1 + $0x30] sm:$0xff] }
 0x307   :  { %7071 = vmatprep.subr.mxu1 %v11634_v27  ;;  %6991 = vmatmul.mubr.f32.gmra.mxu1 %v9400_v35  ;;  %v2404_v54 = vadd.f32 %v7918_v10, %v2388_v13  ;;  %v2390_v46 = vmax.f32 %v9414_v3, %v2374_v37  ;;  %v2376_v41 = vmul.f32 0.2, %v9446_v52  ;;  %v9474_v30 = vadd.f32 %v9294_v7, %v11684_v40  ;;  %v11687_v40 = vld [vmem:[#allocation41_spill] sm:$0xff] }
 0x308   :  { %7072 = vmatpush3.msra.mxu1 %v11634_v27  ;;  %6993 = vmatprep.mubr.f32.mxu1 %v9405_v42  ;;  %v9457_v56 = vpop.eup %7705  ;;  %v2405_v59 = vadd.f32 %v7919_v39, %v2389_v2  ;;  %v2391_v53 = vmax.f32 %v9425_v18, %v2375_v9  ;;  %7721 = vpow2.f32 %v1945_v15  ;;  %v2499_v3 = vmul.f32 1.442695, %v2482_v8  ;;  %v7920_v18 = vld [vmem:[%s11529_s1 + $0x28] sm:$0xff]  ;;  %v7922_v9 = vld [vmem:[%s11529_s1 + $0x38] sm:$0xff] }
 0x309   :  { %7073 = vmatprep.subr.mxu1 %v11634_v27  ;;  %v9463_v5 = vpop.eup %7707  ;;  %v2484_v49 = vsub.f32 %v2404_v54, %v9403_v34  ;;  %7723 = vpow2.f32 %v2497_v6  ;;  %v2501_v43 = vmul.f32 1.442695, %v2483_v23  ;;  %v2406_v31 = vadd.f32 %v7920_v18, %v2390_v46  ;;  %v11688_v18 = vld [vmem:[#allocation32_spill] sm:$0xff] }
 0x30a   :  { %7074 = vmatpush3.msra.mxu1 %v11634_v27  ;;  %v9433_v19 = vpop.permute.xlu1 %2434  ;;  %v2392_v34 = vmax.f32 %v9446_v52, %v2376_v41  ;;  %v2377_v45 = vmul.f32 0.2, %v9474_v30  ;;  %v2407_v13 = vadd.f32 %v7921_v21, %v2391_v53  ;;  %7725 = vpow2.f32 %v2499_v3  ;;  %v7923_v3 = vld [vmem:[%s11529_s1 + $0x40] sm:$0xff] }
 0x30b   :  { %7075 = vmatprep.subr.mxu1 %v11634_v27  ;;  %6994 = vmatmul.mubr.f32.gmra.mxu1 %v9429_v25  ;;  %v2485_v12 = vsub.f32 %v2405_v59, %v9433_v19  ;;  %v2362_v19 = vadd.f32 %v9294_v7, %v11685_v50  ;;  %v2503_v37 = vmul.f32 1.442695, %v2484_v49  ;;  %7727 = vpow2.f32 %v2501_v43  ;;  %v9527_v59 = vpop.permute.xlu0 %1367 }
 0x30c   :  { %7076 = vmatpush3.msra.mxu1 %v11634_v27  ;;  %6996 = vmatprep.mubr.f32.mxu1 %v9435_v44  ;;  %v2408_v15 = vadd.f32 %v7922_v9, %v2392_v34  ;;  %v2393_v6 = vmax.f32 %v9474_v30, %v2377_v45  ;;  %v2365_v39 = vadd.f32 %v9294_v7, %v11687_v40 }
 0x30d   :  { %7077 = vmatprep.subr.mxu1 %v11634_v27  ;;  %v9484_v22 = vpop.eup %7709  ;;  %v2505_v51 = vmul.f32 1.442695, %v2485_v12  ;;  %v2378_v23 = vmul.f32 0.2, %v2362_v19  ;;  %7729 = vpow2.f32 %v2503_v37 }
 0x30e   :  { %7078 = vmatpush3.msra.mxu1 %v11634_v27  ;;  %v2439_v36 = vpop.permute.xlu1 %2438  ;;  %v9488_v57 = vpop.eup %7711  ;;  %v2409_v49 = vadd.f32 %v7923_v3, %v2393_v6  ;;  %v2381_v21 = vmul.f32 0.2, %v2365_v39 }
 0x30f   :  { %7079 = vmatprep.subr.mxu1 %v11634_v27  ;;  %6997 = vmatmul.mubr.f32.gmra.mxu1 %v9457_v56  ;;  %v2486_v48 = vsub.f32 %v2406_v31, %v2439_v36  ;;  %v9507_v52 = vpop.eup %7713  ;;  %v11686_v36 = vld [vmem:[#allocation35_spill] sm:$0xff]  ;;  %7731 = vpow2.f32 %v2505_v51  ;;  %v2394_v43 = vmax.f32 %v2362_v19, %v2378_v23  ;;  %v2364_v31 = vadd.f32 %v9294_v7, %v11688_v18  ;;  %v9554_v9 = vpop.permute.xlu0 %1977  ;;  %v11690_v23 = vld [vmem:[#allocation38_spill] sm:$0xff] }
 0x310   :  { %7080 = vmatpush3.msra.mxu1 %v11634_v27  ;;  %6999 = vmatprep.mubr.f32.mxu1 %v9463_v5  ;;  %v9510_v2 = vpop.eup %7715  ;;  %v2363_v10 = vadd.f32 %v9294_v7, %v11686_v36  ;;  %v7924_v51 = vld [vmem:[%s11529_s1 + $0x48] sm:$0xff]  ;;  %v2366_v36 = vadd.f32 %v9294_v7, %v11690_v23  ;;  %v2397_v40 = vmax.f32 %v2365_v39, %v2381_v21  ;;  %v7926_v21 = vld [vmem:[%s11529_s1 + $0x60] sm:$0xff] }
 0x311   :  { %7081 = vmatprep.subr.mxu1 %v11634_v27  ;;  %v2507_v54 = vmul.f32 1.442695, %v2486_v48  ;;  %v2380_v6 = vmul.f32 0.2, %v2364_v31 }
 0x312   :  { %7082 = vmatpush3.msra.mxu1 %v11634_v27  ;;  %v2443_v26 = vpop.permute.xlu1 %2442  ;;  %v9523_v41 = vpop.eup %7717  ;;  %v2382_v18 = vmul.f32 0.2, %v2366_v36 }
 0x313   :  { %7083 = vmatprep.subr.mxu1 %v11634_v27  ;;  %7000 = vmatmul.mubr.f32.gmra.mxu1 %v9484_v22  ;;  %v2487_v38 = vsub.f32 %v2407_v13, %v2443_v26  ;;  %v9530_v53 = vpop.eup %7719  ;;  %v2379_v26 = vmul.f32 0.2, %v2363_v10  ;;  %7733 = vpow2.f32 %v2507_v54  ;;  %v11689_v13 = vld [vmem:[#allocation55_spill] sm:$0xff]  ;;  %v2396_v39 = vmax.f32 %v2364_v31, %v2380_v6  ;;  %v7927_v6 = vld [vmem:[%s11529_s1 + $0x58] sm:$0xff] }
 0x314   :  { %7084 = vmatpush3.msra.mxu1 %v11634_v27  ;;  %7002 = vmatprep.mubr.f32.mxu1 %v9488_v57  ;;  %v2367_v37 = vadd.f32 %v9294_v7, %v11689_v13  ;;  %v2413_v13 = vadd.f32 %v7926_v21, %v2397_v40 }
 0x315   :  { %7085 = vmatprep.subr.mxu1 %v11634_v27  ;;  %v2509_v30 = vmul.f32 1.442695, %v2487_v38  ;;  %v9542_v50 = vpop.eup %7721  ;;  %v2410_v38 = vadd.f32 %v7924_v51, %v2394_v43  ;;  %v2412_v23 = vadd.f32 %v7927_v6, %v2396_v39  ;;  %v7930_v6 = vld [vmem:[%s11529_s1 + $0x78] sm:$0xff] }
 0x316   :  { %7086 = vmatpush3.msra.mxu1 %v11634_v27  ;;  %v2447_v8 = vpop.permute.xlu1 %2446  ;;  %v9545_v19 = vpop.eup %7723  ;;  %v2383_v3 = vmul.f32 0.2, %v2367_v37  ;;  %v2493_v31 = vsub.f32 %v2413_v13, %v9459_v32  ;;  %v7928_v32 = vld [vmem:[%s11529_s1 + $0x70] sm:$0xff] }
 0x317   :  { %7087 = vmatprep.subr.mxu1 %v11634_v27  ;;  %7003 = vmatmul.mubr.f32.gmra.mxu1 %v9507_v52  ;;  %v2488_v46 = vsub.f32 %v2408_v15, %v2447_v8  ;;  %7735 = vpow2.f32 %v2509_v30  ;;  %v2395_v8 = vmax.f32 %v2363_v10, %v2379_v26  ;;  %v11691_v10 = vld [vmem:[#allocation45_spill] sm:$0xff] }
 0x318   :  { %7088 = vmatpush3.msra.mxu1 %v11634_v27  ;;  %7005 = vmatprep.mubr.f32.mxu1 %v9510_v2  ;;  %v2368_v43 = vadd.f32 %v9294_v7, %v11691_v10 }
 0x319   :  { %7089 = vmatprep.subr.mxu1 %v11634_v27  ;;  %v2511_v34 = vmul.f32 1.442695, %v2488_v46  ;;  %v9561_v46 = vpop.eup %7725 }
 0x31a   :  { %7090 = vmatpush3.msra.mxu1 %v11634_v27  ;;  %v9564_v30 = vpop.eup %7727 }
 0x31b   :  { %7091 = vmatprep.subr.mxu1 %v11634_v27  ;;  %7006 = vmatmul.mubr.f32.gmra.mxu1 %v9523_v41  ;;  %v2451_v12 = vpop.permute.xlu1 %2450  ;;  %7737 = vpow2.f32 %v2511_v34 }
 0x31c   :  { %7092 = vmatpush3.msra.mxu1 %v11634_v27  ;;  %7008 = vmatprep.mubr.f32.mxu1 %v9530_v53  ;;  %v2489_v45 = vsub.f32 %v2409_v49, %v2451_v12  ;;  %v7925_v12 = vld [vmem:[%s11529_s1 + $0x50] sm:$0xff] }
 0x31d   :  { %7093 = vmatprep.subr.mxu1 %v11634_v27  ;;  %v2411_v26 = vadd.f32 %v7925_v12, %v2395_v8  ;;  %v2521_v12 = vmul.f32 1.442695, %v2493_v31 }
 0x31e   :  { %7094 = vmatpush3.msra.mxu1 %v11634_v27  ;;  %v2513_v48 = vmul.f32 1.442695, %v2489_v45  ;;  %v9573_v45 = vpop.eup %7729 }
 0x31f   :  { %7095 = vmatprep.subr.mxu1 %v11634_v27  ;;  %7009 = vmatmul.mubr.f32.gmra.mxu1 %v9542_v50  ;;  %v2455_v15 = vpop.permute.xlu1 %2454  ;;  %v9580_v51 = vpop.eup %7731 }
 0x320   :  { %7096 = vmatpush3.msra.mxu1 %v11634_v27  ;;  %7099 = vmatprep.mubr.f32.mxu1 %v9545_v19  ;;  %v2490_v54 = vsub.f32 %v2410_v38, %v2455_v15  ;;  %7739 = vpow2.f32 %v2513_v48  ;;  %v9578_v48 = vpop.permute.xlu0 %1973  ;;  %v2399_v38 = vmax.f32 %v2367_v37, %v2383_v3  ;;  %v2384_v15 = vmul.f32 0.2, %v2368_v43 }
 0x321   :  { %7097 = vmatprep.subr.mxu1 %v11634_v27 }
 0x322   :  { %7098 = vmatpush3.msra.mxu1 %v11634_v27  ;;  %v2515_v49 = vmul.f32 1.442695, %v2490_v54  ;;  %v2398_v54 = vmax.f32 %v2366_v36, %v2382_v18  ;;  %v2415_v3 = vadd.f32 %v7928_v32, %v2399_v38  ;;  %v7929_v36 = vld [vmem:[%s11529_s1 + $0x68] sm:$0xff] }
 0x323   :  { %7100 = vmatmul.mubr.f32.vlgmr.msra.gmra.mxu1 %v9561_v46 }
 0x324   :  { %7102 = vmatprep.mubr.f32.mxu1 %v9564_v30  ;;  %7741 = vpow2.f32 %v2515_v49  ;;  %v2459_v34 = vpop.permute.xlu1 %2458  ;;  %v9588_v49 = vpop.eup %7733  ;;  %v2414_v18 = vadd.f32 %v7929_v36, %v2398_v54  ;;  %v2495_v21 = vsub.f32 %v2415_v3, %v9499_v47 }
 0x325   :  { %v2491_v7 = vsub.f32 %v2411_v26, %v2459_v34  ;;  %v9590_v37 = vpop.eup %7735  ;;  %v9596_v26 = vpop.permute.xlu0 %1969  ;;  %v2400_v34 = vmax.f32 %v2368_v43, %v2384_v15 }
 0x326   :  { %v2525_v43 = vmul.f32 1.442695, %v2495_v21 }
 0x327   :  { %7103 = vmatmul.mubr.f32.gmra.mxu1 %v9573_v45  ;;  %v2517_v8 = vmul.f32 1.442695, %v2491_v7 }
 0x328   :  { %7105 = vmatprep.mubr.f32.mxu1 %v9580_v51  ;;  %v2463_v40 = vpop.permute.xlu1 %2462  ;;  %v9603_v7 = vpop.eup %7737 }
 0x329   :  { %7743 = vpow2.f32 %v2517_v8  ;;  %v2492_v10 = vsub.f32 %v2412_v23, %v2463_v40  ;;  %v2416_v23 = vadd.f32 %v7930_v6, %v2400_v34  ;;  %v1966_v54 = vpop.permute.xlu0 %1965 }
 0x32b   :  { %7106 = vmatmul.mubr.f32.gmra.mxu1 %v9588_v49  ;;  %v2519_v39 = vmul.f32 1.442695, %v2492_v10 }
 0x32c   :  { %7108 = vmatprep.mubr.f32.mxu1 %v9590_v37  ;;  %v2471_v13 = vpop.permute.xlu1 %2470 }
 0x32d   :  { %7745 = vpow2.f32 %v2519_v39  ;;  %v2494_v38 = vsub.f32 %v2414_v18, %v2471_v13  ;;  %v9605_v8 = vpop.eup %7739 }
 0x32e   :  { %7747 = vpow2.f32 %v2521_v12  ;;  %v1962_v12 = vpop.permute.xlu0 %1961 }
 0x32f   :  { %7109 = vmatmul.mubr.f32.gmra.mxu1 %v9603_v7  ;;  %v2523_v31 = vmul.f32 1.442695, %v2494_v38  ;;  %v11692_v38 = vld [vmem:[#allocation53_spill] sm:$0xff] }
 0x330   :  { %7111 = vmatprep.mubr.f32.mxu1 %v9605_v8  ;;  %v2479_v47 = vpop.permute.xlu1 %2478 }
 0x331   :  { %v9612_v15 = vpop.eup %7741  ;;  %7749 = vpow2.f32 %v2523_v31  ;;  %v2496_v40 = vsub.f32 %v2416_v23, %v2479_v47 }
 0x332   :  { %7751 = vpow2.f32 %v2525_v43  ;;  %v1958_v21 = vpop.permute.xlu0 %1957 }
 0x333   :  { %7112 = vmatmul.mubr.f32.gmra.mxu1 %v9612_v15  ;;  %v2527_v10 = vmul.f32 1.442695, %v2496_v40 }
 0x334   :  { %v1370_v32 = vpop.permute.xlu1 %1369 }
 0x335   :  { %6813 = vmatprep.subr.mxu0 %v1370_v32  ;;  %7753 = vpow2.f32 %v2527_v10 }
 0x336   :  { %v9615_v3 = vpop.eup %7743  ;;  %6814 = vmatpush3.msra.mxu0 %v1370_v32 }
 0x337   :  { %6815 = vmatprep.subr.mxu0 %v9527_v59  ;;  %7114 = vmatprep.mubr.f32.mxu1 %v9615_v3 }
 0x338   :  { %v1366_v39 = vpop.permute.xlu1 %1365  ;;  %6816 = vmatpush3.msra.mxu0 %v9527_v59 }
 0x339   :  { %6817 = vmatprep.subr.mxu0 %v1366_v39 }
 0x33a   :  { %v9620_v36 = vpop.eup %7745  ;;  %6818 = vmatpush3.msra.mxu0 %v1366_v39 }
 0x33b   :  { %6820 = vmatmul.mubr.f32.vlgmr.msra.gmra.mxu0 %v9081_v11  ;;  %6899 = vmatprep.subr.mxu0 %v9554_v9  ;;  %v9624_v18 = vpop.eup %7747 }
 0x33c   :  { %7115 = vmatmul.mubr.f32.gmra.mxu1 %v9620_v36  ;;  %v1976_v34 = vpop.permute.xlu1 %1975  ;;  %6822 = vmatprep.mubr.f32.mxu0 %v9084_v28 }
 0x33d   :  { %7117 = vmatprep.mubr.f32.mxu1 %v9624_v18  ;;  %6900 = vmatpush3.msra.mxu0 %v9554_v9  ;;  %v1954_v9 = vpop.permute.xlu0 %1953 }
 0x33e   :  { %v9630_v59 = vpop.eup %7749  ;;  %6901 = vmatprep.subr.mxu0 %v1976_v34 }
 0x33f   :  { %6902 = vmatpush3.msra.mxu0 %v1976_v34  ;;  %v9634_v13 = vpop.eup %7751 }
 0x340   :  { %6823 = vmatmul.mubr.f32.gmra.mxu0 %v9102_v17  ;;  %6903 = vmatprep.subr.mxu0 %v9578_v48  ;;  %v1972_v11 = vpop.permute.xlu1 %1971 }
 0x341   :  { %7118 = vmatmul.mubr.f32.gmra.mxu1 %v9630_v59  ;;  %6825 = vmatprep.mubr.f32.mxu0 %v11692_v38  ;;  %v1950_v6 = vpop.permute.xlu0 %1949 }
 0x342   :  { %7120 = vmatprep.mubr.f32.mxu1 %v9634_v13  ;;  %6904 = vmatpush3.msra.mxu0 %v9578_v48  ;;  %v9640_v28 = vpop.eup %7753 }
 0x343   :  { %6905 = vmatprep.subr.mxu0 %v1972_v11 }
 0x344   :  { %6906 = vmatpush3.msra.mxu0 %v1972_v11  ;;  %v1968_v31 = vpop.permute.xlu1 %1967 }
 0x345   :  { %6826 = vmatmul.mubr.f32.gmra.mxu0 %v9139_v1  ;;  %6907 = vmatprep.subr.mxu0 %v9596_v26  ;;  %v2560_v48 = vpop.permute.xlu0 %2559 }
 0x346   :  { %7121 = vmatmul.mubr.f32.gmra.mxu1 %v9640_v28  ;;  %6828 = vmatprep.mubr.f32.mxu0 %v9160_v63 }
 0x347   :  { %6908 = vmatpush3.msra.mxu0 %v9596_v26 }
 0x348   :  { %6909 = vmatprep.subr.mxu0 %v1968_v31  ;;  %v1964_v17 = vpop.permute.xlu1 %1963 }
 0x349   :  { %6910 = vmatpush3.msra.mxu0 %v1968_v31 }
 0x34a   :  { %6829 = vmatmul.mubr.f32.gmra.mxu0 %v9185_v62  ;;  %6911 = vmatprep.subr.mxu0 %v1966_v54 }
 0x34b   :  { %6831 = vmatprep.mubr.f32.mxu0 %v9209_v33  ;;  %6912 = vmatpush3.msra.mxu0 %v1966_v54  ;;  %v2556_v33 = vpop.permute.xlu0 %2555 }
 0x34c   :  { %6913 = vmatprep.subr.mxu0 %v1964_v17  ;;  %v1960_v1 = vpop.permute.xlu1 %1959 }
 0x34d   :  { %6914 = vmatpush3.msra.mxu0 %v1964_v17 }
 0x34e   :  { %6832 = vmatmul.mubr.f32.gmra.mxu0 %v9236_v61  ;;  %6915 = vmatprep.subr.mxu0 %v1962_v12 }
 0x34f   :  { %6834 = vmatprep.mubr.f32.mxu0 %v9264_v20  ;;  %6916 = vmatpush3.msra.mxu0 %v1962_v12  ;;  %v2552_v20 = vpop.permute.xlu0 %2551 }
 0x350   :  { %6917 = vmatprep.subr.mxu0 %v1960_v1  ;;  %v1956_v63 = vpop.permute.xlu1 %1955 }
 0x351   :  { %6918 = vmatpush3.msra.mxu0 %v1960_v1 }
 0x352   :  { %6835 = vmatmul.mubr.f32.gmra.mxu0 %v9291_v29  ;;  %6919 = vmatprep.subr.mxu0 %v1958_v21 }
 0x353   :  { %6837 = vmatprep.mubr.f32.mxu0 %v9298_v55  ;;  %6920 = vmatpush3.msra.mxu0 %v1958_v21 }
 0x354   :  { %6921 = vmatprep.subr.mxu0 %v1956_v63  ;;  %v1952_v62 = vpop.permute.xlu1 %1951 }
 0x355   :  { %6922 = vmatpush3.msra.mxu0 %v1956_v63 }
 0x356   :  { %6838 = vmatmul.mubr.f32.gmra.mxu0 %v9321_v14  ;;  %6923 = vmatprep.subr.mxu0 %v1954_v9  ;;  %v2548_v14 = vpop.permute.xlu0 %2547 }
 0x357   :  { %6840 = vmatprep.mubr.f32.mxu0 %v9327_v58  ;;  %6924 = vmatpush3.msra.mxu0 %v1954_v9 }
 0x358   :  { %6925 = vmatprep.subr.mxu0 %v1952_v62  ;;  %v1948_v61 = vpop.permute.xlu1 %1947 }
 0x359   :  { %6926 = vmatpush3.msra.mxu0 %v1952_v62 }
 0x35a   :  { %6841 = vmatmul.mubr.f32.gmra.mxu0 %v9350_v60  ;;  %6927 = vmatprep.subr.mxu0 %v1950_v6  ;;  %v2544_v60 = vpop.permute.xlu0 %2543 }
 0x35b   :  { %6928 = vmatpush3.msra.mxu0 %v1950_v6  ;;  %6931 = vmatprep.mubr.f32.mxu0 %v9354_v24 }
 0x35c   :  { %6929 = vmatprep.subr.mxu0 %v1948_v61  ;;  %v2558_v29 = vpop.permute.xlu1 %2557 }
 0x35d   :  { %6930 = vmatpush3.msra.mxu0 %v1948_v61 }
 0x35e   :  { %6932 = vmatmul.mubr.f32.vlgmr.msra.gmra.mxu0 %v9374_v16  ;;  %7011 = vmatprep.subr.mxu0 %v2560_v48  ;;  %v9663_v24 = vpop.f32.mrf.mxu1 }
 0x35f   :  { %6934 = vmatprep.mubr.f32.mxu0 %v9379_v0  ;;  %7012 = vmatpush3.msra.mxu0 %v2560_v48 }
 0x360   :  { %7013 = vmatprep.subr.mxu0 %v2558_v29  ;;  %v2554_v55 = vpop.permute.xlu1 %2553  ;;  %v9667_v0 = vpop.f32.mrf.mxu1 }
 0x361   :  { %7014 = vmatpush3.msra.mxu0 %v2558_v29 }
 0x362   :  { %6935 = vmatmul.mubr.f32.gmra.mxu0 %v9400_v35  ;;  %7015 = vmatprep.subr.mxu0 %v2556_v33 }
 0x363   :  { %6937 = vmatprep.mubr.f32.mxu0 %v9405_v42  ;;  %7016 = vmatpush3.msra.mxu0 %v2556_v33  ;;  %v2540_v42 = vpop.permute.xlu0 %2539 }
 0x364   :  { %7017 = vmatprep.subr.mxu0 %v2554_v55  ;;  %v2550_v58 = vpop.permute.xlu1 %2549 }
 0x365   :  { %7018 = vmatpush3.msra.mxu0 %v2554_v55 }
 0x366   :  { %6938 = vmatmul.mubr.f32.gmra.mxu0 %v9429_v25  ;;  %7019 = vmatprep.subr.mxu0 %v2552_v20  ;;  %v9669_v25 = vpop.f32.mrf.mxu1 }
 0x367   :  { %6940 = vmatprep.mubr.f32.mxu0 %v9435_v44  ;;  %7020 = vmatpush3.msra.mxu0 %v2552_v20 }
 0x368   :  { %7021 = vmatprep.subr.mxu0 %v2550_v58  ;;  %v2546_v16 = vpop.permute.xlu1 %2545 }
 0x369   :  { %7022 = vmatpush3.msra.mxu0 %v2550_v58 }
 0x36a   :  { %6941 = vmatmul.mubr.f32.gmra.mxu0 %v9457_v56  ;;  %7023 = vmatprep.subr.mxu0 %v2548_v14  ;;  %v9673_v56 = vpop.f32.mrf.mxu1 }
 0x36b   :  { %6943 = vmatprep.mubr.f32.mxu0 %v9463_v5  ;;  %7024 = vmatpush3.msra.mxu0 %v2548_v14  ;;  %v2536_v5 = vpop.permute.xlu0 %2535 }
 0x36c   :  { %7025 = vmatprep.subr.mxu0 %v2546_v16  ;;  %v2542_v35 = vpop.permute.xlu1 %2541 }
 0x36d   :  { %7026 = vmatpush3.msra.mxu0 %v2546_v16 }
 0x36e   :  { %6944 = vmatmul.mubr.f32.gmra.mxu0 %v9484_v22  ;;  %7027 = vmatprep.subr.mxu0 %v2544_v60  ;;  %v9677_v26 = vpop.f32.mrf.mxu1 }
 0x36f   :  { %6946 = vmatprep.mubr.f32.mxu0 %v9488_v57  ;;  %7028 = vmatpush3.msra.mxu0 %v2544_v60 }
 0x370   :  { %7029 = vmatprep.subr.mxu0 %v2542_v35  ;;  %v2538_v44 = vpop.permute.xlu1 %2537  ;;  %v9681_v57 = vpop.f32.mrf.mxu1 }
 0x371   :  { %7030 = vmatpush3.msra.mxu0 %v2542_v35 }
 0x372   :  { %6947 = vmatmul.mubr.f32.gmra.mxu0 %v9507_v52  ;;  %7031 = vmatprep.subr.mxu0 %v2540_v42  ;;  %v2532_v52 = vpop.permute.xlu0 %2531 }
 0x373   :  { %6949 = vmatprep.mubr.f32.mxu0 %v9510_v2  ;;  %7032 = vmatpush3.msra.mxu0 %v2540_v42 }
 0x374   :  { %7033 = vmatprep.subr.mxu0 %v2538_v44  ;;  %v2534_v22 = vpop.permute.xlu1 %2533 }
 0x375   :  { %7034 = vmatpush3.msra.mxu0 %v2538_v44 }
 0x376   :  { %6950 = vmatmul.mubr.f32.gmra.mxu0 %v9523_v41  ;;  %7035 = vmatprep.subr.mxu0 %v2536_v5 }
 0x377   :  { %6952 = vmatprep.mubr.f32.mxu0 %v9530_v53  ;;  %7036 = vmatpush3.msra.mxu0 %v2536_v5  ;;  %v9684_v2 = vpop.f32.mrf.mxu1 }
 0x378   :  { %7037 = vmatprep.subr.mxu0 %v2534_v22  ;;  %v2530_v23 = vpop.permute.xlu1 %2529 }
 0x379   :  { %7038 = vmatpush3.msra.mxu0 %v2534_v22  ;;  %v9687_v41 = vpop.f32.mrf.mxu1 }
 0x37a   :  { %6953 = vmatmul.mubr.f32.gmra.mxu0 %v9542_v50  ;;  %7039 = vmatprep.subr.mxu0 %v2532_v52 }
 0x37b   :  { %7040 = vmatpush3.msra.mxu0 %v2532_v52  ;;  %7043 = vmatprep.mubr.f32.mxu0 %v9545_v19 }
 0x37c   :  { %7041 = vmatprep.subr.mxu0 %v2530_v23 }
 0x37d   :  { %7042 = vmatpush3.msra.mxu0 %v2530_v23 }
 0x37e   :  { %7044 = vmatmul.mubr.f32.vlgmr.msra.gmra.mxu0 %v9561_v46 }
 0x37f   :  { %7046 = vmatprep.mubr.f32.mxu0 %v9564_v30 }
 0x380   :  { %v9691_v53 = vpop.f32.mrf.mxu1 }
 0x382   :  { %7047 = vmatmul.mubr.f32.gmra.mxu0 %v9573_v45  ;;  %v9694_v43 = vpop.f32.mrf.mxu1 }
 0x383   :  { %7049 = vmatprep.mubr.f32.mxu0 %v9580_v51 }
 0x386   :  { %7050 = vmatmul.mubr.f32.gmra.mxu0 %v9588_v49  ;;  %v9698_v50 = vpop.f32.mrf.mxu1 }
 0x387   :  { %7052 = vmatprep.mubr.f32.mxu0 %v9590_v37 }
 0x388   :  { %v9701_v19 = vpop.f32.mrf.mxu1 }
 0x38a   :  { %7053 = vmatmul.mubr.f32.gmra.mxu0 %v9603_v7 }
 0x38b   :  { %v9704_v46 = vpop.f32.mrf.mxu1  ;;  %7055 = vmatprep.mubr.f32.mxu0 %v9605_v8 }
 0x38d   :  { %v9707_v30 = vpop.f32.mrf.mxu1 }
 0x38e   :  { %7056 = vmatmul.mubr.f32.gmra.mxu0 %v9612_v15 }
 0x38f   :  { %7058 = vmatprep.mubr.f32.mxu0 %v9615_v3  ;;  %v9711_v45 = vpop.f32.mrf.mxu1 }
 0x391   :  { %v9713_v51 = vpop.f32.mrf.mxu1 }
 0x392   :  { %7059 = vmatmul.mubr.f32.gmra.mxu0 %v9620_v36 }
 0x393   :  { %7061 = vmatprep.mubr.f32.mxu0 %v9624_v18 }
 0x394   :  { %v6877_v49 = vpop.f32.mrf.mxu1 }
 0x395   :  { %2885 = vrot.lane.b32.xlu1 %v6877_v49, %s7956_s21 }
 0x396   :  { %v1624_v37 = vpop.f32.mrf.mxu1  ;;  %7062 = vmatmul.mubr.f32.gmra.mxu0 %v9630_v59 }
 0x397   :  { %2883 = vrot.lane.b32.xlu0 %v1624_v37, %s7956_s21  ;;  %7064 = vmatprep.mubr.f32.mxu0 %v9634_v13  ;;  %v11567_v37 = vmov 2  }
 0x398   :  { %v6880_v7 = vpop.f32.mrf.mxu1  ;;  %7547 = vset.pattern.permute.xlu0 %v11567_v37 }
 0x399   :  { %2889 = vrot.lane.b32.xlu1 %v6880_v7, %s7956_s21  ;;  %v11569_v7 = vmov 1  }
 0x39a   :  { %v1634_v8 = vpop.f32.mrf.mxu1  ;;  %7065 = vmatmul.mubr.f32.gmra.mxu0 %v9640_v28  ;;  %7546 = vset.pattern.permute.xlu1 %v11569_v7 }
 0x39b   :  { %2887 = vrot.lane.b32.xlu0 %v1634_v8, %s7956_s21 }
 0x39f   :  { %v6883_v47 = vpop.f32.mrf.mxu1 }
 0x3a0   :  { %2893 = vrot.lane.b32.xlu1 %v6883_v47, %s7956_s21 }
 0x3a1   :  { %v1644_v15 = vpop.f32.mrf.mxu1 }
 0x3a2   :  { %2891 = vrot.lane.b32.xlu0 %v1644_v15, %s7956_s21 }
 0x3a7   :  { %v6886_v54 = vpop.f32.mrf.mxu1 }
 0x3a8   :  { %2897 = vrot.lane.b32.xlu1 %v6886_v54, %s7956_s21 }
 0x3a9   :  { %v1654_v40 = vpop.f32.mrf.mxu1 }
 0x3aa   :  { %2895 = vrot.lane.b32.xlu0 %v1654_v40, %s7956_s21 }
 0x3af   :  { %v6889_v10 = vpop.f32.mrf.mxu1 }
 0x3b0   :  { %2901 = vrot.lane.b32.xlu1 %v6889_v10, %s7956_s21 }
 0x3b1   :  { %v1664_v32 = vpop.f32.mrf.mxu1 }
 0x3b2   :  { %2899 = vrot.lane.b32.xlu0 %v1664_v32, %s7956_s21 }
 0x3b7   :  { %v6892_v3 = vpop.f32.mrf.mxu1 }
 0x3b8   :  { %2905 = vrot.lane.b32.xlu1 %v6892_v3, %s7956_s21 }
 0x3b9   :  { %v1674_v12 = vpop.f32.mrf.mxu1 }
 0x3ba   :  { %2903 = vrot.lane.b32.xlu0 %v1674_v12, %s7956_s21 }
 0x3bb   :  { %v6895_v39 = vpop.f32.mrf.mxu1 }
 0x3bc   :  { %2909 = vrot.lane.b32.xlu1 %v6895_v39, %s7956_s21 }
 0x3bd   :  { %v1684_v36 = vpop.f32.mrf.mxu1 }
 0x3be   :  { %2907 = vrot.lane.b32.xlu0 %v1684_v36, %s7956_s21 }
 0x3bf   :  { %v6898_v18 = vpop.f32.mrf.mxu1 }
 0x3c0   :  { %2913 = vrot.lane.b32.xlu1 %v6898_v18, %s7956_s21 }
 0x3c1   :  { %v1694_v34 = vpop.f32.mrf.mxu1 }
 0x3c2   :  { %2911 = vrot.lane.b32.xlu0 %v1694_v34, %s7956_s21 }
 0x3c3   :  { %v6989_v21 = vpop.f32.mrf.mxu1 }
 0x3c4   :  { %2949 = vrot.lane.b32.xlu1 %v6989_v21, %s7957_s22 }
 0x3c5   :  { %v2206_v59 = vpop.f32.mrf.mxu1 }
 0x3c6   :  { %2947 = vrot.lane.b32.xlu0 %v2206_v59, %s7957_s22 }
 0x3c7   :  { %v6992_v11 = vpop.f32.mrf.mxu1 }
 0x3c8   :  { %2953 = vrot.lane.b32.xlu1 %v6992_v11, %s7957_s22 }
 0x3c9   :  { %v2216_v13 = vpop.f32.mrf.mxu1 }
 0x3ca   :  { %2951 = vrot.lane.b32.xlu0 %v2216_v13, %s7957_s22 }
 0x3cb   :  { %v6995_v38 = vpop.f32.mrf.mxu1 }
 0x3cc   :  { %2957 = vrot.lane.b32.xlu1 %v6995_v38, %s7957_s22  ;;  %v9796_v38 = vpop.f32.mrf.mxu0 }
 0x3cd   :  { %v2226_v28 = vpop.f32.mrf.mxu1 }
 0x3ce   :  { %2955 = vrot.lane.b32.xlu0 %v2226_v28, %s7957_s22 }
 0x3cf   :  { %v6998_v9 = vpop.f32.mrf.mxu1 }
 0x3d0   :  { %2961 = vrot.lane.b32.xlu1 %v6998_v9, %s7957_s22 }
 0x3d1   :  { %v2236_v31 = vpop.f32.mrf.mxu1 }
 0x3d2   :  { %2959 = vrot.lane.b32.xlu0 %v2236_v31, %s7957_s22  ;;  %v9798_v31 = vpop.f32.mrf.mxu0 }
 0x3d3   :  { %v7001_v17 = vpop.f32.mrf.mxu1 }
 0x3d4   :  { %2965 = vrot.lane.b32.xlu1 %v7001_v17, %s7957_s22 }
 0x3d5   :  { %v2246_v6 = vpop.f32.mrf.mxu1 }
 0x3d6   :  { %2963 = vrot.lane.b32.xlu0 %v2246_v6, %s7957_s22  ;;  %v9800_v6 = vpop.f32.mrf.mxu0 }
 0x3d7   :  { %v7004_v1 = vpop.f32.mrf.mxu1 }
 0x3d8   :  { %2969 = vrot.lane.b32.xlu1 %v7004_v1, %s7957_s22 }
 0x3d9   :  { %v2256_v48 = vpop.f32.mrf.mxu1 }
 0x3da   :  { %2967 = vrot.lane.b32.xlu0 %v2256_v48, %s7957_s22 }
 0x3db   :  { %v7007_v63 = vpop.f32.mrf.mxu1 }
 0x3dc   :  { %2973 = vrot.lane.b32.xlu1 %v7007_v63, %s7957_s22  ;;  %v9802_v63 = vpop.f32.mrf.mxu0 }
 0x3dd   :  { %v2266_v62 = vpop.f32.mrf.mxu1 }
 0x3de   :  { %2971 = vrot.lane.b32.xlu0 %v2266_v62, %s7957_s22 }
 0x3df   :  { %v7010_v33 = vpop.f32.mrf.mxu1 }
 0x3e0   :  { %2977 = vrot.lane.b32.xlu1 %v7010_v33, %s7957_s22  ;;  %v9806_v33 = vpop.f32.mrf.mxu0 }
 0x3e1   :  { %v2276_v61 = vpop.f32.mrf.mxu1  ;;  %11693 = vst [vmem:[#allocation58_spill] sm:$0xff] %v9806_v33 }
 0x3e2   :  { %2975 = vrot.lane.b32.xlu0 %v2276_v61, %s7957_s22 }
 0x3e3   :  { %v7101_v20 = vpop.f32.mrf.mxu1 }
 0x3e4   :  { %3013 = vrot.lane.b32.xlu1 %v7101_v20, %s7958_s24 }
 0x3e5   :  { %v2788_v29 = vpop.f32.mrf.mxu1 }
 0x3e6   :  { %3011 = vrot.lane.b32.xlu0 %v2788_v29, %s7958_s24  ;;  %v9812_v29 = vpop.f32.mrf.mxu0 }
 0x3e7   :  { %v7104_v55 = vpop.f32.mrf.mxu1  ;;  %11694 = vst [vmem:[#allocation20_spill] sm:$0xff] %v9812_v29 }
 0x3e8   :  { %3017 = vrot.lane.b32.xlu1 %v7104_v55, %s7958_s24 }
 0x3e9   :  { %v2798_v14 = vpop.f32.mrf.mxu1 }
 0x3ea   :  { %3015 = vrot.lane.b32.xlu0 %v2798_v14, %s7958_s24  ;;  %v9816_v14 = vpop.f32.mrf.mxu0 }
 0x3eb   :  { %v7107_v58 = vpop.f32.mrf.mxu1  ;;  %11695 = vst [vmem:[#allocation57_spill] sm:$0xff] %v9816_v14 }
 0x3ec   :  { %3021 = vrot.lane.b32.xlu1 %v7107_v58, %s7958_s24 }
 0x3ed   :  { %v2808_v60 = vpop.f32.mrf.mxu1 }
 0x3ee   :  { %3019 = vrot.lane.b32.xlu0 %v2808_v60, %s7958_s24 }
 0x3ef   :  { %v7110_v16 = vpop.f32.mrf.mxu1 }
 0x3f0   :  { %3025 = vrot.lane.b32.xlu1 %v7110_v16, %s7958_s24  ;;  %v9822_v16 = vpop.f32.mrf.mxu0 }
 0x3f1   :  { %v2818_v35 = vpop.f32.mrf.mxu1  ;;  %11696 = vst [vmem:[#allocation3_spill] sm:$0xff] %v9822_v16 }
 0x3f2   :  { %3023 = vrot.lane.b32.xlu0 %v2818_v35, %s7958_s24 }
 0x3f3   :  { %v7113_v42 = vpop.f32.mrf.mxu1 }
 0x3f4   :  { %3029 = vrot.lane.b32.xlu1 %v7113_v42, %s7958_s24  ;;  %v9826_v42 = vpop.f32.mrf.mxu0 }
 0x3f5   :  { %v2828_v44 = vpop.f32.mrf.mxu1  ;;  %11697 = vst [vmem:[#allocation15_spill] sm:$0xff] %v9826_v42 }
 0x3f6   :  { %3027 = vrot.lane.b32.xlu0 %v2828_v44, %s7958_s24 }
 0x3fc   :  { %v7116_v5 = vpop.f32.mrf.mxu1 }
 0x3fd   :  { %3033 = vrot.lane.b32.xlu1 %v7116_v5, %s7958_s24 }
 0x3fe   :  { %v2838_v22 = vpop.f32.mrf.mxu1 }
 0x3ff   :  { %3031 = vrot.lane.b32.xlu0 %v2838_v22, %s7958_s24  ;;  %v9832_v22 = vpop.f32.mrf.mxu0 }
 0x400   :  { %11698 = vst [vmem:[#allocation2_spill] sm:$0xff] %v9832_v22 }
 0x401   :  { %v7119_v52 = vpop.f32.mrf.mxu1 }
 0x402   :  { %3037 = vrot.lane.b32.xlu1 %v7119_v52, %s7958_s24 }
 0x403   :  { %v2848_v23 = vpop.f32.mrf.mxu1 }
 0x404   :  { %3035 = vrot.lane.b32.xlu0 %v2848_v23, %s7958_s24 }
 0x406   :  { %v7122_v49 = vpop.f32.mrf.mxu1 }
 0x407   :  { %3041 = vrot.lane.b32.xlu1 %v7122_v49, %s7958_s24  ;;  %v2886_v47 = vpop.permute.xlu1 %2885 }
 0x408   :  { %v2858_v8 = vpop.f32.mrf.mxu1  ;;  %v3061_v49 = vsel %vm3059_vm2, %v9663_v24, %v2886_v47 }
 0x409   :  { %3039 = vrot.lane.b32.xlu0 %v2858_v8, %s7958_s24  ;;  %v2884_v15 = vpop.permute.xlu0 %2883  ;;  %v9840_v8 = vpop.f32.mrf.mxu0 }
 0x40a   :  { %v3060_v4 = vsel %vm3059_vm2, %v9667_v0, %v2884_v15 }
 0x40b   :  { %v2890_v54 = vpop.permute.xlu1 %2889  ;;  %v9848_v33 = vpop.f32.mrf.mxu0 }
 0x40c   :  { %v3063_v24 = vsel %vm3059_vm2, %v9669_v25, %v2890_v54 }
 0x40d   :  { %v9770_v40 = vpop.permute.xlu0 %2887 }
 0x412   :  { %v9772_v10 = vpop.permute.xlu1 %2893 }
 0x414   :  { %v9774_v32 = vpop.permute.xlu0 %2891 }
 0x41a   :  { %v9776_v3 = vpop.permute.xlu1 %2897 }
 0x41c   :  { %v9778_v12 = vpop.permute.xlu0 %2895 }
 0x422   :  { %v9780_v39 = vpop.permute.xlu1 %2901 }
 0x424   :  { %v9782_v36 = vpop.permute.xlu0 %2899 }
 0x42a   :  { %v9784_v18 = vpop.permute.xlu1 %2905 }
 0x42c   :  { %v9786_v34 = vpop.permute.xlu0 %2903 }
 0x42e   :  { %v9788_v21 = vpop.permute.xlu1 %2909 }
 0x430   :  { %v9790_v59 = vpop.permute.xlu0 %2907 }
 0x432   :  { %v9792_v11 = vpop.permute.xlu1 %2913 }
 0x434   :  { %v9794_v13 = vpop.permute.xlu0 %2911 }
 0x436   :  { %v2950_v28 = vpop.permute.xlu1 %2949 }
 0x437   :  { %v3078_v37 = vsel %vm3076_vm3, %v3061_v49, %v2950_v28 }
 0x438   :  { %v2948_v9 = vpop.permute.xlu0 %2947 }
 0x439   :  { %v3077_v42 = vsel %vm3076_vm3, %v3060_v4, %v2948_v9  ;;  %v3062_v9 = vsel %vm3059_vm2, %v9673_v56, %v9770_v40 }
 0x43a   :  { %v2954_v17 = vpop.permute.xlu1 %2953 }
 0x43b   :  { %v3080_v49 = vsel %vm3076_vm3, %v3063_v24, %v2954_v17  ;;  %v3065_v24 = vsel %vm3059_vm2, %v9677_v26, %v9772_v10 }
 0x43c   :  { %v2952_v1 = vpop.permute.xlu0 %2951 }
 0x43d   :  { %v3079_v25 = vsel %vm3076_vm3, %v3062_v9, %v2952_v1 }
 0x43e   :  { %v2958_v48 = vpop.permute.xlu1 %2957 }
 0x440   :  { %v9804_v62 = vpop.permute.xlu0 %2955 }
 0x442   :  { %v9808_v61 = vpop.permute.xlu1 %2961 }
 0x444   :  { %v9810_v20 = vpop.permute.xlu0 %2959 }
 0x446   :  { %v9814_v55 = vpop.permute.xlu1 %2965 }
 0x448   :  { %v9818_v58 = vpop.permute.xlu0 %2963 }
 0x44a   :  { %v9820_v60 = vpop.permute.xlu1 %2969 }
 0x44c   :  { %v9824_v35 = vpop.permute.xlu0 %2967 }
 0x44e   :  { %v9828_v44 = vpop.permute.xlu1 %2973 }
 0x450   :  { %v9830_v5 = vpop.permute.xlu0 %2971 }
 0x452   :  { %v9834_v52 = vpop.permute.xlu1 %2977 }
 0x454   :  { %v9836_v23 = vpop.permute.xlu0 %2975 }
 0x456   :  { %v3014_v7 = vpop.permute.xlu1 %3013 }
 0x457   :  { %v3095_v22 = vsel %vm3093_vm4, %v3078_v37, %v3014_v7  ;;  %v9854_v37 = vpop.f32.mrf.mxu0 }
 0x458   :  { %v3111_v16 = vmax.f32 %v3095_v22, 1e-30  ;;  %v3012_v14 = vpop.permute.xlu0 %3011 }
 0x459   :  { %v3094_v29 = vsel %vm3093_vm4, %v3077_v42, %v3012_v14  ;;  %v9856_v7 = vpop.f32.mrf.mxu0 }
 0x45a   :  { %7755 = vrcp.f32 %v3111_v16  ;;  %v3110_v47 = vmax.f32 %v3094_v29, 1e-30  ;;  %v3018_v28 = vpop.permute.xlu1 %3017 }
 0x45b   :  { %v3097_v0 = vsel %vm3093_vm4, %v3080_v49, %v3018_v28  ;;  %v9862_v54 = vpop.f32.mrf.mxu0 }
 0x45c   :  { %7757 = vrcp.f32 %v3110_v47  ;;  %v3113_v4 = vmax.f32 %v3097_v0, 1e-30  ;;  %v3016_v15 = vpop.permute.xlu0 %3015  ;;  %11699 = vst [vmem:[#allocation31_spill] sm:$0xff] %v9862_v54  ;;  %v3082_v0 = vsel %vm3076_vm3, %v3065_v24, %v2958_v48  ;;  %v3064_v54 = vsel %vm3059_vm2, %v9681_v57, %v9774_v32 }
 0x45d   :  { %v3096_v17 = vsel %vm3093_vm4, %v3079_v25, %v3016_v15  ;;  %v9868_v49 = vpop.f32.mrf.mxu0  ;;  %v3081_v10 = vsel %vm3076_vm3, %v3064_v54, %v9804_v62  ;;  %v7962_v54 = vmov 0  }
 0x45e   :  { %7759 = vrcp.f32 %v3113_v4  ;;  %v3022_v42 = vpop.permute.xlu1 %3021  ;;  %v3112_v28 = vmax.f32 %v3096_v17, 1e-30 }
 0x45f   :  { %v3099_v1 = vsel %vm3093_vm4, %v3082_v0, %v3022_v42  ;;  %v9872_v9 = vpop.f32.mrf.mxu0  ;;  %v7961_v42 = vmov 3  }
 0x460   :  { %7761 = vrcp.f32 %v3112_v28  ;;  %v3115_v26 = vmax.f32 %v3099_v1, 1e-30 }
 0x462   :  { %7763 = vrcp.f32 %v3115_v26  ;;  %v3026_v62 = vpop.permute.xlu1 %3025 }
 0x467   :  { %v7756_v29 = vpop.eup %7755 }
 0x468   :  { %v3143_v14 = vmul.f32 %v7756_v29, %v3111_v16  ;;  %v3020_v16 = vpop.permute.xlu0 %3019 }
 0x469   :  { %v7758_v22 = vpop.eup %7757  ;;  %v3098_v17 = vsel %vm3093_vm4, %v3081_v10, %v3020_v16 }
 0x46a   :  { %v3159_v56 = vsub.f32 2.0, %v3143_v14  ;;  %v3142_v40 = vmul.f32 %v7758_v22, %v3110_v47  ;;  %v9879_v47 = vpop.f32.mrf.mxu0  ;;  %v3114_v57 = vmax.f32 %v3098_v17, 1e-30  ;;  %v11701_v17 = vmov 2  }
 0x46b   :  { %v7760_v48 = vpop.eup %7759 }
 0x46c   :  { %v3175_v15 = vmul.f32 %v7756_v29, %v3159_v56  ;;  %v3158_v25 = vsub.f32 2.0, %v3142_v40  ;;  %v11700_v29 = vmov 1   ;;  %v3145_v24 = vmul.f32 %v7760_v48, %v3113_v4  ;;  %v9884_v32 = vpop.f32.mrf.mxu0  ;;  %v3024_v10 = vpop.permute.xlu0 %3023 }
 0x46d   :  { %7765 = vrcp.f32 %v3114_v57  ;;  %v3067_v56 = vsel %vm3059_vm2, %v9684_v2, %v9776_v3  ;;  %v7762_v40 = vpop.eup %7761  ;;  %v3066_v2 = vsel %vm3059_vm2, %v9687_v41, %v9778_v12 }
 0x46e   :  { %3371 = vperm.xlu0 %7547, %v3175_v15   ;;  %3291 = vperm.xlu1 %7546, %v3175_v15   ;;  %v3174_v14 = vmul.f32 %v7758_v22, %v3158_v25  ;;  %v3161_v0 = vsub.f32 2.0, %v3145_v24  ;;  %v9888_v22 = vpop.f32.mrf.mxu0  ;;  %v3084_v4 = vsel %vm3076_vm3, %v3067_v56, %v9808_v61  ;;  %v3144_v3 = vmul.f32 %v7762_v40, %v3112_v28 }
 0x46f   :  { %v3101_v1 = vsel %vm3093_vm4, %v3084_v4, %v3026_v62  ;;  %v3083_v61 = vsel %vm3076_vm3, %v3066_v2, %v9810_v20  ;;  %v7764_v24 = vpop.eup %7763 }
 0x470   :  { %v3177_v25 = vmul.f32 %v7760_v48, %v3161_v0  ;;  %v9896_v16 = vpop.f32.mrf.mxu0  ;;  %v3100_v48 = vsel %vm3093_vm4, %v3083_v61, %v3024_v10  ;;  %v3160_v62 = vsub.f32 2.0, %v3144_v3  ;;  %v3147_v56 = vmul.f32 %v7764_v24, %v3115_v26 }
 0x471   :  { %v3116_v41 = vmax.f32 %v3100_v48, 1e-30  ;;  %v3069_v10 = vsel %vm3059_vm2, %v9691_v53, %v9780_v39  ;;  %v3028_v48 = vpop.permute.xlu0 %3027  ;;  %v3068_v53 = vsel %vm3059_vm2, %v9694_v43, %v9782_v36 }
 0x472   :  { %7550 = vset.pattern.permute.xlu0 %v11700_v29  ;;  %7548 = vset.pattern.permute.xlu1 %v7961_v42  ;;  %v9906_v0 = vpop.f32.mrf.mxu0  ;;  %v3176_v4 = vmul.f32 %v7762_v40, %v3160_v62  ;;  %v3163_v20 = vsub.f32 2.0, %v3147_v56 }
 0x473   :  { %3287 = vperm.xlu0 %7550, %v3174_v14   ;;  %3451 = vperm.xlu1 %7548, %v3175_v15  }
 0x474   :  { %v9910_v28 = vpop.f32.mrf.mxu0  ;;  %v9922_v3 = vmul.f32 %v7764_v24, %v3163_v20 }
 0x476   :  { %v9917_v26 = vpop.f32.mrf.mxu0 }
 0x477   :  { %7553 = vset.pattern.permute.xlu0 %v7962_v54  ;;  %7549 = vset.pattern.permute.xlu1 %v7962_v54 }
 0x478   :  { %3192 = vperm.xlu0 %7553, %v3174_v14   ;;  %3197 = vperm.xlu1 %7549, %v3175_v15   ;;  %v3117_v15 = vmax.f32 %v3101_v1, 1e-30  ;;  %v3030_v1 = vpop.permute.xlu1 %3029  ;;  %v9926_v62 = vpop.f32.mrf.mxu0 }
 0x47a   :  { %7767 = vrcp.f32 %v3117_v15  ;;  %v7766_v12 = vpop.eup %7765  ;;  %v9937_v20 = vpop.f32.mrf.mxu0 }
 0x47b   :  { %7769 = vrcp.f32 %v3116_v41  ;;  %v3146_v2 = vmul.f32 %v7766_v12, %v3114_v57 }
 0x47c   :  { %7555 = vset.pattern.permute.xlu0 %v11701_v17  ;;  %7551 = vset.pattern.permute.xlu1 %v11701_v17 }
 0x47d   :  { %3367 = vperm.xlu1 %7551, %v3174_v14   ;;  %3379 = vperm.xlu0 %7555, %v3177_v25   ;;  %v3162_v61 = vsub.f32 2.0, %v3146_v2 }
 0x47f   :  { %v9935_v56 = vmul.f32 %v7766_v12, %v3162_v61  ;;  %v3071_v12 = vsel %vm3059_vm2, %v9698_v50, %v9784_v18  ;;  %v3070_v50 = vsel %vm3059_vm2, %v9701_v19, %v9786_v34 }
 0x481   :  { %7552 = vset.pattern.permute.xlu1 %v7961_v42  ;;  %7557 = vset.pattern.permute.xlu0 %v7962_v54 }
 0x482   :  { %3447 = vperm.xlu1 %7552, %v3174_v14   ;;  %3207 = vperm.xlu0 %7557, %v3177_v25   ;;  %v3086_v14 = vsel %vm3076_vm3, %v3069_v10, %v9814_v55  ;;  %v3085_v55 = vsel %vm3076_vm3, %v3068_v53, %v9818_v58  ;;  %v3034_v10 = vpop.permute.xlu1 %3033  ;;  %v3032_v53 = vpop.permute.xlu0 %3031 }
 0x483   :  { %v3103_v40 = vsel %vm3093_vm4, %v3086_v14, %v3030_v1  ;;  %v3102_v24 = vsel %vm3093_vm4, %v3085_v55, %v3028_v48  ;;  %v9942_v1 = vpop.f32.mrf.mxu0 }
 0x484   :  { %v3119_v39 = vmax.f32 %v3103_v40, 1e-30  ;;  %v3118_v36 = vmax.f32 %v3102_v24, 1e-30 }
 0x485   :  { %v9952_v14 = vpop.f32.mrf.mxu0 }
 0x486   :  { %7554 = vset.pattern.permute.xlu1 %v11700_v29  ;;  %7558 = vset.pattern.permute.xlu0 %v11700_v29  ;;  %7771 = vrcp.f32 %v3119_v39 }
 0x487   :  { %3295 = vperm.xlu0 %7558, %v3176_v4   ;;  %3299 = vperm.xlu1 %7554, %v3177_v25   ;;  %v7768_v57 = vpop.eup %7767  ;;  %7773 = vrcp.f32 %v3118_v36 }
 0x488   :  { %v3149_v43 = vmul.f32 %v7768_v57, %v3117_v15  ;;  %v3088_v15 = vsel %vm3076_vm3, %v3071_v12, %v9820_v60  ;;  %v9963_v60 = vpop.f32.mrf.mxu0 }
 0x489   :  { %v3105_v40 = vsel %vm3093_vm4, %v3088_v15, %v3034_v10  ;;  %v3073_v10 = vsel %vm3059_vm2, %v9704_v46, %v9788_v21  ;;  %v3072_v46 = vsel %vm3059_vm2, %v9707_v30, %v9790_v59 }
 0x48a   :  { %v3165_v58 = vsub.f32 2.0, %v3149_v43  ;;  %v3121_v18 = vmax.f32 %v3105_v40, 1e-30  ;;  %v9972_v19 = vpop.f32.mrf.mxu0  ;;  %v3090_v12 = vsel %vm3076_vm3, %v3073_v10, %v9828_v44  ;;  %v3089_v44 = vsel %vm3076_vm3, %v3072_v46, %v9830_v5 }
 0x48b   :  { %7563 = vset.pattern.permute.xlu0 %v11701_v17  ;;  %7556 = vset.pattern.permute.xlu1 %v7961_v42 }
 0x48c   :  { %3459 = vperm.xlu1 %7556, %v3177_v25   ;;  %3387 = vperm.xlu0 %7563, %v9922_v3   ;;  %v7770_v25 = vpop.eup %7769  ;;  %v9955_v61 = vmul.f32 %v7768_v57, %v3165_v58  ;;  %7775 = vrcp.f32 %v3121_v18 }
 0x48d   :  { %v3148_v2 = vmul.f32 %v7770_v25, %v3116_v41  ;;  %v3087_v41 = vsel %vm3076_vm3, %v3070_v50, %v9824_v35  ;;  %v9976_v35 = vpop.f32.mrf.mxu0 }
 0x48e   :  { %v3104_v57 = vsel %vm3093_vm4, %v3087_v41, %v3032_v53  ;;  %v3036_v53 = vpop.permute.xlu0 %3035 }
 0x48f   :  { %v3164_v48 = vsub.f32 2.0, %v3148_v2  ;;  %v9988_v15 = vpop.f32.mrf.mxu0  ;;  %v3106_v41 = vsel %vm3093_vm4, %v3089_v44, %v3036_v53 }
 0x490   :  { %7559 = vset.pattern.permute.xlu1 %v11701_v17  ;;  %7566 = vset.pattern.permute.xlu0 %v11700_v29  ;;  %v3122_v59 = vmax.f32 %v3106_v41, 1e-30 }
 0x491   :  { %3375 = vperm.xlu1 %7559, %v3176_v4   ;;  %3303 = vperm.xlu0 %7566, %v9935_v56   ;;  %v9968_v24 = vmul.f32 %v7770_v25, %v3164_v48  ;;  %v3038_v25 = vpop.permute.xlu1 %3037  ;;  %v10001_v50 = vpop.f32.mrf.mxu0 }
 0x492   :  { %v3107_v2 = vsel %vm3093_vm4, %v3090_v12, %v3038_v25 }
 0x493   :  { %v7772_v55 = vpop.eup %7771  ;;  %v3123_v21 = vmax.f32 %v3107_v2, 1e-30 }
 0x494   :  { %v3151_v34 = vmul.f32 %v7772_v55, %v3119_v39  ;;  %v7774_v43 = vpop.eup %7773 }
 0x495   :  { %7560 = vset.pattern.permute.xlu1 %v7961_v42  ;;  %7569 = vset.pattern.permute.xlu0 %v7962_v54  ;;  %v3150_v39 = vmul.f32 %v7774_v43, %v3118_v36 }
 0x496   :  { %3455 = vperm.xlu1 %7560, %v3176_v4   ;;  %3212 = vperm.xlu0 %7569, %v9935_v56   ;;  %v3167_v58 = vsub.f32 2.0, %v3151_v34  ;;  %v3042_v34 = vpop.permute.xlu1 %3041 }
 0x497   :  { %v3166_v48 = vsub.f32 2.0, %v3150_v39 }
 0x498   :  { %v9990_v40 = vmul.f32 %v7772_v55, %v3167_v58 }
 0x499   :  { %v7776_v36 = vpop.eup %7775  ;;  %v10004_v55 = vmul.f32 %v7774_v43, %v3166_v48  ;;  %v3040_v48 = vpop.permute.xlu0 %3039 }
 0x49a   :  { %7561 = vset.pattern.permute.xlu1 %v7962_v54  ;;  %7571 = vset.pattern.permute.xlu0 %v11701_v17  ;;  %v3153_v30 = vmul.f32 %v7776_v36, %v3121_v18  ;;  %v3075_v18 = vsel %vm3059_vm2, %v9711_v45, %v9792_v11  ;;  %v3074_v45 = vsel %vm3059_vm2, %v9713_v51, %v9794_v13 }
 0x49b   :  { %3202 = vperm.xlu1 %7561, %v3176_v4   ;;  %3395 = vperm.xlu0 %7571, %v9955_v61   ;;  %v3120_v4 = vmax.f32 %v3104_v57, 1e-30  ;;  %v3092_v25 = vsel %vm3076_vm3, %v3075_v18, %v9834_v52  ;;  %v3091_v52 = vsel %vm3076_vm3, %v3074_v45, %v9836_v23 }
 0x49c   :  { %v3169_v57 = vsub.f32 2.0, %v3153_v30  ;;  %v3109_v10 = vsel %vm3093_vm4, %v3092_v25, %v3042_v34 }
 0x49d   :  { %7777 = vrcp.f32 %v3120_v4  ;;  %v3125_v11 = vmax.f32 %v3109_v10, 1e-30 }
 0x49e   :  { %7779 = vrcp.f32 %v3123_v21  ;;  %v10024_v39 = vmul.f32 %v7776_v36, %v3169_v57 }
 0x49f   :  { %7562 = vset.pattern.permute.xlu1 %v11700_v29  ;;  %7574 = vset.pattern.permute.xlu0 %v11700_v29  ;;  %7781 = vrcp.f32 %v3122_v59 }
 0x4a0   :  { %3307 = vperm.xlu1 %7562, %v9922_v3   ;;  %3311 = vperm.xlu0 %7574, %v9968_v24   ;;  %7783 = vrcp.f32 %v3125_v11 }
 0x4a4   :  { %7564 = vset.pattern.permute.xlu1 %v7961_v42  ;;  %7577 = vset.pattern.permute.xlu0 %v7962_v54 }
 0x4a5   :  { %3467 = vperm.xlu1 %7564, %v9922_v3   ;;  %3222 = vperm.xlu0 %7577, %v9968_v24  }
 0x4a9   :  { %7565 = vset.pattern.permute.xlu1 %v7962_v54  ;;  %7579 = vset.pattern.permute.xlu0 %v11701_v17 }
 0x4aa   :  { %3217 = vperm.xlu1 %7565, %v9922_v3   ;;  %3403 = vperm.xlu0 %7579, %v9990_v40   ;;  %v10010_v3 = vpop.f32.mrf.mxu0  ;;  %v7778_v5 = vpop.eup %7777 }
 0x4ab   :  { %v3152_v58 = vmul.f32 %v7778_v5, %v3120_v4  ;;  %v3108_v4 = vsel %vm3093_vm4, %v3091_v52, %v3040_v48 }
 0x4ac   :  { %v10014_v43 = vpop.f32.mrf.mxu0  ;;  %v3124_v13 = vmax.f32 %v3108_v4, 1e-30 }
 0x4ad   :  { %v3168_v2 = vsub.f32 2.0, %v3152_v58 }
 0x4ae   :  { %7567 = vset.pattern.permute.xlu1 %v11701_v17  ;;  %7582 = vset.pattern.permute.xlu0 %v11700_v29  ;;  %v10026_v12 = vpop.f32.mrf.mxu0  ;;  %7785 = vrcp.f32 %v3124_v13 }
 0x4af   :  { %3383 = vperm.xlu1 %7567, %v9935_v56   ;;  %3319 = vperm.xlu0 %7582, %v10004_v55   ;;  %v10040_v46 = vmul.f32 %v7778_v5, %v3168_v2 }
 0x4b0   :  { %v10038_v53 = vpop.f32.mrf.mxu0 }
 0x4b2   :  { %v10046_v23 = vpop.f32.mrf.mxu0 }
 0x4b3   :  { %7568 = vset.pattern.permute.xlu1 %v7961_v42  ;;  %7585 = vset.pattern.permute.xlu0 %v7962_v54 }
 0x4b4   :  { %3463 = vperm.xlu1 %7568, %v9935_v56   ;;  %3232 = vperm.xlu0 %7585, %v10004_v55   ;;  %v7780_v56 = vpop.eup %7779 }
 0x4b5   :  { %v3155_v51 = vmul.f32 %v7780_v56, %v3123_v21  ;;  %v7782_v44 = vpop.eup %7781  ;;  %v10052_v21 = vpop.f32.mrf.mxu0 }
 0x4b6   :  { %v3154_v41 = vmul.f32 %v7782_v44, %v3122_v59  ;;  %v7784_v59 = vpop.eup %7783 }
 0x4b7   :  { %v3171_v36 = vsub.f32 2.0, %v3155_v51  ;;  %v10058_v57 = vpop.f32.mrf.mxu0  ;;  %v3157_v18 = vmul.f32 %v7784_v59, %v3125_v11 }
 0x4b8   :  { %7570 = vset.pattern.permute.xlu1 %v11700_v29  ;;  %7587 = vset.pattern.permute.xlu0 %v11701_v17  ;;  %v3170_v5 = vsub.f32 2.0, %v3154_v41 }
 0x4b9   :  { %3315 = vperm.xlu1 %7570, %v9955_v61   ;;  %3411 = vperm.xlu0 %7587, %v10024_v39   ;;  %v10054_v30 = vmul.f32 %v7780_v56, %v3171_v36  ;;  %v3173_v10 = vsub.f32 2.0, %v3157_v18 }
 0x4ba   :  { %v10062_v34 = vmul.f32 %v7782_v44, %v3170_v5 }
 0x4bb   :  { %v7786_v58 = vpop.eup %7785  ;;  %v10078_v45 = vmul.f32 %v7784_v59, %v3173_v10 }
 0x4bc   :  { %v3156_v2 = vmul.f32 %v7786_v58, %v3124_v13 }
 0x4bd   :  { %7572 = vset.pattern.permute.xlu1 %v7961_v42  ;;  %7590 = vset.pattern.permute.xlu0 %v11700_v29 }
 0x4be   :  { %3475 = vperm.xlu1 %7572, %v9955_v61   ;;  %3327 = vperm.xlu0 %7590, %v10040_v46  }
 0x4c2   :  { %7573 = vset.pattern.permute.xlu1 %v7962_v54  ;;  %7593 = vset.pattern.permute.xlu0 %v7962_v54 }
 0x4c3   :  { %3227 = vperm.xlu1 %7573, %v9955_v61   ;;  %3242 = vperm.xlu0 %7593, %v10040_v46   ;;  %v10064_v61 = vpop.f32.mrf.mxu0 }
 0x4c5   :  { %v10070_v25 = vpop.f32.mrf.mxu0 }
 0x4c7   :  { %7575 = vset.pattern.permute.xlu1 %v11701_v17  ;;  %7595 = vset.pattern.permute.xlu0 %v11701_v17  ;;  %v10076_v48 = vpop.f32.mrf.mxu0 }
 0x4c8   :  { %3391 = vperm.xlu1 %7575, %v9968_v24   ;;  %3419 = vperm.xlu0 %7595, %v10054_v30  }
 0x4c9   :  { %v10084_v11 = vpop.f32.mrf.mxu0 }
 0x4cb   :  { %v10090_v56 = vpop.f32.mrf.mxu0 }
 0x4cc   :  { %7576 = vset.pattern.permute.xlu1 %v7961_v42  ;;  %7598 = vset.pattern.permute.xlu0 %v11700_v29 }
 0x4cd   :  { %3471 = vperm.xlu1 %7576, %v9968_v24   ;;  %3335 = vperm.xlu0 %7598, %v10062_v34   ;;  %v3172_v24 = vsub.f32 2.0, %v3156_v2  ;;  %v10094_v4 = vpop.f32.mrf.mxu0 }
 0x4cf   :  { %v10086_v52 = vmul.f32 %v7786_v58, %v3172_v24  ;;  %v10100_v51 = vpop.f32.mrf.mxu0 }
 0x4d1   :  { %7578 = vset.pattern.permute.xlu1 %v11700_v29  ;;  %7601 = vset.pattern.permute.xlu0 %v7962_v54 }
 0x4d2   :  { %3323 = vperm.xlu1 %7578, %v9990_v40   ;;  %3252 = vperm.xlu0 %7601, %v10062_v34  }
 0x4d6   :  { %7580 = vset.pattern.permute.xlu1 %v7961_v42  ;;  %7603 = vset.pattern.permute.xlu0 %v11701_v17 }
 0x4d7   :  { %3483 = vperm.xlu1 %7580, %v9990_v40   ;;  %3427 = vperm.xlu0 %7603, %v10078_v45  }
 0x4db   :  { %7581 = vset.pattern.permute.xlu1 %v7962_v54  ;;  %7606 = vset.pattern.permute.xlu0 %v11700_v29 }
 0x4dc   :  { %3237 = vperm.xlu1 %7581, %v9990_v40   ;;  %3343 = vperm.xlu0 %7606, %v10086_v52   ;;  %v10105_v40 = vpop.f32.mrf.mxu0 }
 0x4de   :  { %v7045_v41 = vpop.f32.mrf.mxu0 }
 0x4e0   :  { %7583 = vset.pattern.permute.xlu1 %v11701_v17  ;;  %7609 = vset.pattern.permute.xlu0 %v7962_v54 }
 0x4e1   :  { %3399 = vperm.xlu1 %7583, %v10004_v55   ;;  %3262 = vperm.xlu0 %7609, %v10086_v52  }
 0x4e5   :  { %7584 = vset.pattern.permute.xlu1 %v7961_v42  ;;  %7611 = vset.pattern.permute.xlu0 %v7961_v42 }
 0x4e6   :  { %3479 = vperm.xlu1 %7584, %v10004_v55  }
 0x4e9   :  { %v3372_v13 = vpop.permute.xlu0 %3371  ;;  %v10107_v44 = vpop.permute.xlu1 %3291 }
 0x4ea   :  { %v3431_v36 = vmul.f32 %v10001_v50, %v3372_v13  ;;  %7586 = vset.pattern.permute.xlu1 %v11700_v29 }
 0x4eb   :  { %3331 = vperm.xlu1 %7586, %v10024_v39  }
 0x4ec   :  { %3608 = vrot.lane.b32.xlu0 %v3431_v36, %s7954_s23  ;;  %v10138_v36 = vpop.f32.mrf.mxu0 }
 0x4ee   :  { %v10113_v5 = vpop.permute.xlu0 %3287  ;;  %v3452_v59 = vpop.permute.xlu1 %3451 }
 0x4ef   :  { %v3511_v18 = vmul.f32 %v7045_v41, %v3452_v59  ;;  %7588 = vset.pattern.permute.xlu1 %v7961_v42  ;;  %v7048_v41 = vpop.f32.mrf.mxu0 }
 0x4f0   :  { %3491 = vperm.xlu1 %7588, %v10024_v39  }
 0x4f1   :  { %3672 = vrot.lane.b32.xlu0 %v3511_v18, %s7951_s0 }
 0x4f3   :  { %v10118_v55 = vpop.permute.xlu1 %3197  ;;  %v10120_v50 = vpop.permute.xlu0 %3192 }
 0x4f4   :  { %7589 = vset.pattern.permute.xlu1 %v7962_v54 }
 0x4f5   :  { %3247 = vperm.xlu1 %7589, %v10024_v39  }
 0x4f8   :  { %v3368_v58 = vpop.permute.xlu1 %3367  ;;  %v3380_v2 = vpop.permute.xlu0 %3379 }
 0x4f9   :  { %v3430_v10 = vmul.f32 %v3368_v58, %v10010_v3  ;;  %7591 = vset.pattern.permute.xlu1 %v11701_v17  ;;  %v3433_v24 = vmul.f32 %v10014_v43, %v3380_v2 }
 0x4fa   :  { %3407 = vperm.xlu1 %7591, %v10040_v46  }
 0x4fb   :  { %3606 = vrot.lane.b32.xlu0 %v3430_v10, %s7954_s23 }
 0x4fd   :  { %v10129_v13 = vpop.permute.xlu1 %3447  ;;  %v10134_v39 = vpop.permute.xlu0 %3207 }
 0x4fe   :  { %7592 = vset.pattern.permute.xlu1 %v7961_v42 }
 0x4ff   :  { %3487 = vperm.xlu1 %7592, %v10040_v46   ;;  %3612 = vrot.lane.b32.xlu0 %v3433_v24, %s7954_s23 }
 0x502   :  { %v10136_v3 = vpop.permute.xlu1 %3299  ;;  %v10142_v59 = vpop.permute.xlu0 %3295 }
 0x503   :  { %7594 = vset.pattern.permute.xlu1 %v11700_v29 }
 0x504   :  { %3339 = vperm.xlu1 %7594, %v10054_v30  }
 0x507   :  { %v3460_v43 = vpop.permute.xlu1 %3459  ;;  %v3388_v10 = vpop.permute.xlu0 %3387 }
 0x508   :  { %v3513_v18 = vmul.f32 %v7048_v41, %v3460_v43  ;;  %7596 = vset.pattern.permute.xlu1 %v7961_v42  ;;  %v3435_v2 = vmul.f32 %v10038_v53, %v3388_v10 }
 0x509   :  { %3499 = vperm.xlu1 %7596, %v10054_v30  }
 0x50a   :  { %3676 = vrot.lane.b32.xlu0 %v3513_v18, %s7951_s0 }
 0x50c   :  { %v3376_v46 = vpop.permute.xlu1 %3375  ;;  %v10167_v43 = vpop.permute.xlu0 %3303 }
 0x50d   :  { %v3432_v58 = vmul.f32 %v3376_v46, %v10026_v12  ;;  %7597 = vset.pattern.permute.xlu1 %v7962_v54  ;;  %v10161_v12 = vpop.f32.mrf.mxu0 }
 0x50e   :  { %3257 = vperm.xlu1 %7597, %v10054_v30  }
 0x50f   :  { %3610 = vrot.lane.b32.xlu0 %v3432_v58, %s7954_s23  ;;  %v7051_v53 = vpop.f32.mrf.mxu0 }
 0x511   :  { %v10152_v24 = vpop.permute.xlu1 %3455  ;;  %v10174_v58 = vpop.permute.xlu0 %3212 }
 0x512   :  { %7599 = vset.pattern.permute.xlu1 %v11701_v17 }
 0x513   :  { %3415 = vperm.xlu1 %7599, %v10062_v34   ;;  %3616 = vrot.lane.b32.xlu0 %v3435_v2, %s7954_s23 }
 0x516   :  { %v10157_v41 = vpop.permute.xlu1 %3202 }
 0x517   :  { %7600 = vset.pattern.permute.xlu1 %v7961_v42 }
 0x518   :  { %3495 = vperm.xlu1 %7600, %v10062_v34  }
 0x51b   :  { %v10163_v30 = vpop.permute.xlu1 %3307 }
 0x51c   :  { %7602 = vset.pattern.permute.xlu1 %v11700_v29 }
 0x51d   :  { %3347 = vperm.xlu1 %7602, %v10078_v45  }
 0x520   :  { %v3468_v18 = vpop.permute.xlu1 %3467 }
 0x521   :  { %v3515_v46 = vmul.f32 %v7051_v53, %v3468_v18  ;;  %7604 = vset.pattern.permute.xlu1 %v7961_v42  ;;  %v3396_v53 = vpop.permute.xlu0 %3395 }
 0x522   :  { %3507 = vperm.xlu1 %7604, %v10078_v45   ;;  %v3437_v18 = vmul.f32 %v10052_v21, %v3396_v53  ;;  %v3350_v21 = vmul.f32 %v10113_v5, %v9879_v47  ;;  %v3900_v47 = vld [vmem:[%s11530_s5 + $0x70] sm:$0xff] }
 0x523   :  { %3680 = vrot.lane.b32.xlu0 %v3515_v46, %s7951_s0  ;;  %v3916_v5 = vld [vmem:[%s11531_s6 + $0x70] sm:$0xff] }
 0x525   :  { %v10172_v34 = vpop.permute.xlu1 %3217  ;;  %v10198_v53 = vpop.permute.xlu0 %3311 }
 0x526   :  { %7605 = vset.pattern.permute.xlu1 %v7962_v54 }
 0x527   :  { %3267 = vperm.xlu1 %7605, %v10078_v45   ;;  %v10190_v45 = vpop.f32.mrf.mxu0 }
 0x52a   :  { %v3384_v10 = vpop.permute.xlu1 %3383 }
 0x52b   :  { %v3434_v2 = vmul.f32 %v3384_v10, %v10046_v23  ;;  %7607 = vset.pattern.permute.xlu1 %v11701_v17  ;;  %v3351_v23 = vmul.f32 %v9872_v9, %v10107_v44  ;;  %v3510_v9 = vmul.f32 %v10129_v13, %v10138_v36  ;;  %v3901_v44 = vld [vmem:[%s11530_s5 + $0x78] sm:$0xff]  ;;  %v3899_v36 = vld [vmem:[%s11530_s5 + $0x68] sm:$0xff] }
 0x52c   :  { %3423 = vperm.xlu1 %7607, %v10086_v52   ;;  %7123 = vmatprep.subr.mxu0 %v3901_v44 }
 0x52d   :  { %3614 = vrot.lane.b32.xlu0 %v3434_v2, %s7954_s23  ;;  %v7054_v2 = vpop.f32.mrf.mxu0  ;;  %7124 = vmatpush3.msra.mxu0 %v3901_v44  ;;  %v3897_v44 = vld [vmem:[%s11530_s5 + $0x58] sm:$0xff] }
 0x52e   :  { %7125 = vmatprep.subr.mxu0 %v3900_v47 }
 0x52f   :  { %v10183_v46 = vpop.permute.xlu1 %3463  ;;  %7126 = vmatpush3.msra.mxu0 %v3900_v47  ;;  %v3913_v47 = vld [vmem:[%s11531_s6 + $0x58] sm:$0xff] }
 0x530   :  { %7608 = vset.pattern.permute.xlu1 %v7961_v42  ;;  %7127 = vmatprep.subr.mxu0 %v3899_v36 }
 0x531   :  { %3503 = vperm.xlu1 %7608, %v10086_v52   ;;  %3620 = vrot.lane.b32.xlu0 %v3437_v18, %s7954_s23 }
 0x532   :  { %7128 = vmatpush3.msra.mxu0 %v3899_v36 }
 0x534   :  { %v10192_v10 = vpop.permute.xlu1 %3315 }
 0x535   :  { %3544 = vrot.lane.b32.xlu1 %v3351_v23, %s7955_s2  ;;  %v3917_v23 = vld [vmem:[%s11531_s6 + $0x78] sm:$0xff] }
 0x536   :  { %7610 = vset.pattern.permute.xlu1 %v11701_v17  ;;  %7179 = vmatprep.subr.mxu1 %v3917_v23 }
 0x537   :  { %7180 = vmatpush3.msra.mxu1 %v3917_v23 }
 0x538   :  { %7181 = vmatprep.subr.mxu1 %v3916_v5 }
 0x539   :  { %v3476_v52 = vpop.permute.xlu1 %3475  ;;  %3542 = vrot.lane.b32.xlu1 %v3350_v21, %s7955_s2  ;;  %v3353_v21 = vmul.f32 %v9884_v32, %v10136_v3  ;;  %7182 = vmatpush3.msra.mxu1 %v3916_v5  ;;  %v3914_v32 = vld [vmem:[%s11531_s6 + $0x60] sm:$0xff]  ;;  %v3352_v3 = vmul.f32 %v10142_v59, %v9888_v22  ;;  %v3896_v22 = vld [vmem:[%s11530_s5 + $0x50] sm:$0xff]  ;;  %v3512_v59 = vmul.f32 %v10152_v24, %v10161_v12 }
 0x53a   :  { %v3517_v18 = vmul.f32 %v7054_v2, %v3476_v52  ;;  %v10224_v2 = vpop.permute.xlu0 %3222  ;;  %v3915_v52 = vld [vmem:[%s11531_s6 + $0x68] sm:$0xff]  ;;  %v3894_v24 = vld [vmem:[%s11530_s5 + $0x40] sm:$0xff] }
 0x53b   :  { %7183 = vmatprep.subr.mxu1 %v3915_v52  ;;  %v3910_v12 = vld [vmem:[%s11531_s6 + $0x40] sm:$0xff] }
 0x53c   :  { %3684 = vrot.lane.b32.xlu0 %v3517_v18, %s7951_s0  ;;  %v3898_v18 = vld [vmem:[%s11530_s5 + $0x60] sm:$0xff]  ;;  %7184 = vmatpush3.msra.mxu1 %v3915_v52  ;;  %v3895_v52 = vld [vmem:[%s11530_s5 + $0x48] sm:$0xff] }
 0x53d   :  { %3670 = vrot.lane.b32.xlu1 %v3510_v9, %s7951_s0  ;;  %7129 = vmatprep.subr.mxu0 %v3898_v18 }
 0x53e   :  { %v10217_v13 = vpop.permute.xlu1 %3227  ;;  %7185 = vmatprep.subr.mxu1 %v3914_v32  ;;  %7130 = vmatpush3.msra.mxu0 %v3898_v18  ;;  %v3404_v5 = vpop.permute.xlu0 %3403  ;;  %v3911_v18 = vld [vmem:[%s11531_s6 + $0x48] sm:$0xff] }
 0x53f   :  { %7186 = vmatpush3.msra.mxu1 %v3914_v32  ;;  %7131 = vmatprep.subr.mxu0 %v3897_v44  ;;  %v3439_v36 = vmul.f32 %v10064_v61, %v3404_v5  ;;  %v3355_v61 = vmul.f32 %v9896_v16, %v10163_v30  ;;  %v10274_v32 = vpop.f32.mrf.mxu0  ;;  %v3893_v16 = vld [vmem:[%s11530_s5 + $0x38] sm:$0xff] }
 0x540   :  { %7187 = vmatprep.subr.mxu1 %v3913_v47  ;;  %7132 = vmatpush3.msra.mxu0 %v3897_v44  ;;  %v3909_v30 = vld [vmem:[%s11531_s6 + $0x38] sm:$0xff]  ;;  %v3892_v44 = vld [vmem:[%s11530_s5 + $0x30] sm:$0xff] }
 0x541   :  { %3548 = vrot.lane.b32.xlu1 %v3353_v21, %s7955_s2  ;;  %7188 = vmatpush3.msra.mxu1 %v3913_v47  ;;  %v7057_v47 = vpop.f32.mrf.mxu0 }
 0x542   :  { %7133 = vmatprep.subr.mxu0 %v3896_v22 }
 0x543   :  { %v3392_v9 = vpop.permute.xlu1 %3391  ;;  %7134 = vmatpush3.msra.mxu0 %v3896_v22  ;;  %v3514_v22 = vmul.f32 %v10183_v46, %v10190_v45  ;;  %v3906_v46 = vld [vmem:[%s11531_s6 + $0x20] sm:$0xff]  ;;  %v3357_v45 = vmul.f32 %v9910_v28, %v10192_v10  ;;  %v3888_v28 = vld [vmem:[%s11530_s5 + $0x10] sm:$0xff] }
 0x544   :  { %v3436_v23 = vmul.f32 %v3392_v9, %v10058_v57  ;;  %v3912_v57 = vld [vmem:[%s11531_s6 + $0x50] sm:$0xff]  ;;  %7135 = vmatprep.subr.mxu0 %v3895_v52  ;;  %v3354_v9 = vmul.f32 %v10167_v43, %v9906_v0  ;;  %v3891_v0 = vld [vmem:[%s11530_s5 + $0x28] sm:$0xff]  ;;  %v10297_v43 = vpop.permute.xlu0 %3319 }
 0x545   :  { %3546 = vrot.lane.b32.xlu1 %v3352_v3, %s7955_s2  ;;  %7189 = vmatprep.subr.mxu1 %v3912_v57  ;;  %v3904_v10 = vld [vmem:[%s11531_s6 + $0x10] sm:$0xff] }
 0x546   :  { %3618 = vrot.lane.b32.xlu0 %v3436_v23, %s7954_s23  ;;  %7190 = vmatpush3.msra.mxu1 %v3912_v57  ;;  %v3908_v23 = vld [vmem:[%s11531_s6 + $0x30] sm:$0xff] }
 0x547   :  { %7191 = vmatprep.subr.mxu1 %v3911_v18  ;;  %7136 = vmatpush3.msra.mxu0 %v3895_v52 }
 0x548   :  { %v10256_v21 = vpop.permute.xlu1 %3471  ;;  %7192 = vmatpush3.msra.mxu1 %v3911_v18  ;;  %7137 = vmatprep.subr.mxu0 %v3894_v24  ;;  %v3889_v18 = vld [vmem:[%s11530_s5 + $0x18] sm:$0xff] }
 0x549   :  { %3674 = vrot.lane.b32.xlu1 %v3512_v59, %s7951_s0  ;;  %7193 = vmatprep.subr.mxu1 %v3910_v12  ;;  %v3907_v59 = vld [vmem:[%s11531_s6 + $0x28] sm:$0xff] }
 0x54a   :  { %3624 = vrot.lane.b32.xlu0 %v3439_v36, %s7954_s23  ;;  %7138 = vmatpush3.msra.mxu0 %v3894_v24  ;;  %v3890_v36 = vld [vmem:[%s11530_s5 + $0x20] sm:$0xff]  ;;  %v10322_v24 = vpop.permute.xlu0 %3232 }
 0x54b   :  { %7194 = vmatpush3.msra.mxu1 %v3910_v12  ;;  %7139 = vmatprep.subr.mxu0 %v3893_v16  ;;  %v3356_v12 = vmul.f32 %v10198_v53, %v9917_v26  ;;  %v3886_v26 = vld [vmem:[%s11530_s5] sm:$0xff]  ;;  %v3516_v53 = vmul.f32 %v10256_v21, %v10274_v32 }
 0x54c   :  { %7195 = vmatprep.subr.mxu1 %v3909_v30  ;;  %7140 = vmatpush3.msra.mxu0 %v3893_v16  ;;  %v3887_v16 = vld [vmem:[%s11530_s5 + $0x8] sm:$0xff] }
 0x54d   :  { %v10276_v3 = vpop.permute.xlu1 %3323  ;;  %3552 = vrot.lane.b32.xlu1 %v3355_v61, %s7955_s2  ;;  %7196 = vmatpush3.msra.mxu1 %v3909_v30  ;;  %v3905_v61 = vld [vmem:[%s11531_s6 + $0x18] sm:$0xff] }
 0x54e   :  { %7141 = vmatprep.subr.mxu0 %v3892_v44  ;;  %7197 = vmatprep.subr.mxu1 %v3908_v23  ;;  %v3359_v21 = vmul.f32 %v9926_v62, %v10276_v3 }
 0x54f   :  { %7142 = vmatpush3.msra.mxu0 %v3892_v44  ;;  %7198 = vmatpush3.msra.mxu1 %v3908_v23  ;;  %v3412_v23 = vpop.permute.xlu0 %3411 }
 0x550   :  { %7143 = vmatprep.subr.mxu0 %v3891_v0  ;;  %7199 = vmatprep.subr.mxu1 %v3907_v59 }
 0x551   :  { %3550 = vrot.lane.b32.xlu1 %v3354_v9, %s7955_s2  ;;  %7144 = vmatpush3.msra.mxu0 %v3891_v0  ;;  %v3903_v9 = vld [vmem:[%s11531_s6 + $0x8] sm:$0xff] }
 0x552   :  { %v3484_v5 = vpop.permute.xlu1 %3483  ;;  %7200 = vmatpush3.msra.mxu1 %v3907_v59  ;;  %7145 = vmatprep.subr.mxu0 %v3890_v36 }
 0x553   :  { %v3519_v57 = vmul.f32 %v7057_v47, %v3484_v5  ;;  %7201 = vmatprep.subr.mxu1 %v3906_v46  ;;  %7146 = vmatpush3.msra.mxu0 %v3890_v36  ;;  %v3441_v47 = vmul.f32 %v10076_v48, %v3412_v23  ;;  %v2683_v5 = vpop.f32.mrf.mxu0  ;;  %v3358_v48 = vmul.f32 %v10297_v43, %v9937_v20 }
 0x554   :  { %7202 = vmatpush3.msra.mxu1 %v3906_v46  ;;  %7147 = vmatprep.subr.mxu0 %v3889_v18 }
 0x555   :  { %3678 = vrot.lane.b32.xlu1 %v3514_v22, %s7951_s0  ;;  %3688 = vrot.lane.b32.xlu0 %v3519_v57, %s7951_s0  ;;  %v3328_v22 = vpop.permute.xlu0 %3327  ;;  %v7060_v57 = vpop.f32.mrf.mxu0 }
 0x556   :  { %7203 = vmatprep.subr.mxu1 %v3905_v61  ;;  %7148 = vmatpush3.msra.mxu0 %v3889_v18  ;;  %v3360_v20 = vmul.f32 %v3328_v22, %v9952_v14 }
 0x557   :  { %v10314_v52 = vpop.permute.xlu1 %3237  ;;  %7204 = vmatpush3.msra.mxu1 %v3905_v61  ;;  %7149 = vmatprep.subr.mxu0 %v3888_v28 }
 0x558   :  { %7205 = vmatprep.subr.mxu1 %v3904_v10  ;;  %7150 = vmatpush3.msra.mxu0 %v3888_v28  ;;  %v2693_v28 = vpop.f32.mrf.mxu0 }
 0x559   :  { %3556 = vrot.lane.b32.xlu1 %v3357_v45, %s7955_s2  ;;  %7206 = vmatpush3.msra.mxu1 %v3904_v10  ;;  %v10363_v3 = vpop.permute.xlu0 %3242 }
 0x55a   :  { %7151 = vmatprep.subr.mxu0 %v3887_v16  ;;  %7207 = vmatprep.subr.mxu1 %v3903_v9  ;;  %v7063_v23 = vpop.f32.mrf.mxu0 }
 0x55b   :  { %7152 = vmatpush3.msra.mxu0 %v3887_v16  ;;  %7208 = vmatpush3.msra.mxu1 %v3903_v9 }
 0x55c   :  { %v3400_v30 = vpop.permute.xlu1 %3399  ;;  %7153 = vmatprep.subr.mxu0 %v3886_v26 }
 0x55d   :  { %v3438_v44 = vmul.f32 %v3400_v30, %v10070_v25  ;;  %3554 = vrot.lane.b32.xlu1 %v3356_v12, %s7955_s2  ;;  %v3902_v25 = vld [vmem:[%s11531_s6] sm:$0xff]  ;;  %7154 = vmatpush3.msra.mxu0 %v3886_v26  ;;  %v3420_v18 = vpop.permute.xlu0 %3419 }
 0x55e   :  { %7209 = vmatprep.subr.mxu1 %v3902_v25  ;;  %v3443_v14 = vmul.f32 %v10090_v56, %v3420_v18 }
 0x55f   :  { %3622 = vrot.lane.b32.xlu0 %v3438_v44, %s7954_s23  ;;  %7210 = vmatpush3.msra.mxu1 %v3902_v25 }
 0x560   :  { %7291 = vmatprep.subr.mxu1 %v11634_v27 }
 0x561   :  { %v3480_v0 = vpop.permute.xlu1 %3479  ;;  %3682 = vrot.lane.b32.xlu1 %v3516_v53, %s7951_s0 }
 0x562   :  { %v3518_v59 = vmul.f32 %v3480_v0, %v2683_v5  ;;  %v2703_v0 = vpop.f32.mrf.mxu0 }
 0x563   :  { %3628 = vrot.lane.b32.xlu0 %v3441_v47, %s7954_s23 }
 0x565   :  { %3560 = vrot.lane.b32.xlu1 %v3359_v21, %s7955_s2 }
 0x566   :  { %v3332_v32 = vpop.permute.xlu1 %3331 }
 0x567   :  { %v3361_v62 = vmul.f32 %v9942_v1, %v3332_v32  ;;  %v3336_v1 = vpop.permute.xlu0 %3335 }
 0x568   :  { %v3362_v16 = vmul.f32 %v3336_v1, %v9972_v19  ;;  %v10406_v1 = vld [vmem:[%s11532_s4] ss:$0 sm:$0xff]  ;;  %s7963_s4 = smov 112  }
 0x569   :  { %3558 = vrot.lane.b32.xlu1 %v3358_v48, %s7955_s2 }
 0x56b   :  { %v3492_v36 = vpop.permute.xlu1 %3491  ;;  %v10378_v44 = vpop.permute.xlu0 %3252 }
 0x56c   :  { %v3521_v46 = vmul.f32 %v7060_v57, %v3492_v36  ;;  %v7066_v36 = vpop.f32.mrf.mxu0 }
 0x56d   :  { %3686 = vrot.lane.b32.xlu1 %v3518_v59, %s7951_s0 }
 0x56e   :  { %3692 = vrot.lane.b32.xlu0 %v3521_v46, %s7951_s0  ;;  %v2713_v18 = vpop.f32.mrf.mxu0 }
 0x56f   :  { %v3428_v19 = vpop.permute.xlu0 %3427 }
 0x570   :  { %v10365_v45 = vpop.permute.xlu1 %3247 }
 0x571   :  { %3564 = vrot.lane.b32.xlu1 %v3361_v62, %s7955_s2 }
 0x573   :  { %v3344_v47 = vpop.permute.xlu0 %3343 }
 0x574   :  { %v3364_v32 = vmul.f32 %v3344_v47, %v9988_v15 }
 0x575   :  { %v3408_v43 = vpop.permute.xlu1 %3407  ;;  %3562 = vrot.lane.b32.xlu1 %v3360_v20, %s7955_s2 }
 0x576   :  { %v3440_v61 = vmul.f32 %v3408_v43, %v10084_v11 }
 0x577   :  { %v10388_v5 = vpop.permute.xlu0 %3262 }
 0x578   :  { %3626 = vrot.lane.b32.xlu0 %v3440_v61, %s7954_s23 }
 0x57a   :  { %v3488_v10 = vpop.permute.xlu1 %3487 }
 0x57b   :  { %v3520_v12 = vmul.f32 %v3488_v10, %v2693_v28  ;;  %v3609_v59 = vpop.permute.xlu0 %3608  ;;  %v3271_v10 = vmul.f32 %v9796_v38, %v10118_v55 }
 0x57d   :  { %3690 = vrot.lane.b32.xlu1 %v3520_v12, %s7951_s0 }
 0x57f   :  { %v3340_v30 = vpop.permute.xlu1 %3339  ;;  %v3673_v15 = vpop.permute.xlu0 %3672 }
 0x580   :  { %v3363_v9 = vmul.f32 %v9963_v60, %v3340_v30 }
 0x581   :  { %3566 = vrot.lane.b32.xlu1 %v3362_v16, %s7955_s2 }
 0x582   :  { %3568 = vrot.lane.b32.xlu0 %v3363_v9, %s7955_s2  ;;  %v3270_v9 = vmul.f32 %v10120_v50, %v9798_v31  ;;  %v3273_v31 = vmul.f32 %v9800_v6, %v10134_v39 }
 0x583   :  { %v3607_v43 = vpop.permute.xlu0 %3606 }
 0x584   :  { %v3500_v11 = vpop.permute.xlu1 %3499 }
 0x585   :  { %v3523_v26 = vmul.f32 %v7063_v23, %v3500_v11 }
 0x586   :  { %3632 = vrot.lane.b32.xlu0 %v3443_v14, %s7954_s23 }
 0x587   :  { %v3613_v28 = vpop.permute.xlu0 %3612 }
 0x589   :  { %v10381_v53 = vpop.permute.xlu1 %3257 }
 0x58a   :  { %3696 = vrot.lane.b32.xlu0 %v3523_v26, %s7951_s0 }
 0x58b   :  { %v3677_v16 = vpop.permute.xlu0 %3676 }
 0x58e   :  { %v3416_v25 = vpop.permute.xlu1 %3415 }
 0x58f   :  { %v3442_v60 = vmul.f32 %v3416_v25, %v10094_v4  ;;  %v3445_v4 = vmul.f32 %v10100_v51, %v3428_v19  ;;  %v3611_v26 = vpop.permute.xlu0 %3610 }
 0x591   :  { %3630 = vrot.lane.b32.xlu1 %v3442_v60, %s7954_s23 }
 0x593   :  { %v3496_v56 = vpop.permute.xlu1 %3495 }
 0x594   :  { %v3522_v21 = vmul.f32 %v3496_v56, %v2703_v0 }
 0x596   :  { %3694 = vrot.lane.b32.xlu1 %v3522_v21, %s7951_s0 }
 0x598   :  { %v3348_v48 = vpop.permute.xlu1 %3347 }
 0x599   :  { %v3365_v22 = vmul.f32 %v9976_v35, %v3348_v48 }
 0x59a   :  { %3570 = vrot.lane.b32.xlu1 %v3364_v32, %s7955_s2  ;;  %v3617_v32 = vpop.permute.xlu0 %3616 }
 0x59b   :  { %3572 = vrot.lane.b32.xlu0 %v3365_v22, %s7955_s2 }
 0x59d   :  { %v3508_v57 = vpop.permute.xlu1 %3507 }
 0x59e   :  { %v3525_v46 = vmul.f32 %v7066_v36, %v3508_v57  ;;  %v3681_v39 = vpop.permute.xlu0 %3680 }
 0x59f   :  { %3636 = vrot.lane.b32.xlu0 %v3445_v4, %s7954_s23  ;;  %v3272_v4 = vmul.f32 %v10157_v41, %v9802_v63  ;;  %v11702_v41 = vld [vmem:[#allocation58_spill] sm:$0xff] }
 0x5a2   :  { %v10395_v62 = vpop.permute.xlu1 %3267 }
 0x5a3   :  { %3700 = vrot.lane.b32.xlu0 %v3525_v46, %s7951_s0 }
 0x5a7   :  { %v3424_v20 = vpop.permute.xlu1 %3423 }
 0x5a8   :  { %v3444_v35 = vmul.f32 %v3424_v20, %v10105_v40 }
 0x5aa   :  { %3634 = vrot.lane.b32.xlu1 %v3444_v35, %s7954_s23 }
 0x5ac   :  { %v3504_v61 = vpop.permute.xlu1 %3503 }
 0x5ad   :  { %v3524_v51 = vmul.f32 %v3504_v61, %v2713_v18  ;;  %v3615_v18 = vpop.permute.xlu0 %3614  ;;  %v3275_v61 = vmul.f32 %v11702_v41, %v10172_v34 }
 0x5af   :  { %3698 = vrot.lane.b32.xlu1 %v3524_v51, %s7951_s0 }
 0x5b0   :  { %v3545_v12 = vpop.permute.xlu1 %3544 }
 0x5b1   :  { %v3720_v40 = vsel %vm3718_vm5, %v3271_v10, %v3545_v12 }
 0x5b2   :  { %v3736_v30 = vsel %vm78_vm0, %v3720_v40, %v3609_v59 }
 0x5b3   :  { %v3753_v14 = vsel %vm3751_vm6, %v3736_v30, %v3673_v15  ;;  %v11703_v30 = vld [vmem:[#allocation20_spill] sm:$0xff] }
 0x5b4   :  { %v3775_v38 = vadd.f32 %v10406_v1, %v3753_v14  ;;  %v3543_v55 = vpop.permute.xlu1 %3542 }
 0x5b5   :  { %v3719_v11 = vsel %vm3718_vm5, %v3270_v9, %v3543_v55  ;;  %v3274_v9 = vmul.f32 %v10174_v58, %v11703_v30  ;;  %v3621_v55 = vpop.permute.xlu0 %3620 }
 0x5b6   :  { %v3807_v23 = vmin.f32 %v3775_v38, 0.0  ;;  %v3735_v19 = vsel %vm78_vm0, %v3719_v11, %v3607_v43  ;;  %vm3791_vm8 = vcmp.gt.f32.partialorder %v3775_v38, 0.0 }
 0x5b8   :  { %v3671_v25 = vpop.permute.xlu1 %3670  ;;  %v3824_v60 = vmul.f32 1.442695, %v3807_v23 }
 0x5b9   :  { %v3752_v47 = vsel %vm3751_vm6, %v3735_v19, %v3671_v25 }
 0x5ba   :  { %v3774_v0 = vadd.f32 %v10406_v1, %v3752_v47  ;;  %7787 = vpow2.f32 %v3824_v60  ;;  %v3685_v47 = vpop.permute.xlu0 %3684 }
 0x5bc   :  { %v3806_v50 = vmin.f32 %v3774_v0, 0.0  ;;  %v3549_v56 = vpop.permute.xlu1 %3548  ;;  %vm3790_vm7 = vcmp.gt.f32.partialorder %v3774_v0, 0.0 }
 0x5bd   :  { %v3722_v21 = vsel %vm3718_vm5, %v3273_v31, %v3549_v56 }
 0x5be   :  { %v3822_v48 = vmul.f32 1.442695, %v3806_v50  ;;  %v3738_v22 = vsel %vm78_vm0, %v3722_v21, %v3613_v28 }
 0x5bf   :  { %v3755_v57 = vsel %vm3751_vm6, %v3738_v22, %v3677_v16  ;;  %v11704_v22 = vld [vmem:[#allocation57_spill] sm:$0xff] }
 0x5c0   :  { %7789 = vpow2.f32 %v3822_v48  ;;  %v3547_v59 = vpop.permute.xlu1 %3546  ;;  %v10426_v36 = vadd.f32 %v10406_v1, %v3755_v57  ;;  %v3619_v57 = vpop.permute.xlu0 %3618 }
 0x5c1   :  { %v3721_v6 = vsel %vm3718_vm5, %v3272_v4, %v3547_v59  ;;  %v3277_v4 = vmul.f32 %v11704_v22, %v10217_v13  ;;  %v11705_v13 = vld [vmem:[#allocation3_spill] sm:$0xff] }
 0x5c2   :  { %v3809_v46 = vmin.f32 %v10426_v36, 0.0  ;;  %v3737_v15 = vsel %vm78_vm0, %v3721_v6, %v3611_v26  ;;  %vm3793_vm10 = vcmp.gt.f32.partialorder %v10426_v36, 0.0 }
 0x5c4   :  { %v3675_v20 = vpop.permute.xlu1 %3674  ;;  %v3828_v35 = vmul.f32 1.442695, %v3809_v46 }
 0x5c5   :  { %v3754_v43 = vsel %vm3751_vm6, %v3737_v15, %v3675_v20  ;;  %v3276_v15 = vmul.f32 %v10224_v2, %v11705_v13 }
 0x5c6   :  { %v10433_v63 = vadd.f32 %v10406_v1, %v3754_v43  ;;  %7791 = vpow2.f32 %v3828_v35 }
 0x5c7   :  { %v7788_v12 = vpop.eup %7787 }
 0x5c8   :  { %v3808_v51 = vmin.f32 %v10433_v63, 0.0  ;;  %v3553_v28 = vpop.permute.xlu1 %3552  ;;  %v6083_v19 = vadd.f32 -1.0, %v7788_v12  ;;  %vm3792_vm9 = vcmp.gt.f32.partialorder %v10433_v63, 0.0 }
 0x5c9   :  { %v3724_v10 = vsel %vm3718_vm5, %v3275_v61, %v3553_v28 }
 0x5ca   :  { %v3826_v40 = vmul.f32 1.442695, %v3808_v51  ;;  %v3740_v16 = vsel %vm78_vm0, %v3724_v10, %v3617_v32  ;;  %v3871_v21 = vsel %vm3791_vm8, %v3775_v38, %v6083_v19  ;;  %v3625_v51 = vpop.permute.xlu0 %3624 }
 0x5cb   :  { %v3757_v14 = vsel %vm3751_vm6, %v3740_v16, %v3681_v39 }
 0x5cc   :  { %7793 = vpow2.f32 %v3826_v40  ;;  %v3551_v11 = vpop.permute.xlu1 %3550  ;;  %v10444_v34 = vadd.f32 %v10406_v1, %v3757_v14 }
 0x5cd   :  { %v7790_v23 = vpop.eup %7789  ;;  %v3723_v26 = vsel %vm3718_vm5, %v3274_v9, %v3551_v11  ;;  %v11706_v11 = vld [vmem:[#allocation15_spill] sm:$0xff] }
 0x5ce   :  { %v6082_v25 = vadd.f32 -1.0, %v7790_v23  ;;  %v3811_v60 = vmin.f32 %v10444_v34, 0.0  ;;  %v3739_v31 = vsel %vm78_vm0, %v3723_v26, %v3615_v18  ;;  %v3689_v14 = vpop.permute.xlu0 %3688  ;;  %vm3795_vm12 = vcmp.gt.f32.partialorder %v10444_v34, 0.0 }
 0x5d0   :  { %v3679_v58 = vpop.permute.xlu1 %3678  ;;  %v3870_v50 = vsel %vm3790_vm7, %v3774_v0, %v6082_v25  ;;  %v3832_v32 = vmul.f32 1.442695, %v3811_v60 }
 0x5d1   :  { %v3756_v56 = vsel %vm3751_vm6, %v3739_v31, %v3679_v58  ;;  %7155 = vmatprep.mubr.f32.mxu0 %v3870_v50  ;;  %7211 = vmatprep.mubr.f32.mxu1 %v3870_v50 }
 0x5d2   :  { %v10451_v48 = vadd.f32 %v10406_v1, %v3756_v56  ;;  %7156 = vmatmul.mubr.f32.vlgmr.msra.gmra.mxu0 %v3871_v21  ;;  %7212 = vmatmul.mubr.f32.vlgmr.msra.gmra.mxu1 %v3871_v21  ;;  %7795 = vpow2.f32 %v3832_v32  ;;  %v3623_v25 = vpop.permute.xlu0 %3622 }
 0x5d3   :  { %7292 = vmatpush3.msra.mxu1 %v11634_v27  ;;  %v7792_v38 = vpop.eup %7791 }
 0x5d4   :  { %v3810_v0 = vmin.f32 %v10451_v48, 0.0  ;;  %v3557_v59 = vpop.permute.xlu1 %3556  ;;  %7293 = vmatprep.subr.mxu1 %v11634_v27  ;;  %v6085_v61 = vadd.f32 -1.0, %v7792_v38  ;;  %vm3794_vm11 = vcmp.gt.f32.partialorder %v10451_v48, 0.0 }
 0x5d5   :  { %v3726_v6 = vsel %vm3718_vm5, %v3277_v4, %v3557_v59  ;;  %7294 = vmatpush3.msra.mxu1 %v11634_v27 }
 0x5d6   :  { %v3830_v39 = vmul.f32 1.442695, %v3810_v0  ;;  %v3742_v46 = vsel %vm78_vm0, %v3726_v6, %v3621_v55  ;;  %7295 = vmatprep.subr.mxu1 %v11634_v27  ;;  %v3873_v30 = vsel %vm3793_vm10, %v10426_v36, %v6085_v61 }
 0x5d7   :  { %v3759_v20 = vsel %vm3751_vm6, %v3742_v46, %v3685_v47  ;;  %7296 = vmatpush3.msra.mxu1 %v11634_v27 }
 0x5d8   :  { %7797 = vpow2.f32 %v3830_v39  ;;  %v3555_v43 = vpop.permute.xlu1 %3554  ;;  %v10467_v35 = vadd.f32 %v10406_v1, %v3759_v20  ;;  %7297 = vmatprep.subr.mxu1 %v11634_v27 }
 0x5d9   :  { %v7794_v18 = vpop.eup %7793  ;;  %v3725_v41 = vsel %vm3718_vm5, %v3276_v15, %v3555_v43  ;;  %7298 = vmatpush3.msra.mxu1 %v11634_v27  ;;  %v3281_v15 = vmul.f32 %v9840_v8, %v10365_v45  ;;  %v3280_v8 = vmul.f32 %v10363_v3, %v9848_v33 }
 0x5da   :  { %v6084_v28 = vadd.f32 -1.0, %v7794_v18  ;;  %v3813_v2 = vmin.f32 %v10467_v35, 0.0  ;;  %7299 = vmatprep.subr.mxu1 %v11634_v27  ;;  %v3741_v10 = vsel %vm78_vm0, %v3725_v41, %v3619_v57  ;;  %v3629_v57 = vpop.permute.xlu0 %3628  ;;  %vm3797_vm14 = vcmp.gt.f32.partialorder %v10467_v35, 0.0 }
 0x5db   :  { %7300 = vmatpush3.msra.mxu1 %v11634_v27 }
 0x5dc   :  { %v3683_v12 = vpop.permute.xlu1 %3682  ;;  %v3872_v40 = vsel %vm3792_vm9, %v10433_v63, %v6084_v28  ;;  %7301 = vmatprep.subr.mxu1 %v11634_v27  ;;  %v3836_v9 = vmul.f32 1.442695, %v3813_v2  ;;  %v3279_v63 = vmul.f32 %v11706_v11, %v10314_v52  ;;  %v11707_v52 = vld [vmem:[#allocation2_spill] sm:$0xff] }
 0x5dd   :  { %v3758_v16 = vsel %vm3751_vm6, %v3741_v10, %v3683_v12  ;;  %7158 = vmatprep.mubr.f32.mxu0 %v3872_v40  ;;  %7214 = vmatprep.mubr.f32.mxu1 %v3872_v40  ;;  %v3278_v31 = vmul.f32 %v10322_v24, %v11707_v52 }
 0x5de   :  { %v10483_v55 = vadd.f32 %v10406_v1, %v3758_v16  ;;  %7159 = vmatmul.mubr.f32.gmra.mxu0 %v3873_v30  ;;  %7215 = vmatmul.mubr.f32.gmra.mxu1 %v3873_v30  ;;  %7799 = vpow2.f32 %v3836_v9 }
 0x5df   :  { %7302 = vmatpush3.msra.mxu1 %v11634_v27  ;;  %v7796_v36 = vpop.eup %7795 }
 0x5e0   :  { %v3812_v23 = vmin.f32 %v10483_v55, 0.0  ;;  %v3561_v26 = vpop.permute.xlu1 %3560  ;;  %7303 = vmatprep.subr.mxu1 %v11634_v27  ;;  %v6087_v22 = vadd.f32 -1.0, %v7796_v36  ;;  %vm3796_vm13 = vcmp.gt.f32.partialorder %v10483_v55, 0.0 }
 0x5e1   :  { %v3728_v19 = vsel %vm3718_vm5, %v3279_v63, %v3561_v26  ;;  %7304 = vmatpush3.msra.mxu1 %v11634_v27 }
 0x5e2   :  { %v3834_v60 = vmul.f32 1.442695, %v3812_v23  ;;  %v3744_v47 = vsel %vm78_vm0, %v3728_v19, %v3625_v51  ;;  %7305 = vmatprep.subr.mxu1 %v11634_v27  ;;  %v3875_v39 = vsel %vm3795_vm12, %v10444_v34, %v6087_v22 }
 0x5e3   :  { %v3761_v58 = vsel %vm3751_vm6, %v3744_v47, %v3689_v14  ;;  %7306 = vmatpush3.msra.mxu1 %v11634_v27 }
 0x5e4   :  { %7801 = vpow2.f32 %v3834_v60  ;;  %v3559_v50 = vpop.permute.xlu1 %3558  ;;  %v10499_v56 = vadd.f32 %v10406_v1, %v3761_v58  ;;  %7307 = vmatprep.subr.mxu1 %v11634_v27 }
 0x5e5   :  { %v7798_v21 = vpop.eup %7797  ;;  %v3727_v32 = vsel %vm3718_vm5, %v3278_v31, %v3559_v50  ;;  %7308 = vmatpush3.msra.mxu1 %v11634_v27 }
 0x5e6   :  { %v6086_v4 = vadd.f32 -1.0, %v7798_v21  ;;  %v3815_v24 = vmin.f32 %v10499_v56, 0.0  ;;  %7309 = vmatprep.subr.mxu1 %v11634_v27  ;;  %v3743_v0 = vsel %vm78_vm0, %v3727_v32, %v3623_v25  ;;  %v3283_v25 = vmul.f32 %v9854_v37, %v10381_v53 }
 0x5e7   :  { %7310 = vmatpush3.msra.mxu1 %v11634_v27  ;;  %vm3799_vm1 = vcmp.gt.f32.partialorder %v10499_v56, 0.0 }
 0x5e8   :  { %v3687_v59 = vpop.permute.xlu1 %3686  ;;  %v3874_v6 = vsel %vm3794_vm11, %v10451_v48, %v6086_v4  ;;  %7311 = vmatprep.subr.mxu1 %v11634_v27  ;;  %v3840_v46 = vmul.f32 1.442695, %v3815_v24  ;;  %v3693_v48 = vpop.permute.xlu0 %3692  ;;  %v3282_v24 = vmul.f32 %v10378_v44, %v9856_v7 }
 0x5e9   :  { %v3760_v38 = vsel %vm3751_vm6, %v3743_v0, %v3687_v59  ;;  %7161 = vmatprep.mubr.f32.mxu0 %v3874_v6  ;;  %7217 = vmatprep.mubr.f32.mxu1 %v3874_v6 }
 0x5ea   :  { %v10515_v13 = vadd.f32 %v10406_v1, %v3760_v38  ;;  %7162 = vmatmul.mubr.f32.gmra.mxu0 %v3875_v39  ;;  %7218 = vmatmul.mubr.f32.gmra.mxu1 %v3875_v39  ;;  %7803 = vpow2.f32 %v3840_v46 }
 0x5eb   :  { %7312 = vmatpush3.msra.mxu1 %v11634_v27  ;;  %v7800_v34 = vpop.eup %7799 }
 0x5ec   :  { %v3814_v20 = vmin.f32 %v10515_v13, 0.0  ;;  %v3565_v43 = vpop.permute.xlu1 %3564  ;;  %7313 = vmatprep.subr.mxu1 %v11634_v27  ;;  %v3627_v51 = vpop.permute.xlu0 %3626  ;;  %v6089_v40 = vadd.f32 -1.0, %v7800_v34  ;;  %vm3798_vm15 = vcmp.gt.f32.partialorder %v10515_v13, 0.0 }
 0x5ed   :  { %v3730_v18 = vsel %vm3718_vm5, %v3281_v15, %v3565_v43  ;;  %7314 = vmatpush3.msra.mxu1 %v11634_v27 }
 0x5ee   :  { %v3838_v41 = vmul.f32 1.442695, %v3814_v20  ;;  %v3746_v61 = vsel %vm78_vm0, %v3730_v18, %v3629_v57  ;;  %7315 = vmatprep.subr.mxu1 %v11634_v27  ;;  %v3877_v63 = vsel %vm3797_vm14, %v10467_v35, %v6089_v40 }
 0x5ef   :  { %v3763_v45 = vsel %vm3751_vm6, %v3746_v61, %v3693_v48  ;;  %7316 = vmatpush3.msra.mxu1 %v11634_v27 }
 0x5f0   :  { %7805 = vpow2.f32 %v3838_v41  ;;  %v3563_v28 = vpop.permute.xlu1 %3562  ;;  %v10531_v2 = vadd.f32 %v10406_v1, %v3763_v45  ;;  %7317 = vmatprep.subr.mxu1 %v11634_v27  ;;  %v11708_v41 = vld [vmem:[#allocation31_spill] sm:$0xff] }
 0x5f1   :  { %v7802_v10 = vpop.eup %7801  ;;  %v3729_v12 = vsel %vm3718_vm5, %v3280_v8, %v3563_v28  ;;  %7318 = vmatpush3.msra.mxu1 %v11634_v27  ;;  %v3285_v61 = vmul.f32 %v11708_v41, %v10395_v62 }
 0x5f2   :  { %v6088_v16 = vadd.f32 -1.0, %v7802_v10  ;;  %v3817_v33 = vmin.f32 %v10531_v2, 0.0  ;;  %7319 = vmatprep.subr.mxu1 %v11634_v27  ;;  %v3745_v30 = vsel %vm78_vm0, %v3729_v12, %v3627_v51  ;;  %vm3801_vm7 = vcmp.gt.f32.partialorder %v10531_v2, 0.0 }
 0x5f3   :  { %7320 = vmatpush3.msra.mxu1 %v11634_v27 }
 0x5f4   :  { %v3569_v3 = vpop.permute.xlu0 %3568  ;;  %v3691_v9 = vpop.permute.xlu1 %3690  ;;  %v3876_v14 = vsel %vm3796_vm13, %v10483_v55, %v6088_v16  ;;  %7321 = vmatprep.subr.mxu1 %v11634_v27  ;;  %v3844_v23 = vmul.f32 1.442695, %v3817_v33 }
 0x5f5   :  { %v3762_v11 = vsel %vm3751_vm6, %v3745_v30, %v3691_v9  ;;  %7164 = vmatprep.mubr.f32.mxu0 %v3876_v14  ;;  %7220 = vmatprep.mubr.f32.mxu1 %v3876_v14  ;;  %v3732_v47 = vsel %vm3718_vm5, %v3283_v25, %v3569_v3  ;;  %v3284_v3 = vmul.f32 %v10388_v5, %v9868_v49 }
 0x5f6   :  { %v3784_v26 = vadd.f32 %v10406_v1, %v3762_v11  ;;  %7165 = vmatmul.mubr.f32.gmra.mxu0 %v3877_v63  ;;  %7221 = vmatmul.mubr.f32.gmra.mxu1 %v3877_v63  ;;  %7807 = vpow2.f32 %v3844_v23 }
 0x5f7   :  { %7322 = vmatpush3.msra.mxu1 %v11634_v27  ;;  %v7804_v55 = vpop.eup %7803 }
 0x5f8   :  { %v3816_v19 = vmin.f32 %v3784_v26, 0.0  ;;  %v3633_v36 = vpop.permute.xlu0 %3632  ;;  %7403 = vmatprep.subr.mxu1 %v11634_v27  ;;  %v6091_v58 = vadd.f32 -1.0, %v7804_v55  ;;  %v3567_v32 = vpop.permute.xlu1 %3566  ;;  %vm3800_vm4 = vcmp.gt.f32.partialorder %v3784_v26, 0.0 }
 0x5f9   :  { %v3748_v31 = vsel %vm78_vm0, %v3732_v47, %v3633_v36  ;;  %v3731_v59 = vsel %vm3718_vm5, %v3282_v24, %v3567_v32 }
 0x5fa   :  { %v3842_v60 = vmul.f32 1.442695, %v3816_v19  ;;  %v3879_v53 = vsel %vm3799_vm1, %v10499_v56, %v6091_v58 }
 0x5fc   :  { %7809 = vpow2.f32 %v3842_v60  ;;  %v3697_v35 = vpop.permute.xlu0 %3696 }
 0x5fd   :  { %v7806_v52 = vpop.eup %7805  ;;  %v3765_v50 = vsel %vm3751_vm6, %v3748_v31, %v3697_v35 }
 0x5fe   :  { %v6090_v21 = vadd.f32 -1.0, %v7806_v52  ;;  %v3787_v37 = vadd.f32 %v10406_v1, %v3765_v50 }
 0x600   :  { %v3878_v22 = vsel %vm3798_vm15, %v10515_v13, %v6090_v21  ;;  %v3819_v57 = vmin.f32 %v3787_v37, 0.0  ;;  %vm3803_vm9 = vcmp.gt.f32.partialorder %v3787_v37, 0.0 }
 0x601   :  { %7167 = vmatprep.mubr.f32.mxu0 %v3878_v22  ;;  %7223 = vmatprep.mubr.f32.mxu1 %v3878_v22 }
 0x602   :  { %7168 = vmatmul.mubr.f32.gmra.mxu0 %v3879_v53  ;;  %7224 = vmatmul.mubr.f32.gmra.mxu1 %v3879_v53  ;;  %v3848_v46 = vmul.f32 1.442695, %v3819_v57 }
 0x603   :  { %v3631_v4 = vpop.permute.xlu1 %3630  ;;  %v7808_v0 = vpop.eup %7807 }
 0x604   :  { %v3747_v6 = vsel %vm78_vm0, %v3731_v59, %v3631_v4  ;;  %v6093_v15 = vadd.f32 -1.0, %v7808_v0  ;;  %7811 = vpow2.f32 %v3848_v46 }
 0x606   :  { %v3881_v44 = vsel %vm3801_vm7, %v10531_v2, %v6093_v15 }
 0x608   :  { %v3695_v38 = vpop.permute.xlu1 %3694 }
 0x609   :  { %v7810_v39 = vpop.eup %7809  ;;  %v3764_v13 = vsel %vm3751_vm6, %v3747_v6, %v3695_v38 }
 0x60a   :  { %v3786_v56 = vadd.f32 %v10406_v1, %v3764_v13  ;;  %v6092_v48 = vadd.f32 -1.0, %v7810_v39 }
 0x60c   :  { %v3818_v20 = vmin.f32 %v3786_v56, 0.0  ;;  %v3880_v43 = vsel %vm3800_vm4, %v3784_v26, %v6092_v48  ;;  %v3571_v10 = vpop.permute.xlu1 %3570  ;;  %vm3802_vm8 = vcmp.gt.f32.partialorder %v3786_v56, 0.0 }
 0x60d   :  { %7170 = vmatprep.mubr.f32.mxu0 %v3880_v43  ;;  %7226 = vmatprep.mubr.f32.mxu1 %v3880_v43  ;;  %v3573_v7 = vpop.permute.xlu0 %3572  ;;  %v3733_v62 = vsel %vm3718_vm5, %v3284_v3, %v3571_v10 }
 0x60e   :  { %v3846_v18 = vmul.f32 1.442695, %v3818_v20  ;;  %7171 = vmatmul.mubr.f32.gmra.mxu0 %v3881_v44  ;;  %7227 = vmatmul.mubr.f32.gmra.mxu1 %v3881_v44  ;;  %v3734_v8 = vsel %vm3718_vm5, %v3285_v61, %v3573_v7 }
 0x610   :  { %7813 = vpow2.f32 %v3846_v18 }
 0x611   :  { %v3637_v34 = vpop.permute.xlu0 %3636  ;;  %v7812_v12 = vpop.eup %7811 }
 0x612   :  { %v3750_v51 = vsel %vm78_vm0, %v3734_v8, %v3637_v34  ;;  %v6095_v33 = vadd.f32 -1.0, %v7812_v12 }
 0x614   :  { %v3883_v23 = vsel %vm3803_vm9, %v3787_v37, %v6095_v33 }
 0x615   :  { %v3701_v45 = vpop.permute.xlu0 %3700 }
 0x616   :  { %v3767_v28 = vsel %vm3751_vm6, %v3750_v51, %v3701_v45 }
 0x617   :  { %v3789_v40 = vadd.f32 %v10406_v1, %v3767_v28 }
 0x619   :  { %v3821_v30 = vmin.f32 %v3789_v40, 0.0  ;;  %vm3805_vm5 = vcmp.gt.f32.partialorder %v3789_v40, 0.0 }
 0x61b   :  { %v3852_v26 = vmul.f32 1.442695, %v3821_v30 }
 0x61c   :  { %v3635_v2 = vpop.permute.xlu1 %3634 }
 0x61d   :  { %v7814_v16 = vpop.eup %7813  ;;  %v3749_v11 = vsel %vm78_vm0, %v3733_v62, %v3635_v2  ;;  %7815 = vpow2.f32 %v3852_v26 }
 0x61e   :  { %v6094_v9 = vadd.f32 -1.0, %v7814_v16 }
 0x620   :  { %v3882_v14 = vsel %vm3802_vm8, %v3786_v56, %v6094_v9 }
 0x621   :  { %7173 = vmatprep.mubr.f32.mxu0 %v3882_v14  ;;  %7229 = vmatprep.mubr.f32.mxu1 %v3882_v14  ;;  %v3699_v63 = vpop.permute.xlu1 %3698 }
 0x622   :  { %v3766_v19 = vsel %vm3751_vm6, %v3749_v11, %v3699_v63  ;;  %7174 = vmatmul.mubr.f32.gmra.mxu0 %v3883_v23  ;;  %7230 = vmatmul.mubr.f32.gmra.mxu1 %v3883_v23 }
 0x623   :  { %v3788_v49 = vadd.f32 %v10406_v1, %v3766_v19 }
 0x625   :  { %v3820_v5 = vmin.f32 %v3788_v49, 0.0  ;;  %vm3804_vm0 = vcmp.gt.f32.partialorder %v3788_v49, 0.0 }
 0x627   :  { %v3850_v36 = vmul.f32 1.442695, %v3820_v5 }
 0x629   :  { %7817 = vpow2.f32 %v3850_v36 }
 0x62a   :  { %v7816_v55 = vpop.eup %7815 }
 0x62b   :  { %v6097_v60 = vadd.f32 -1.0, %v7816_v55 }
 0x62d   :  { %v3885_v52 = vsel %vm3805_vm5, %v3789_v40, %v6097_v60 }
 0x636   :  { %v7818_v25 = vpop.eup %7817 }
 0x637   :  { %v6096_v47 = vadd.f32 -1.0, %v7818_v25 }
 0x639   :  { %v3884_v35 = vsel %vm3804_vm0, %v3788_v49, %v6096_v47 }
 0x63a   :  { %7176 = vmatprep.mubr.f32.mxu0 %v3884_v35  ;;  %7232 = vmatprep.mubr.f32.mxu1 %v3884_v35 }
 0x63b   :  { %7177 = vmatmul.mubr.f32.gmra.mxu0 %v3885_v52  ;;  %7233 = vmatmul.mubr.f32.gmra.mxu1 %v3885_v52 }
 0x692   :  { %v10579_v31 = vpop.f32.mrf.mxu1  ;;  %v10627_v57 = vpop.f32.mrf.mxu0 }
 0x693   :  { %4901 = vperm.xlu0 %7611, %v10579_v31   ;;  %4337 = vperm.xlu1 %7610, %v10579_v31   ;;  %v4242_v51 = vsel %vm3076_vm3, %v10579_v31, -inf }
 0x694   :  { %v10583_v1 = vpop.f32.mrf.mxu1  ;;  %v10633_v59 = vpop.f32.mrf.mxu0 }
 0x695   :  { %v4241_v41 = vsel %vm3076_vm3, %v10583_v1, -inf }
 0x697   :  { %7612 = vset.pattern.permute.xlu0 %v11701_v17 }
 0x698   :  { %4332 = vperm.xlu0 %7612, %v10583_v1  }
 0x69c   :  { %7613 = vset.pattern.permute.xlu0 %v7961_v42 }
 0x69d   :  { %4897 = vperm.xlu0 %7613, %v10583_v1  }
 0x69e   :  { %v10589_v58 = vpop.f32.mrf.mxu1  ;;  %v10635_v6 = vpop.f32.mrf.mxu0 }
 0x69f   :  { %v4244_v28 = vsel %vm3076_vm3, %v10589_v58, -inf }
 0x6a0   :  { %v10591_v50 = vpop.f32.mrf.mxu1  ;;  %v10637_v38 = vpop.f32.mrf.mxu0 }
 0x6a1   :  { %7614 = vset.pattern.permute.xlu0 %v11701_v17  ;;  %4342 = vperm.xlu1 %7610, %v10591_v50   ;;  %v4243_v10 = vsel %vm3076_vm3, %v10591_v50, -inf }
 0x6a2   :  { %4347 = vperm.xlu0 %7614, %v10589_v58  }
 0x6a6   :  { %7615 = vset.pattern.permute.xlu0 %v7961_v42 }
 0x6a7   :  { %4909 = vperm.xlu0 %7615, %v10589_v58  }
 0x6aa   :  { %v10598_v21 = vpop.f32.mrf.mxu1  ;;  %v10639_v39 = vpop.f32.mrf.mxu0 }
 0x6ab   :  { %4905 = vperm.xlu0 %7615, %v10591_v50   ;;  %4357 = vperm.xlu1 %7610, %v10598_v21   ;;  %v4247_v61 = vsel %vm3076_vm3, %v10598_v21, -inf }
 0x6ac   :  { %v10602_v32 = vpop.f32.mrf.mxu1  ;;  %v10641_v46 = vpop.f32.mrf.mxu0  ;;  %v4248_v30 = vmax.f32 %v4242_v51, %v4247_v61 }
 0x6ad   :  { %v4245_v34 = vsel %vm3076_vm3, %v10602_v32, -inf }
 0x6ae   :  { %v4246_v12 = vmax.f32 %v4241_v41, %v4245_v34 }
 0x6af   :  { %4917 = vperm.xlu0 %7615, %v10598_v21   ;;  %4352 = vperm.xlu1 %7610, %v10602_v32  }
 0x6b3   :  { %4913 = vperm.xlu0 %7615, %v10602_v32  }
 0x6b6   :  { %v10607_v22 = vpop.f32.mrf.mxu1  ;;  %v10645_v15 = vpop.f32.mrf.mxu0 }
 0x6b7   :  { %4925 = vperm.xlu0 %7615, %v10607_v22   ;;  %4367 = vperm.xlu1 %7610, %v10607_v22  }
 0x6b8   :  { %v10611_v37 = vpop.f32.mrf.mxu1  ;;  %v10651_v48 = vpop.f32.mrf.mxu0 }
 0x6b9   :  { %v4249_v8 = vsel %vm3076_vm3, %v10611_v37, -inf }
 0x6ba   :  { %v4250_v62 = vmax.f32 %v4243_v10, %v4249_v8 }
 0x6bb   :  { %4921 = vperm.xlu0 %7615, %v10611_v37   ;;  %4362 = vperm.xlu1 %7610, %v10611_v37  }
 0x6c2   :  { %v10615_v53 = vpop.f32.mrf.mxu1  ;;  %v10655_v20 = vpop.f32.mrf.mxu0 }
 0x6c3   :  { %4933 = vperm.xlu0 %7615, %v10615_v53   ;;  %4377 = vperm.xlu1 %7610, %v10615_v53   ;;  %v4255_v2 = vsel %vm3076_vm3, %v10615_v53, -inf }
 0x6c4   :  { %v10619_v4 = vpop.f32.mrf.mxu1  ;;  %v10658_v43 = vpop.f32.mrf.mxu0  ;;  %v4256_v19 = vmax.f32 %v4248_v30, %v4255_v2 }
 0x6c5   :  { %v4253_v45 = vsel %vm3076_vm3, %v10619_v4, -inf }
 0x6c6   :  { %v4254_v14 = vmax.f32 %v4246_v12, %v4253_v45 }
 0x6c7   :  { %4929 = vperm.xlu0 %7615, %v10619_v4   ;;  %4372 = vperm.xlu1 %7610, %v10619_v4  }
 0x6ce   :  { %v10623_v24 = vpop.f32.mrf.mxu1  ;;  %v10660_v7 = vpop.f32.mrf.mxu0 }
 0x6cf   :  { %4941 = vperm.xlu0 %7615, %v10623_v24   ;;  %4387 = vperm.xlu1 %7610, %v10623_v24   ;;  %v4259_v16 = vsel %vm3076_vm3, %v10623_v24, -inf }
 0x6d0   :  { %v10629_v0 = vpop.f32.mrf.mxu1  ;;  %v10662_v44 = vpop.f32.mrf.mxu0 }
 0x6d1   :  { %v4257_v33 = vsel %vm3076_vm3, %v10629_v0, -inf }
 0x6d2   :  { %v4258_v5 = vmax.f32 %v4250_v62, %v4257_v33 }
 0x6d3   :  { %4937 = vperm.xlu0 %7615, %v10629_v0   ;;  %4382 = vperm.xlu1 %7610, %v10629_v0  }
 0x6e2   :  { %v10643_v13 = vpop.f32.mrf.mxu1  ;;  %v10664_v18 = vpop.f32.mrf.mxu0 }
 0x6e3   :  { %4949 = vperm.xlu0 %7615, %v10643_v13   ;;  %4397 = vperm.xlu1 %7610, %v10643_v13   ;;  %v4263_v23 = vsel %vm3076_vm3, %v10643_v13, -inf }
 0x6e4   :  { %v10649_v56 = vpop.f32.mrf.mxu1  ;;  %v10684_v40 = vpop.f32.mrf.mxu0  ;;  %v4264_v47 = vmax.f32 %v4256_v19, %v4263_v23 }
 0x6e5   :  { %v4261_v3 = vsel %vm3076_vm3, %v10649_v56, -inf }
 0x6e6   :  { %v4262_v36 = vmax.f32 %v4254_v14, %v4261_v3 }
 0x6e7   :  { %4945 = vperm.xlu0 %7615, %v10649_v56   ;;  %4392 = vperm.xlu1 %7610, %v10649_v56  }
 0x6e8   :  { %v4269_v34 = vmax.f32 %v4262_v36, %v4264_v47 }
 0x6eb   :  { %7616 = vset.pattern.permute.xlu0 %v11701_v17  ;;  %v4251_v17 = vsel %vm3076_vm3, %v10607_v22, -inf }
 0x6ec   :  { %v4252_v9 = vmax.f32 %v4244_v28, %v4251_v17 }
 0x6ee   :  { %v4260_v49 = vmax.f32 %v4252_v9, %v4259_v16 }
 0x6fb   :  { %v10694_v11 = vpop.f32.mrf.mxu0  ;;  %v10696_v63 = vpop.f32.mrf.mxu1 }
 0x6fc   :  { %v4267_v26 = vsel %vm3076_vm3, %v10696_v63, -inf  ;;  %4407 = vperm.xlu0 %7616, %v10696_v63   ;;  %7235 = vmatprep.subr.mxu0 %v10694_v11 }
 0x6fd   :  { %v10704_v55 = vpop.f32.mrf.mxu0  ;;  %v10706_v25 = vpop.f32.mrf.mxu1  ;;  %7236 = vmatpush3.msra.mxu0 %v10694_v11  ;;  %v4268_v35 = vmax.f32 %v4260_v49, %v4267_v26 }
 0x6fe   :  { %v4265_v60 = vsel %vm3076_vm3, %v10706_v25, -inf  ;;  %7237 = vmatprep.subr.mxu0 %v10704_v55 }
 0x6ff   :  { %v4266_v52 = vmax.f32 %v4258_v5, %v4265_v60  ;;  %7238 = vmatpush3.msra.mxu0 %v10704_v55 }
 0x700   :  { %4402 = vperm.xlu0 %7616, %v10706_v25   ;;  %7239 = vmatprep.subr.mxu0 %v10664_v18 }
 0x701   :  { %v4270_v41 = vmax.f32 %v4266_v52, %v4268_v35  ;;  %7240 = vmatpush3.msra.mxu0 %v10664_v18 }
 0x702   :  { %7241 = vmatprep.subr.mxu0 %v10684_v40 }
 0x703   :  { %7242 = vmatpush3.msra.mxu0 %v10684_v40  ;;  %v4271_v61 = vmax.f32 %v4269_v34, %v4270_v41 }
 0x704   :  { %7243 = vmatprep.subr.mxu0 %v10660_v7 }
 0x705   :  { %7244 = vmatpush3.msra.mxu0 %v10660_v7  ;;  %v4272_v17 = vrot.slane %v4271_v61, 4 }
 0x706   :  { %7245 = vmatprep.subr.mxu0 %v10662_v44 }
 0x707   :  { %7246 = vmatpush3.msra.mxu0 %v10662_v44  ;;  %v4273_v8 = vmax.f32 %v4271_v61, %v4272_v17 }
 0x708   :  { %7247 = vmatprep.subr.mxu0 %v10655_v20 }
 0x709   :  { %7248 = vmatpush3.msra.mxu0 %v10655_v20  ;;  %v4274_v45 = vrot.slane %v4273_v8, 2 }
 0x70a   :  { %7249 = vmatprep.subr.mxu0 %v10658_v43 }
 0x70b   :  { %7250 = vmatpush3.msra.mxu0 %v10658_v43  ;;  %v4275_v51 = vmax.f32 %v4273_v8, %v4274_v45 }
 0x70c   :  { %7251 = vmatprep.subr.mxu0 %v10645_v15 }
 0x70d   :  { %7252 = vmatpush3.msra.mxu0 %v10645_v15  ;;  %v4276_v28 = vrot.slane %v4275_v51, 1 }
 0x70e   :  { %7253 = vmatprep.subr.mxu0 %v10651_v48  ;;  %v10747_v12 = vpop.permute.xlu1 %4337 }
 0x70f   :  { %7254 = vmatpush3.msra.mxu0 %v10651_v48  ;;  %v4277_v10 = vmax.f32 %v4275_v51, %v4276_v28 }
 0x710   :  { %7255 = vmatprep.subr.mxu0 %v10639_v39 }
 0x711   :  { %4279 = vrot.lane.b32.xlu1 %v4277_v10, %s7957_s22  ;;  %7256 = vmatpush3.msra.mxu0 %v10639_v39 }
 0x712   :  { %7257 = vmatprep.subr.mxu0 %v10641_v46 }
 0x713   :  { %7258 = vmatpush3.msra.mxu0 %v10641_v46 }
 0x714   :  { %7259 = vmatprep.subr.mxu0 %v10635_v6 }
 0x715   :  { %7260 = vmatpush3.msra.mxu0 %v10635_v6 }
 0x716   :  { %7261 = vmatprep.subr.mxu0 %v10637_v38 }
 0x717   :  { %7262 = vmatpush3.msra.mxu0 %v10637_v38 }
 0x718   :  { %7263 = vmatprep.subr.mxu0 %v10627_v57 }
 0x719   :  { %7264 = vmatpush3.msra.mxu0 %v10627_v57 }
 0x71a   :  { %7265 = vmatprep.subr.mxu0 %v10633_v59 }
 0x71b   :  { %7266 = vmatpush3.msra.mxu0 %v10633_v59 }
 0x71c   :  { %v10750_v2 = vpop.permute.xlu1 %4342 }
 0x726   :  { %v10753_v16 = vpop.permute.xlu1 %4357 }
 0x72a   :  { %v10757_v33 = vpop.permute.xlu1 %4352 }
 0x732   :  { %v10760_v3 = vpop.permute.xlu1 %4367 }
 0x736   :  { %v10763_v30 = vpop.permute.xlu1 %4362 }
 0x73a   :  { %4209 = vxpose.xlu1.b32.start [1/16] (narrow) %v10583_v1, 8 }
 0x73e   :  { %4210 = vxpose.xlu1.b32.cont [2/16] (narrow) %v10579_v31, 8  ;;  %v10766_v9 = vpop.permute.xlu1 %4377 }
 0x742   :  { %4211 = vxpose.xlu1.b32.cont [3/16] (narrow) %v10591_v50, 8  ;;  %v10770_v62 = vpop.permute.xlu1 %4372 }
 0x746   :  { %4212 = vxpose.xlu1.b32.cont [4/16] (narrow) %v10589_v58, 8 }
 0x74a   :  { %4213 = vxpose.xlu1.b32.cont [5/16] (narrow) %v10602_v32, 8  ;;  %v10773_v14 = vpop.permute.xlu1 %4387 }
 0x74e   :  { %4214 = vxpose.xlu1.b32.cont [6/16] (narrow) %v10598_v21, 8  ;;  %v10776_v23 = vpop.permute.xlu1 %4382 }
 0x752   :  { %4215 = vxpose.xlu1.b32.cont [7/16] (narrow) %v10611_v37, 8 }
 0x756   :  { %4216 = vxpose.xlu1.b32.cont [8/16] (narrow) %v10607_v22, 8 }
 0x75a   :  { %4217 = vxpose.xlu1.b32.cont [9/16] (narrow) %v10619_v4, 8 }
 0x75e   :  { %4218 = vxpose.xlu1.b32.cont [10/16] (narrow) %v10615_v53, 8  ;;  %v10779_v26 = vpop.permute.xlu1 %4397 }
 0x762   :  { %4219 = vxpose.xlu1.b32.cont [11/16] (narrow) %v10629_v0, 8  ;;  %v10781_v19 = vpop.permute.xlu1 %4392 }
 0x766   :  { %4220 = vxpose.xlu1.b32.cont [12/16] (narrow) %v10623_v24, 8 }
 0x76a   :  { %4221 = vxpose.xlu1.b32.cont [13/16] (narrow) %v10649_v56, 8 }
 0x76e   :  { %4222 = vxpose.xlu1.b32.cont [14/16] (narrow) %v10643_v13, 8 }
 0x772   :  { %4223 = vxpose.xlu1.b32.cont [15/16] (narrow) %v10706_v25, 8 }
 0x776   :  { %4224 = vxpose.xlu1.b32.end [16/16] (narrow) %v10696_v63, 8 }
 0x783   :  { %v10783_v49 = vpop.permute.xlu1 %4279 }
 0x784   :  { %v4282_v5 = vadd.f32 %v10783_v49, %v10583_v1  ;;  %v4283_v36 = vadd.f32 %v10579_v31, %v10783_v49  ;;  %v4284_v52 = vadd.f32 %v10783_v49, %v10591_v50  ;;  %v4285_v34 = vadd.f32 %v10589_v58, %v10783_v49 }
 0x785   :  { %v4289_v31 = vadd.f32 %v10607_v22, %v10783_v49  ;;  %v4286_v8 = vadd.f32 %v10783_v49, %v10602_v32  ;;  %v4290_v58 = vadd.f32 %v10783_v49, %v10619_v4  ;;  %v4287_v28 = vadd.f32 %v10598_v21, %v10783_v49 }
 0x786   :  { %v4298_v60 = vmul.f32 0.2, %v4282_v5  ;;  %v4299_v35 = vmul.f32 0.2, %v4283_v36  ;;  %v4300_v61 = vmul.f32 0.2, %v4284_v52  ;;  %v4291_v32 = vadd.f32 %v10615_v53, %v10783_v49 }
 0x787   :  { %v4301_v1 = vmul.f32 0.2, %v4285_v34  ;;  %v4305_v45 = vmul.f32 0.2, %v4289_v31  ;;  %v4302_v51 = vmul.f32 0.2, %v4286_v8  ;;  %v4292_v21 = vadd.f32 %v10783_v49, %v10629_v0 }
 0x788   :  { %v10789_v47 = vmax.f32 %v4282_v5, %v4298_v60  ;;  %v10796_v41 = vmax.f32 %v4283_v36, %v4299_v35  ;;  %v10801_v17 = vmax.f32 %v4284_v52, %v4300_v61  ;;  %v4306_v10 = vmul.f32 0.2, %v4290_v58 }
 0x789   :  { %v4317_v50 = vmax.f32 %v4285_v34, %v4301_v1  ;;  %v4321_v22 = vmax.f32 %v4289_v31, %v4305_v45  ;;  %v10813_v5 = vmax.f32 %v4286_v8, %v4302_v51  ;;  %v4303_v36 = vmul.f32 0.2, %v4287_v28 }
 0x78a   :  { %4480 = vperm.xlu0 %7616, %v10789_v47   ;;  %v4288_v60 = vadd.f32 %v10783_v49, %v10611_v37  ;;  %v4322_v4 = vmax.f32 %v4290_v58, %v4306_v10  ;;  %v4307_v35 = vmul.f32 0.2, %v4291_v32  ;;  %v4308_v53 = vmul.f32 0.2, %v4292_v21  ;;  %v10822_v37 = vpop.permute.xlu0 %4901 }
 0x78b   :  { %v4319_v52 = vmax.f32 %v4287_v28, %v4303_v36  ;;  %v4293_v1 = vadd.f32 %v10623_v24, %v10783_v49  ;;  %v4295_v45 = vadd.f32 %v10643_v13, %v10783_v49  ;;  %v4297_v51 = vadd.f32 %v10696_v63, %v10783_v49 }
 0x78c   :  { %v4304_v34 = vmul.f32 0.2, %v4288_v60  ;;  %v4323_v61 = vmax.f32 %v4291_v32, %v4307_v35  ;;  %v4324_v8 = vmax.f32 %v4292_v21, %v4308_v53  ;;  %v4294_v13 = vadd.f32 %v10783_v49, %v10649_v56 }
 0x78d   :  { %v4311_v58 = vmul.f32 0.2, %v4295_v45  ;;  %v4313_v10 = vmul.f32 0.2, %v4297_v51  ;;  %v4296_v35 = vadd.f32 %v10783_v49, %v10706_v25 }
 0x78e   :  { %4485 = vperm.xlu0 %7616, %v10796_v41   ;;  %v4320_v31 = vmax.f32 %v4288_v60, %v4304_v34  ;;  %v4333_v28 = vpop.permute.xlu0 %4332 }
 0x78f   :  { %v4327_v24 = vmax.f32 %v4295_v45, %v4311_v58  ;;  %v4329_v36 = vmax.f32 %v4297_v51, %v4313_v10  ;;  %v4312_v21 = vmul.f32 0.2, %v4296_v35  ;;  %v10926_v58 = vld [vmem:[%s11529_s1 + $0x8] sm:$0xff] }
 0x791   :  { %v4328_v34 = vmax.f32 %v4296_v35, %v4312_v21 }
 0x792   :  { %4490 = vperm.xlu0 %7616, %v10801_v17   ;;  %v10828_v32 = vpop.permute.xlu0 %4897 }
 0x794   :  { %7618 = vset.pattern.permute.xlu1 %v7961_v42 }
 0x795   :  { %5041 = vperm.xlu1 %7618, %v4317_v50  }
 0x796   :  { %4495 = vperm.xlu0 %7616, %v4317_v50   ;;  %v4309_v50 = vmul.f32 0.2, %v4293_v1  ;;  %v10832_v60 = vpop.permute.xlu0 %4347 }
 0x798   :  { %v4325_v0 = vmax.f32 %v4293_v1, %v4309_v50 }
 0x799   :  { %5057 = vperm.xlu1 %7618, %v4321_v22  }
 0x79a   :  { %4500 = vperm.xlu0 %7616, %v10813_v5   ;;  %v10841_v56 = vpop.permute.xlu0 %4909 }
 0x79d   :  { %5061 = vperm.xlu1 %7618, %v4322_v4  }
 0x79e   :  { %4505 = vperm.xlu0 %7616, %v4319_v52  }
 0x7a1   :  { %5065 = vperm.xlu1 %7618, %v4323_v61  }
 0x7a2   :  { %4510 = vperm.xlu0 %7616, %v4320_v31  }
 0x7a5   :  { %5069 = vperm.xlu1 %7618, %v4324_v8  }
 0x7a6   :  { %4515 = vperm.xlu0 %7616, %v4321_v22   ;;  %v4310_v22 = vmul.f32 0.2, %v4294_v13 }
 0x7a9   :  { %5073 = vperm.xlu1 %7618, %v4325_v0  }
 0x7aa   :  { %4520 = vperm.xlu0 %7616, %v4322_v4   ;;  %v4326_v4 = vmax.f32 %v4294_v13, %v4310_v22 }
 0x7ad   :  { %5081 = vperm.xlu1 %7618, %v4327_v24  }
 0x7ae   :  { %4525 = vperm.xlu0 %7616, %v4323_v61  }
 0x7b1   :  { %5089 = vperm.xlu1 %7618, %v4329_v36  }
 0x7b2   :  { %4530 = vperm.xlu0 %7616, %v4324_v8  }
 0x7b5   :  { %5184 = vrot.lane.b32.xlu1 %v10704_v55, %s7963_s4  ;;  %v10845_v55 = vpop.permute.xlu0 %4905 }
 0x7b6   :  { %4535 = vperm.xlu0 %7616, %v4325_v0   ;;  %7619 = vset.pattern.permute.xlu1 %v7962_v54 }
 0x7b9   :  { %5180 = vrot.lane.b32.xlu1 %v10684_v40, %s7963_s4  ;;  %v10851_v40 = vpop.permute.xlu0 %4917 }
 0x7ba   :  { %4540 = vperm.xlu0 %7616, %v4326_v4  }
 0x7bd   :  { %5176 = vrot.lane.b32.xlu1 %v10662_v44, %s7963_s4  ;;  %v10857_v44 = vpop.permute.xlu0 %4913 }
 0x7be   :  { %4545 = vperm.xlu0 %7616, %v4327_v24  }
 0x7c1   :  { %5172 = vrot.lane.b32.xlu1 %v10658_v43, %s7963_s4 }
 0x7c2   :  { %4550 = vperm.xlu0 %7616, %v4328_v34  }
 0x7c5   :  { %5168 = vrot.lane.b32.xlu1 %v10651_v48, %s7963_s4  ;;  %v10864_v48 = vpop.permute.xlu0 %4925 }
 0x7c6   :  { %4555 = vperm.xlu0 %7616, %v4329_v36  }
 0x7c9   :  { %5164 = vrot.lane.b32.xlu1 %v10641_v46, %s7963_s4  ;;  %v10868_v46 = vpop.permute.xlu0 %4921 }
 0x7ca   :  { %7617 = vset.pattern.permute.xlu0 %v7961_v42 }
 0x7cb   :  { %5029 = vperm.xlu0 %7617, %v10789_v47   ;;  %v10882_v47 = vpop.trf.xlu1 }
 0x7cd   :  { %5160 = vrot.lane.b32.xlu1 %v10637_v38, %s7963_s4  ;;  %v10870_v42 = vpop.permute.xlu0 %4933 }
 0x7cf   :  { %5033 = vperm.xlu0 %7617, %v10796_v41   ;;  %v11709_v41 = vld [vmem:[#allocation56_spill] sm:$0xff] }
 0x7d1   :  { %5156 = vrot.lane.b32.xlu1 %v10633_v59, %s7963_s4  ;;  %v10872_v43 = vpop.permute.xlu0 %4929 }
 0x7d3   :  { %5037 = vperm.xlu0 %7617, %v10801_v17   ;;  %v11710_v17 = vsub.s32 0, %v11709_v41 }
 0x7d5   :  { %v10875_v38 = vpop.permute.xlu0 %4941 }
 0x7d7   :  { %5045 = vperm.xlu0 %7617, %v10813_v5   ;;  %v10889_v5 = vrot.slane %v10882_v47, %v11710_v17  ;;  %v10944_v17 = vld [vmem:[%s11529_s1 + $0x18] sm:$0xff] }
 0x7d9   :  { %v10878_v59 = vpop.permute.xlu0 %4937  ;;  %v4415_v61 = vadd.f32 %v10889_v5, %v10747_v12 }
 0x7db   :  { %5049 = vperm.xlu0 %7617, %v4319_v52   ;;  %v4431_v1 = vmul.f32 0.2, %v4415_v61 }
 0x7dd   :  { %v10880_v49 = vpop.permute.xlu0 %4949  ;;  %v4447_v8 = vmax.f32 %v4415_v61, %v4431_v1  ;;  %v4420_v61 = vadd.f32 %v10889_v5, %v10763_v30 }
 0x7df   :  { %5053 = vperm.xlu0 %7617, %v4320_v31   ;;  %v4416_v31 = vadd.f32 %v10889_v5, %v10750_v2  ;;  %v4463_v51 = vadd.f32 %v10926_v58, %v4447_v8  ;;  %v4436_v8 = vmul.f32 0.2, %v4420_v61 }
 0x7e1   :  { %v4432_v50 = vmul.f32 0.2, %v4416_v31 }
 0x7e3   :  { %4953 = vperm.xlu0 %7617, %v10706_v25   ;;  %v10892_v25 = vpop.permute.xlu0 %4945 }
 0x7e7   :  { %4957 = vperm.xlu0 %7617, %v10696_v63   ;;  %v4414_v63 = vadd.f32 %v10889_v5, %v4333_v28  ;;  %v10897_v52 = vpop.permute.xlu0 %4407  ;;  %v4448_v28 = vmax.f32 %v4416_v31, %v4432_v50  ;;  %v4421_v50 = vadd.f32 %v10889_v5, %v10760_v3 }
 0x7eb   :  { %5077 = vperm.xlu0 %7617, %v4326_v4   ;;  %v4419_v4 = vadd.f32 %v10889_v5, %v10753_v16 }
 0x7ef   :  { %5085 = vperm.xlu0 %7617, %v4328_v34  }
 0x7f3   :  { %5186 = vrot.lane.b32.xlu0 %v10694_v11, %s7963_s4  ;;  %v4430_v11 = vmul.f32 0.2, %v4414_v63 }
 0x7f4   :  { %7620 = vset.pattern.permute.xlu0 %v11700_v29 }
 0x7f5   :  { %v4446_v53 = vmax.f32 %v4414_v63, %v4430_v11  ;;  %v4435_v11 = vmul.f32 0.2, %v4419_v4 }
 0x7f7   :  { %5182 = vrot.lane.b32.xlu0 %v10664_v18, %s7963_s4  ;;  %v10907_v18 = vpop.permute.xlu0 %4402 }
 0x7fb   :  { %5178 = vrot.lane.b32.xlu0 %v10660_v7, %s7963_s4  ;;  %v10914_v7 = vld [vmem:[%s11529_s1] sm:$0xff] }
 0x7fc   :  { %v4462_v12 = vadd.f32 %v10914_v7, %v4446_v53 }
 0x7ff   :  { %5174 = vrot.lane.b32.xlu0 %v10655_v20, %s7963_s4  ;;  %v4417_v20 = vadd.f32 %v10889_v5, %v10832_v60 }
 0x801   :  { %v4433_v24 = vmul.f32 0.2, %v4417_v20 }
 0x803   :  { %5170 = vrot.lane.b32.xlu0 %v10645_v15, %s7963_s4  ;;  %v4418_v15 = vadd.f32 %v10889_v5, %v10757_v33  ;;  %v10934_v33 = vld [vmem:[%s11529_s1 + $0x10] sm:$0xff]  ;;  %v4449_v60 = vmax.f32 %v4417_v20, %v4433_v24  ;;  %v4437_v24 = vmul.f32 0.2, %v4421_v50 }
 0x804   :  { %v4464_v22 = vadd.f32 %v10934_v33, %v4448_v28  ;;  %v4452_v28 = vmax.f32 %v4420_v61, %v4436_v8 }
 0x805   :  { %v4481_v45 = vpop.permute.xlu0 %4480  ;;  %v4465_v63 = vadd.f32 %v10944_v17, %v4449_v60  ;;  %v4453_v60 = vmax.f32 %v4421_v50, %v4437_v24 }
 0x806   :  { %v4558_v0 = vsub.f32 %v4462_v12, %v4481_v45  ;;  %v4451_v12 = vmax.f32 %v4419_v4, %v4435_v11  ;;  %v4423_v4 = vadd.f32 %v10889_v5, %v10766_v9  ;;  %v10979_v11 = vld [vmem:[%s11529_s1 + $0x38] sm:$0xff] }
 0x807   :  { %5166 = vrot.lane.b32.xlu0 %v10639_v39, %s7963_s4  ;;  %v4434_v39 = vmul.f32 0.2, %v4418_v15  ;;  %v4469_v9 = vadd.f32 %v10979_v11, %v4453_v60  ;;  %v11014_v60 = vld [vmem:[%s11529_s1 + $0x50] sm:$0xff] }
 0x808   :  { %v4574_v2 = vmul.f32 1.442695, %v4558_v0  ;;  %v4422_v0 = vadd.f32 %v10889_v5, %v10770_v62  ;;  %v10968_v62 = vld [vmem:[%s11529_s1 + $0x30] sm:$0xff]  ;;  %v4439_v61 = vmul.f32 0.2, %v4423_v4 }
 0x809   :  { %v4486_v10 = vpop.permute.xlu0 %4485 }
 0x80a   :  { %7819 = vpow2.f32 %v4574_v2  ;;  %v4559_v36 = vsub.f32 %v4463_v51, %v4486_v10  ;;  %v10962_v2 = vld [vmem:[%s11529_s1 + $0x28] sm:$0xff] }
 0x80b   :  { %5162 = vrot.lane.b32.xlu0 %v10635_v6, %s7963_s4  ;;  %v4450_v6 = vmax.f32 %v4418_v15, %v4434_v39  ;;  %v4467_v51 = vadd.f32 %v10962_v2, %v4451_v12  ;;  %v4438_v39 = vmul.f32 0.2, %v4422_v0  ;;  %v10989_v12 = vld [vmem:[%s11529_s1 + $0x40] sm:$0xff] }
 0x80c   :  { %v4576_v13 = vmul.f32 1.442695, %v4559_v36 }
 0x80d   :  { %v4491_v35 = vpop.permute.xlu0 %4490 }
 0x80e   :  { %7821 = vpow2.f32 %v4576_v13  ;;  %v4560_v21 = vsub.f32 %v4464_v22, %v4491_v35  ;;  %v4468_v22 = vadd.f32 %v10968_v62, %v4452_v28 }
 0x80f   :  { %5158 = vrot.lane.b32.xlu0 %v10627_v57, %s7963_s4  ;;  %v10952_v57 = vld [vmem:[%s11529_s1 + $0x20] sm:$0xff] }
 0x810   :  { %v4578_v34 = vmul.f32 1.442695, %v4560_v21  ;;  %v4466_v1 = vadd.f32 %v10952_v57, %v4450_v6 }
 0x811   :  { %v4496_v16 = vpop.permute.xlu0 %4495 }
 0x812   :  { %7823 = vpow2.f32 %v4578_v34  ;;  %v4561_v53 = vsub.f32 %v4465_v63, %v4496_v16  ;;  %v4454_v34 = vmax.f32 %v4422_v0, %v4438_v39  ;;  %v4424_v16 = vadd.f32 %v10889_v5, %v10776_v23 }
 0x813   :  { %v4455_v23 = vmax.f32 %v4423_v4, %v4439_v61  ;;  %v11025_v61 = vld [vmem:[%s11529_s1 + $0x58] sm:$0xff] }
 0x814   :  { %v4580_v31 = vmul.f32 1.442695, %v4561_v53  ;;  %v4470_v8 = vadd.f32 %v10989_v12, %v4454_v34 }
 0x815   :  { %v4501_v20 = vpop.permute.xlu0 %4500 }
 0x816   :  { %7825 = vpow2.f32 %v4580_v31  ;;  %v4562_v45 = vsub.f32 %v4466_v1, %v4501_v20  ;;  %v4440_v20 = vmul.f32 0.2, %v4424_v16 }
 0x817   :  { %v7820_v30 = vpop.eup %7819 }
 0x818   :  { %v4582_v15 = vmul.f32 1.442695, %v4562_v45  ;;  %7267 = vmatprep.mubr.f32.mxu0 %v7820_v30  ;;  %7323 = vmatprep.mubr.f32.mxu1 %v7820_v30  ;;  %v4425_v45 = vadd.f32 %v10889_v5, %v10773_v14  ;;  %v11003_v14 = vld [vmem:[%s11529_s1 + $0x48] sm:$0xff] }
 0x819   :  { %v4506_v3 = vpop.permute.xlu0 %4505  ;;  %v4471_v24 = vadd.f32 %v11003_v14, %v4455_v23  ;;  %v4429_v23 = vadd.f32 %v10889_v5, %v10897_v52 }
 0x81a   :  { %7827 = vpow2.f32 %v4582_v15  ;;  %v4563_v10 = vsub.f32 %v4467_v51, %v4506_v3  ;;  %v4426_v51 = vadd.f32 %v10889_v5, %v10781_v19  ;;  %v4456_v3 = vmax.f32 %v4424_v16, %v4440_v20 }
 0x81b   :  { %v7822_v36 = vpop.eup %7821 }
 0x81c   :  { %v4584_v13 = vmul.f32 1.442695, %v4563_v10  ;;  %7268 = vmatmul.mubr.f32.vlgmr.msra.gmra.mxu0 %v7822_v36  ;;  %7324 = vmatmul.mubr.f32.vlgmr.msra.gmra.mxu1 %v7822_v36  ;;  %v4441_v10 = vmul.f32 0.2, %v4425_v45  ;;  %v4472_v4 = vadd.f32 %v11014_v60, %v4456_v3 }
 0x81d   :  { %v4511_v35 = vpop.permute.xlu0 %4510  ;;  %7404 = vmatpush3.msra.mxu1 %v11634_v27 }
 0x81e   :  { %7829 = vpow2.f32 %v4584_v13  ;;  %v4564_v21 = vsub.f32 %v4468_v22, %v4511_v35  ;;  %7405 = vmatprep.subr.mxu1 %v11634_v27  ;;  %v4427_v13 = vadd.f32 %v10889_v5, %v10779_v26  ;;  %v4457_v35 = vmax.f32 %v4425_v45, %v4441_v10  ;;  %v11038_v45 = vld [vmem:[%s11529_s1 + $0x60] sm:$0xff] }
 0x81f   :  { %v7824_v6 = vpop.eup %7823  ;;  %7406 = vmatpush3.msra.mxu1 %v11634_v27 }
 0x820   :  { %v4586_v63 = vmul.f32 1.442695, %v4564_v21  ;;  %7270 = vmatprep.mubr.f32.mxu0 %v7824_v6  ;;  %7326 = vmatprep.mubr.f32.mxu1 %v7824_v6  ;;  %v4442_v21 = vmul.f32 0.2, %v4426_v51  ;;  %v4473_v16 = vadd.f32 %v11025_v61, %v4457_v35 }
 0x821   :  { %v4516_v53 = vpop.permute.xlu0 %4515  ;;  %7407 = vmatprep.subr.mxu1 %v11634_v27 }
 0x822   :  { %7831 = vpow2.f32 %v4586_v63  ;;  %v4565_v1 = vsub.f32 %v4469_v9, %v4516_v53  ;;  %7408 = vmatpush3.msra.mxu1 %v11634_v27  ;;  %v4428_v63 = vadd.f32 %v10889_v5, %v10907_v18  ;;  %v4458_v53 = vmax.f32 %v4426_v51, %v4442_v21  ;;  %v11065_v21 = vld [vmem:[%s11529_s1 + $0x70] sm:$0xff] }
 0x823   :  { %v7826_v31 = vpop.eup %7825  ;;  %7409 = vmatprep.subr.mxu1 %v11634_v27  ;;  %v11711_v51 = vsub.s32 1, %v11709_v41 }
 0x824   :  { %v4588_v50 = vmul.f32 1.442695, %v4565_v1  ;;  %7271 = vmatmul.mubr.f32.gmra.mxu0 %v7826_v31  ;;  %7327 = vmatmul.mubr.f32.gmra.mxu1 %v7826_v31  ;;  %v4443_v1 = vmul.f32 0.2, %v4427_v13 }
 0x825   :  { %v4521_v30 = vpop.permute.xlu0 %4520  ;;  %7410 = vmatpush3.msra.mxu1 %v11634_v27 }
 0x826   :  { %7833 = vpow2.f32 %v4588_v50  ;;  %v4566_v0 = vsub.f32 %v4470_v8, %v4521_v30  ;;  %7411 = vmatprep.subr.mxu1 %v11634_v27  ;;  %v11029_v8 = vpop.permute.xlu1 %5041  ;;  %v4474_v30 = vadd.f32 %v11038_v45, %v4458_v53 }
 0x827   :  { %v7828_v15 = vpop.eup %7827  ;;  %7412 = vmatpush3.msra.mxu1 %v11634_v27 }
 0x828   :  { %v4590_v28 = vmul.f32 1.442695, %v4566_v0  ;;  %7273 = vmatprep.mubr.f32.mxu0 %v7828_v15  ;;  %7329 = vmatprep.mubr.f32.mxu1 %v7828_v15  ;;  %v4459_v0 = vmax.f32 %v4427_v13, %v4443_v1  ;;  %v4444_v15 = vmul.f32 0.2, %v4428_v63 }
 0x829   :  { %v4526_v36 = vpop.permute.xlu0 %4525  ;;  %7413 = vmatprep.subr.mxu1 %v11634_v27 }
 0x82a   :  { %7835 = vpow2.f32 %v4590_v28  ;;  %v4567_v39 = vsub.f32 %v4471_v24, %v4526_v36  ;;  %7414 = vmatpush3.msra.mxu1 %v11634_v27  ;;  %v11044_v28 = vrot.slane %v10882_v47, %v11711_v51  ;;  %v11049_v3 = vpop.permute.xlu1 %5057  ;;  %v11054_v47 = vld [vmem:[%s11529_s1 + $0x68] sm:$0xff]  ;;  %v4460_v36 = vmax.f32 %v4428_v63, %v4444_v15 }
 0x82b   :  { %v7830_v19 = vpop.eup %7829  ;;  %7415 = vmatprep.subr.mxu1 %v11634_v27  ;;  %v4475_v41 = vadd.f32 %v11054_v47, %v4459_v0 }
 0x82c   :  { %v4592_v22 = vmul.f32 1.442695, %v4567_v39  ;;  %7274 = vmatmul.mubr.f32.gmra.mxu0 %v7830_v19  ;;  %7330 = vmatmul.mubr.f32.gmra.mxu1 %v7830_v19  ;;  %v4445_v39 = vmul.f32 0.2, %v4429_v23  ;;  %v4964_v13 = vadd.f32 %v11044_v28, %v10828_v32  ;;  %v4965_v63 = vadd.f32 %v11044_v28, %v10822_v37  ;;  %v11080_v37 = vld [vmem:[%s11529_s1 + $0x78] sm:$0xff]  ;;  %s7964_s1 = smov 16  }
 0x82d   :  { %v4531_v6 = vpop.permute.xlu0 %4530  ;;  %7416 = vmatpush3.msra.mxu1 %v11634_v27 }
 0x82e   :  { %7837 = vpow2.f32 %v4592_v22  ;;  %v4568_v34 = vsub.f32 %v4472_v4, %v4531_v6  ;;  %7417 = vmatprep.subr.mxu1 %v11634_v27  ;;  %v4476_v6 = vadd.f32 %v11065_v21, %v4460_v36  ;;  %v4461_v32 = vmax.f32 %v4429_v23, %v4445_v39 }
 0x82f   :  { %v7832_v26 = vpop.eup %7831  ;;  %7418 = vmatpush3.msra.mxu1 %v11634_v27  ;;  %v4981_v23 = vmul.f32 0.2, %v4965_v63 }
 0x830   :  { %v4594_v9 = vmul.f32 1.442695, %v4568_v34  ;;  %7276 = vmatprep.mubr.f32.mxu0 %v7832_v26  ;;  %7332 = vmatprep.mubr.f32.mxu1 %v7832_v26  ;;  %v4980_v26 = vmul.f32 0.2, %v4964_v13 }
 0x831   :  { %v4536_v31 = vpop.permute.xlu0 %4535  ;;  %7419 = vmatprep.subr.mxu1 %v11634_v27 }
 0x832   :  { %7839 = vpow2.f32 %v4594_v9  ;;  %v4569_v18 = vsub.f32 %v4473_v16, %v4536_v31  ;;  %7420 = vmatpush3.msra.mxu1 %v11634_v27  ;;  %v4967_v9 = vadd.f32 %v11044_v28, %v10841_v56  ;;  %v11073_v16 = vpop.permute.xlu1 %5061 }
 0x833   :  { %v7834_v50 = vpop.eup %7833  ;;  %7421 = vmatprep.subr.mxu1 %v11634_v27 }
 0x834   :  { %v4596_v20 = vmul.f32 1.442695, %v4569_v18  ;;  %7277 = vmatmul.mubr.f32.gmra.mxu0 %v7834_v50  ;;  %7333 = vmatmul.mubr.f32.gmra.mxu1 %v7834_v50  ;;  %v4477_v18 = vadd.f32 %v11080_v37, %v4461_v32  ;;  %v4996_v50 = vmax.f32 %v4964_v13, %v4980_v26  ;;  %v4969_v13 = vadd.f32 %v11044_v28, %v10851_v40 }
 0x835   :  { %v4541_v5 = vpop.permute.xlu0 %4540  ;;  %7422 = vmatpush3.msra.mxu1 %v11634_v27  ;;  %v4972_v26 = vadd.f32 %v11044_v28, %v10872_v43 }
 0x836   :  { %7841 = vpow2.f32 %v4596_v20  ;;  %v4570_v52 = vsub.f32 %v4474_v30, %v4541_v5  ;;  %7423 = vmatprep.subr.mxu1 %v11634_v27  ;;  %v4966_v20 = vadd.f32 %v11044_v28, %v10845_v55  ;;  %v4983_v30 = vmul.f32 0.2, %v4967_v9  ;;  %v11088_v51 = vpop.permute.xlu1 %5065 }
 0x837   :  { %v7836_v24 = vpop.eup %7835  ;;  %7424 = vmatpush3.msra.mxu1 %v11634_v27  ;;  %v4968_v55 = vadd.f32 %v11044_v28, %v10857_v44 }
 0x838   :  { %v4598_v10 = vmul.f32 1.442695, %v4570_v52  ;;  %7279 = vmatprep.mubr.f32.mxu0 %v7836_v24  ;;  %7335 = vmatprep.mubr.f32.mxu1 %v7836_v24  ;;  %v5012_v52 = vadd.f32 %v10914_v7, %v4996_v50  ;;  %v4997_v24 = vmax.f32 %v4965_v63, %v4981_v23 }
 0x839   :  { %v4546_v19 = vpop.permute.xlu0 %4545  ;;  %7425 = vmatprep.subr.mxu1 %v11634_v27 }
 0x83a   :  { %7843 = vpow2.f32 %v4598_v10  ;;  %v4571_v22 = vsub.f32 %v4475_v41, %v4546_v19  ;;  %7426 = vmatpush3.msra.mxu1 %v11634_v27  ;;  %v4982_v10 = vmul.f32 0.2, %v4966_v20  ;;  %v4999_v41 = vmax.f32 %v4967_v9, %v4983_v30  ;;  %v11100_v44 = vpop.permute.xlu1 %5069 }
 0x83b   :  { %v7838_v4 = vpop.eup %7837  ;;  %7427 = vmatprep.subr.mxu1 %v11634_v27  ;;  %v5013_v7 = vadd.f32 %v10926_v58, %v4997_v24  ;;  %v4970_v58 = vadd.f32 %v11044_v28, %v10868_v46 }
 0x83c   :  { %v4600_v35 = vmul.f32 1.442695, %v4571_v22  ;;  %7280 = vmatmul.mubr.f32.gmra.mxu0 %v7838_v4  ;;  %7336 = vmatmul.mubr.f32.gmra.mxu1 %v7838_v4  ;;  %v4998_v4 = vmax.f32 %v4966_v20, %v4982_v10 }
 0x83d   :  { %v4551_v34 = vpop.permute.xlu0 %4550  ;;  %7428 = vmatpush3.msra.mxu1 %v11634_v27 }
 0x83e   :  { %7845 = vpow2.f32 %v4600_v35  ;;  %v4572_v53 = vsub.f32 %v4476_v6, %v4551_v34  ;;  %7429 = vmatprep.subr.mxu1 %v11634_v27  ;;  %v4984_v35 = vmul.f32 0.2, %v4968_v55  ;;  %v5015_v6 = vadd.f32 %v10944_v17, %v4999_v41  ;;  %v11112_v20 = vpop.permute.xlu1 %5073 }
 0x83f   :  { %v7840_v1 = vpop.eup %7839  ;;  %7430 = vmatpush3.msra.mxu1 %v11634_v27  ;;  %v5014_v9 = vadd.f32 %v10934_v33, %v4998_v4 }
 0x840   :  { %v4602_v31 = vmul.f32 1.442695, %v4572_v53  ;;  %7282 = vmatprep.mubr.f32.mxu0 %v7840_v1  ;;  %7338 = vmatprep.mubr.f32.mxu1 %v7840_v1  ;;  %v5095_v40 = vsub.f32 %v5015_v6, %v11029_v8  ;;  %v4985_v53 = vmul.f32 0.2, %v4969_v13  ;;  %v4974_v8 = vadd.f32 %v11044_v28, %v10878_v59 }
 0x841   :  { %v4556_v56 = vpop.permute.xlu0 %4555  ;;  %7431 = vmatprep.subr.mxu1 %v11634_v27 }
 0x842   :  { %7847 = vpow2.f32 %v4602_v31  ;;  %v4573_v0 = vsub.f32 %v4477_v18, %v4556_v56  ;;  %7432 = vmatpush3.msra.mxu1 %v11634_v27  ;;  %v4973_v31 = vadd.f32 %v11044_v28, %v10870_v42  ;;  %v4988_v56 = vmul.f32 0.2, %v4972_v26 }
 0x843   :  { %v7842_v15 = vpop.eup %7841  ;;  %7433 = vmatprep.subr.mxu1 %v11634_v27  ;;  %v5114_v23 = vmul.f32 1.442695, %v5095_v40  ;;  %v5001_v30 = vmax.f32 %v4969_v13, %v4985_v53  ;;  %v4990_v10 = vmul.f32 0.2, %v4974_v8 }
 0x844   :  { %v4604_v5 = vmul.f32 1.442695, %v4573_v0  ;;  %7283 = vmatmul.mubr.f32.gmra.mxu0 %v7842_v15  ;;  %7339 = vmatmul.mubr.f32.gmra.mxu1 %v7842_v15  ;;  %v4986_v0 = vmul.f32 0.2, %v4970_v58  ;;  %v4989_v42 = vmul.f32 0.2, %v4973_v31  ;;  %v5004_v59 = vmax.f32 %v4972_v26, %v4988_v56 }
 0x845   :  { %7434 = vmatpush3.msra.mxu1 %v11634_v27  ;;  %v4971_v27 = vadd.f32 %v11044_v28, %v10864_v48  ;;  %v5000_v48 = vmax.f32 %v4968_v55, %v4984_v35  ;;  %v5006_v35 = vmax.f32 %v4974_v8, %v4990_v10 }
 0x846   :  { %7849 = vpow2.f32 %v4604_v5  ;;  %v5030_v36 = vpop.permute.xlu0 %5029  ;;  %v4975_v5 = vadd.f32 %v11044_v28, %v10875_v38  ;;  %v4977_v38 = vadd.f32 %v11044_v28, %v10880_v49  ;;  %v5020_v4 = vadd.f32 %v10989_v12, %v5004_v59 }
 0x847   :  { %v7844_v39 = vpop.eup %7843  ;;  %v5092_v19 = vsub.f32 %v5012_v52, %v5030_v36  ;;  %v4987_v1 = vmul.f32 0.2, %v4971_v27  ;;  %v5016_v33 = vadd.f32 %v10952_v57, %v5000_v48  ;;  %v5017_v36 = vadd.f32 %v10962_v2, %v5001_v30 }
 0x848   :  { %7285 = vmatprep.mubr.f32.mxu0 %v7844_v39  ;;  %7341 = vmatprep.mubr.f32.mxu1 %v7844_v39  ;;  %v5002_v57 = vmax.f32 %v4970_v58, %v4986_v0  ;;  %v4991_v13 = vmul.f32 0.2, %v4975_v5  ;;  %v5100_v2 = vsub.f32 %v5020_v4, %v11073_v16  ;;  %v4976_v49 = vadd.f32 %v11044_v28, %v10892_v25 }
 0x849   :  { %v5108_v22 = vmul.f32 1.442695, %v5092_v19  ;;  %v5003_v15 = vmax.f32 %v4971_v27, %v4987_v1  ;;  %v5005_v19 = vmax.f32 %v4973_v31, %v4989_v42  ;;  %v4993_v12 = vmul.f32 0.2, %v4977_v38 }
 0x84a   :  { %v5034_v32 = vpop.permute.xlu0 %5033  ;;  %v5022_v58 = vadd.f32 %v11014_v60, %v5006_v35  ;;  %v5124_v53 = vmul.f32 1.442695, %v5100_v2  ;;  %v4992_v25 = vmul.f32 0.2, %v4976_v49 }
 0x84b   :  { %v7846_v34 = vpop.eup %7845  ;;  %7851 = vpow2.f32 %v5108_v22  ;;  %v5093_v63 = vsub.f32 %v5013_v7, %v5034_v32  ;;  %v5019_v39 = vadd.f32 %v10979_v11, %v5003_v15  ;;  %v11121_v22 = vpop.permute.xlu1 %5081  ;;  %v5018_v11 = vadd.f32 %v10968_v62, %v5002_v57 }
 0x84c   :  { %7286 = vmatmul.mubr.f32.gmra.mxu0 %v7846_v34  ;;  %7342 = vmatmul.mubr.f32.gmra.mxu1 %v7846_v34  ;;  %v5021_v26 = vadd.f32 %v11003_v14, %v5005_v19  ;;  %v5102_v62 = vsub.f32 %v5022_v58, %v11100_v44  ;;  %v5009_v31 = vmax.f32 %v4977_v38, %v4993_v12 }
 0x84d   :  { %v5110_v17 = vmul.f32 1.442695, %v5093_v63  ;;  %v5099_v32 = vsub.f32 %v5019_v39, %v11049_v3  ;;  %v5007_v63 = vmax.f32 %v4975_v5, %v4991_v13 }
 0x84e   :  { %v5038_v18 = vpop.permute.xlu0 %5037  ;;  %v5128_v44 = vmul.f32 1.442695, %v5102_v62 }
 0x84f   :  { %v7848_v43 = vpop.eup %7847  ;;  %7853 = vpow2.f32 %v5110_v17  ;;  %v5094_v50 = vsub.f32 %v5014_v9, %v5038_v18  ;;  %v5122_v16 = vmul.f32 1.442695, %v5099_v32  ;;  %v5101_v9 = vsub.f32 %v5021_v26, %v11088_v51  ;;  %v5090_v48 = vpop.permute.xlu1 %5089 }
 0x850   :  { %7288 = vmatprep.mubr.f32.mxu0 %v7848_v43  ;;  %7344 = vmatprep.mubr.f32.mxu1 %v7848_v43  ;;  %v5023_v14 = vadd.f32 %v11025_v61, %v5007_v63  ;;  %v5025_v61 = vadd.f32 %v11054_v47, %v5009_v31 }
 0x851   :  { %v5112_v46 = vmul.f32 1.442695, %v5094_v50  ;;  %v5126_v56 = vmul.f32 1.442695, %v5101_v9 }
 0x852   :  { %v5046_v52 = vpop.permute.xlu0 %5045  ;;  %v5103_v51 = vsub.f32 %v5023_v14, %v11112_v20  ;;  %v5105_v15 = vsub.f32 %v5025_v61, %v11121_v22 }
 0x853   :  { %v7850_v24 = vpop.eup %7849  ;;  %7855 = vpow2.f32 %v5112_v46  ;;  %v5096_v55 = vsub.f32 %v5016_v33, %v5046_v52  ;;  %v5185_v46 = vpop.permute.xlu1 %5184 }
 0x854   :  { %7857 = vpow2.f32 %v5114_v23  ;;  %7289 = vmatmul.mubr.f32.gmra.mxu0 %v7850_v24  ;;  %7345 = vmatmul.mubr.f32.gmra.mxu1 %v7850_v24  ;;  %v5008_v23 = vmax.f32 %v4976_v49, %v4992_v25  ;;  %v5130_v20 = vmul.f32 1.442695, %v5103_v51 }
 0x855   :  { %v5116_v41 = vmul.f32 1.442695, %v5096_v55 }
 0x856   :  { %v5050_v7 = vpop.permute.xlu0 %5049  ;;  %v5024_v52 = vadd.f32 %v11038_v45, %v5008_v23 }
 0x857   :  { %7859 = vpow2.f32 %v5116_v41  ;;  %v5097_v6 = vsub.f32 %v5017_v36, %v5050_v7  ;;  %v5181_v55 = vpop.permute.xlu1 %5180 }
 0x858   :  { %v7852_v27 = vpop.eup %7851 }
 0x859   :  { %v5118_v34 = vmul.f32 1.442695, %v5097_v6  ;;  %7379 = vmatprep.mubr.f32.mxu0 %v7852_v27  ;;  %7435 = vmatprep.mubr.f32.mxu1 %v7852_v27 }
 0x85a   :  { %v5054_v40 = vpop.permute.xlu0 %5053 }
 0x85b   :  { %7861 = vpow2.f32 %v5118_v34  ;;  %v5098_v17 = vsub.f32 %v5018_v11, %v5054_v40 }
 0x85c   :  { %v11131_v3 = vpop.eup %7853 }
 0x85d   :  { %v5120_v1 = vmul.f32 1.442695, %v5098_v17  ;;  %7436 = vmatmul.mubr.f32.vlgmr.msra.gmra.mxu1 %v11131_v3 }
 0x85e   :  { %v4954_v18 = vpop.permute.xlu0 %4953 }
 0x85f   :  { %7863 = vpow2.f32 %v5120_v1  ;;  %v4978_v60 = vadd.f32 %v11044_v28, %v4954_v18 }
 0x860   :  { %v11138_v43 = vpop.eup %7855  ;;  %7865 = vpow2.f32 %v5122_v16 }
 0x861   :  { %v11141_v8 = vpop.eup %7857  ;;  %7867 = vpow2.f32 %v5124_v53  ;;  %v4994_v50 = vmul.f32 0.2, %v4978_v60  ;;  %7438 = vmatprep.mubr.f32.mxu1 %v11138_v43 }
 0x862   :  { %v4958_v33 = vpop.permute.xlu0 %4957  ;;  %7439 = vmatmul.mubr.f32.gmra.mxu1 %v11141_v8  ;;  %7869 = vpow2.f32 %v5126_v56 }
 0x863   :  { %v4979_v30 = vadd.f32 %v11044_v28, %v4958_v33  ;;  %7871 = vpow2.f32 %v5128_v44  ;;  %v5010_v42 = vmax.f32 %v4978_v60, %v4994_v50  ;;  %v5134_v28 = vmul.f32 1.442695, %v5105_v15 }
 0x864   :  { %v11147_v0 = vpop.eup %7859  ;;  %7873 = vpow2.f32 %v5130_v20 }
 0x865   :  { %v4995_v5 = vmul.f32 0.2, %v4979_v30  ;;  %7441 = vmatprep.mubr.f32.mxu1 %v11147_v0  ;;  %v5026_v57 = vadd.f32 %v11065_v21, %v5010_v42 }
 0x866   :  { %v5078_v47 = vpop.permute.xlu0 %5077 }
 0x867   :  { %v5011_v24 = vmax.f32 %v4979_v30, %v4995_v5  ;;  %v5104_v59 = vsub.f32 %v5024_v52, %v5078_v47 }
 0x868   :  { %v11152_v10 = vpop.eup %7861 }
 0x869   :  { %v5027_v41 = vadd.f32 %v11080_v37, %v5011_v24  ;;  %v5132_v36 = vmul.f32 1.442695, %v5104_v59  ;;  %7442 = vmatmul.mubr.f32.gmra.mxu1 %v11152_v10  ;;  %v5177_v37 = vpop.permute.xlu1 %5176 }
 0x86a   :  { %v5086_v39 = vpop.permute.xlu0 %5085 }
 0x86b   :  { %v5107_v19 = vsub.f32 %v5027_v41, %v5090_v48  ;;  %7875 = vpow2.f32 %v5132_v36  ;;  %v5106_v13 = vsub.f32 %v5026_v57, %v5086_v39 }
 0x86c   :  { %v11157_v45 = vpop.eup %7863  ;;  %7877 = vpow2.f32 %v5134_v28 }
 0x86d   :  { %v11159_v38 = vpop.eup %7865  ;;  %v5138_v22 = vmul.f32 1.442695, %v5107_v19  ;;  %v5136_v7 = vmul.f32 1.442695, %v5106_v13  ;;  %7444 = vmatprep.mubr.f32.mxu1 %v11157_v45  ;;  %v5173_v32 = vpop.permute.xlu1 %5172 }
 0x86e   :  { %v11162_v4 = vpop.eup %7867  ;;  %v5187_v35 = vpop.permute.xlu0 %5186  ;;  %7445 = vmatmul.mubr.f32.gmra.mxu1 %v11159_v38 }
 0x86f   :  { %7879 = vpow2.f32 %v5138_v22  ;;  %7347 = vmatprep.subr.mxu0 %v5187_v35  ;;  %7447 = vmatprep.mubr.f32.mxu1 %v11162_v4  ;;  %v11166_v21 = vpop.eup %7869 }
 0x870   :  { %7881 = vpow2.f32 %v5136_v7  ;;  %7348 = vmatpush3.msra.mxu0 %v5187_v35  ;;  %v7872_v6 = vpop.eup %7871 }
 0x871   :  { %7349 = vmatprep.subr.mxu0 %v5185_v46  ;;  %v7874_v2 = vpop.eup %7873  ;;  %v5169_v26 = vpop.permute.xlu1 %5168 }
 0x872   :  { %v5183_v27 = vpop.permute.xlu0 %5182  ;;  %7350 = vmatpush3.msra.mxu0 %v5185_v46  ;;  %7448 = vmatmul.mubr.f32.gmra.mxu1 %v11166_v21 }
 0x873   :  { %7351 = vmatprep.subr.mxu0 %v5183_v27  ;;  %7450 = vmatprep.mubr.f32.mxu1 %v7872_v6 }
 0x874   :  { %7352 = vmatpush3.msra.mxu0 %v5183_v27 }
 0x875   :  { %7353 = vmatprep.subr.mxu0 %v5181_v55  ;;  %v5165_v17 = vpop.permute.xlu1 %5164 }
 0x876   :  { %v5179_v34 = vpop.permute.xlu0 %5178  ;;  %7354 = vmatpush3.msra.mxu0 %v5181_v55  ;;  %7451 = vmatmul.mubr.f32.gmra.mxu1 %v7874_v2 }
 0x877   :  { %7355 = vmatprep.subr.mxu0 %v5179_v34 }
 0x878   :  { %v7876_v11 = vpop.eup %7875  ;;  %7356 = vmatpush3.msra.mxu0 %v5179_v34 }
 0x879   :  { %v7878_v49 = vpop.eup %7877  ;;  %7357 = vmatprep.subr.mxu0 %v5177_v37  ;;  %7453 = vmatprep.mubr.f32.mxu1 %v7876_v11  ;;  %v5161_v9 = vpop.permute.xlu1 %5160 }
 0x87a   :  { %v5175_v63 = vpop.permute.xlu0 %5174  ;;  %7358 = vmatpush3.msra.mxu0 %v5177_v37  ;;  %7454 = vmatmul.mubr.f32.gmra.mxu1 %v7878_v49 }
 0x87b   :  { %7359 = vmatprep.subr.mxu0 %v5175_v63 }
 0x87c   :  { %v7880_v12 = vpop.eup %7879  ;;  %7360 = vmatpush3.msra.mxu0 %v5175_v63 }
 0x87d   :  { %v7882_v40 = vpop.eup %7881  ;;  %7361 = vmatprep.subr.mxu0 %v5173_v32  ;;  %v5157_v62 = vpop.permute.xlu1 %5156 }
 0x87e   :  { %7456 = vmatprep.mubr.f32.mxu1 %v7882_v40  ;;  %v5171_v58 = vpop.permute.xlu0 %5170  ;;  %7362 = vmatpush3.msra.mxu0 %v5173_v32 }
 0x87f   :  { %7457 = vmatmul.mubr.f32.gmra.mxu1 %v7880_v12  ;;  %7363 = vmatprep.subr.mxu0 %v5171_v58 }
 0x880   :  { %7364 = vmatpush3.msra.mxu0 %v5171_v58 }
 0x881   :  { %7365 = vmatprep.subr.mxu0 %v5169_v26 }
 0x882   :  { %v5167_v16 = vpop.permute.xlu0 %5166  ;;  %7366 = vmatpush3.msra.mxu0 %v5169_v26 }
 0x883   :  { %7367 = vmatprep.subr.mxu0 %v5167_v16 }
 0x884   :  { %7368 = vmatpush3.msra.mxu0 %v5167_v16 }
 0x885   :  { %7369 = vmatprep.subr.mxu0 %v5165_v17 }
 0x886   :  { %v5163_v48 = vpop.permute.xlu0 %5162  ;;  %7370 = vmatpush3.msra.mxu0 %v5165_v17 }
 0x887   :  { %7371 = vmatprep.subr.mxu0 %v5163_v48 }
 0x888   :  { %7372 = vmatpush3.msra.mxu0 %v5163_v48 }
 0x889   :  { %7373 = vmatprep.subr.mxu0 %v5161_v9 }
 0x88a   :  { %v5159_v53 = vpop.permute.xlu0 %5158  ;;  %7374 = vmatpush3.msra.mxu0 %v5161_v9 }
 0x88b   :  { %7375 = vmatprep.subr.mxu0 %v5159_v53 }
 0x88c   :  { %7376 = vmatpush3.msra.mxu0 %v5159_v53 }
 0x88d   :  { %7377 = vmatprep.subr.mxu0 %v5157_v62 }
 0x88e   :  { %7378 = vmatpush3.msra.mxu0 %v5157_v62 }
 0x88f   :  { %7380 = vmatmul.mubr.f32.vlgmr.msra.gmra.mxu0 %v11131_v3 }
 0x890   :  { %7382 = vmatprep.mubr.f32.mxu0 %v11138_v43 }
 0x893   :  { %7383 = vmatmul.mubr.f32.gmra.mxu0 %v11141_v8 }
 0x894   :  { %7385 = vmatprep.mubr.f32.mxu0 %v11147_v0 }
 0x897   :  { %7386 = vmatmul.mubr.f32.gmra.mxu0 %v11152_v10 }
 0x898   :  { %7388 = vmatprep.mubr.f32.mxu0 %v11157_v45 }
 0x89b   :  { %7389 = vmatmul.mubr.f32.gmra.mxu0 %v11159_v38 }
 0x89c   :  { %7391 = vmatprep.mubr.f32.mxu0 %v11162_v4 }
 0x89f   :  { %7392 = vmatmul.mubr.f32.gmra.mxu0 %v11166_v21 }
 0x8a0   :  { %7394 = vmatprep.mubr.f32.mxu0 %v7872_v6 }
 0x8a3   :  { %7395 = vmatmul.mubr.f32.gmra.mxu0 %v7874_v2 }
 0x8a4   :  { %7397 = vmatprep.mubr.f32.mxu0 %v7876_v11 }
 0x8a7   :  { %7398 = vmatmul.mubr.f32.gmra.mxu0 %v7878_v49 }
 0x8a8   :  { %7400 = vmatprep.mubr.f32.mxu0 %v7882_v40 }
 0x8ab   :  { %7401 = vmatmul.mubr.f32.gmra.mxu0 %v7880_v12 }
 0x8dc   :  { %v7325_v3 = vpop.f32.mrf.mxu1 }
 0x8de   :  { %v4817_v1 = vpop.f32.mrf.mxu1 }
 0x8e4   :  { %v7328_v25 = vpop.f32.mrf.mxu1 }
 0x8e6   :  { %v4827_v14 = vpop.f32.mrf.mxu1 }
 0x8ec   :  { %v7331_v31 = vpop.f32.mrf.mxu1 }
 0x8ee   :  { %v11178_v18 = vpop.f32.mrf.mxu1 }
 0x8f4   :  { %v11180_v60 = vpop.f32.mrf.mxu1 }
 0x8f6   :  { %v11182_v43 = vpop.f32.mrf.mxu1 }
 0x8fc   :  { %v11184_v56 = vpop.f32.mrf.mxu1 }
 0x8fe   :  { %v11186_v51 = vpop.f32.mrf.mxu1 }
 0x904   :  { %v11188_v8 = vpop.f32.mrf.mxu1 }
 0x906   :  { %v11190_v44 = vpop.f32.mrf.mxu1 }
 0x90c   :  { %v11192_v50 = vpop.f32.mrf.mxu1 }
 0x90e   :  { %v11194_v23 = vpop.f32.mrf.mxu1 }
 0x914   :  { %v11196_v61 = vpop.f32.mrf.mxu1 }
 0x916   :  { %v11198_v46 = vpop.f32.mrf.mxu1 }
 0x91d   :  { %v7437_v33 = vpop.f32.mrf.mxu1 }
 0x91e   :  { %5512 = vrot.lane.b32.xlu1 %v7437_v33, %s7956_s21 }
 0x91f   :  { %v5415_v30 = vpop.f32.mrf.mxu1 }
 0x920   :  { %5510 = vrot.lane.b32.xlu0 %v5415_v30, %s7956_s21 }
 0x922   :  { %v7440_v0 = vpop.f32.mrf.mxu1 }
 0x923   :  { %5516 = vrot.lane.b32.xlu1 %v7440_v0, %s7956_s21 }
 0x924   :  { %v5425_v20 = vpop.f32.mrf.mxu1 }
 0x925   :  { %5514 = vrot.lane.b32.xlu0 %v5425_v20, %s7956_s21 }
 0x929   :  { %v7443_v15 = vpop.f32.mrf.mxu1 }
 0x92a   :  { %5520 = vrot.lane.b32.xlu1 %v7443_v15, %s7956_s21 }
 0x92b   :  { %v5435_v42 = vpop.f32.mrf.mxu1 }
 0x92c   :  { %5518 = vrot.lane.b32.xlu0 %v5435_v42, %s7956_s21 }
 0x92e   :  { %v7446_v5 = vpop.f32.mrf.mxu1 }
 0x92f   :  { %5524 = vrot.lane.b32.xlu1 %v7446_v5, %s7956_s21 }
 0x930   :  { %v5445_v52 = vpop.f32.mrf.mxu1 }
 0x931   :  { %5522 = vrot.lane.b32.xlu0 %v5445_v52, %s7956_s21 }
 0x932   :  { %v7449_v47 = vpop.f32.mrf.mxu1 }
 0x933   :  { %5528 = vrot.lane.b32.xlu1 %v7449_v47, %s7956_s21 }
 0x934   :  { %v5455_v24 = vpop.f32.mrf.mxu1 }
 0x935   :  { %5526 = vrot.lane.b32.xlu0 %v5455_v24, %s7956_s21 }
 0x936   :  { %v7452_v59 = vpop.f32.mrf.mxu1 }
 0x937   :  { %5532 = vrot.lane.b32.xlu1 %v7452_v59, %s7956_s21 }
 0x938   :  { %v5465_v10 = vpop.f32.mrf.mxu1 }
 0x939   :  { %5530 = vrot.lane.b32.xlu0 %v5465_v10, %s7956_s21 }
 0x93a   :  { %v7455_v28 = vpop.f32.mrf.mxu1 }
 0x93b   :  { %5536 = vrot.lane.b32.xlu1 %v7455_v28, %s7956_s21 }
 0x93c   :  { %v5475_v55 = vpop.f32.mrf.mxu1 }
 0x93d   :  { %5534 = vrot.lane.b32.xlu0 %v5475_v55, %s7956_s21 }
 0x93f   :  { %v7458_v41 = vpop.f32.mrf.mxu1 }
 0x940   :  { %5540 = vrot.lane.b32.xlu1 %v7458_v41, %s7956_s21 }
 0x941   :  { %v5485_v36 = vpop.f32.mrf.mxu1 }
 0x942   :  { %5538 = vrot.lane.b32.xlu0 %v5485_v36, %s7956_s21 }
 0x990   :  { %v5513_v57 = vpop.permute.xlu1 %5512 }
 0x991   :  { %v5559_v39 = vsel %vm3059_vm2, %v7325_v3, %v5513_v57 }
 0x992   :  { %v5575_v19 = vmax.f32 %v5559_v39, 1e-30  ;;  %v5511_v13 = vpop.permute.xlu0 %5510 }
 0x993   :  { %v5558_v45 = vsel %vm3059_vm2, %v4817_v1, %v5511_v13 }
 0x994   :  { %7883 = vrcp.f32 %v5575_v19  ;;  %v5574_v38 = vmax.f32 %v5558_v45, 1e-30 }
 0x995   :  { %v5517_v22 = vpop.permute.xlu1 %5516 }
 0x996   :  { %7885 = vrcp.f32 %v5574_v38  ;;  %v5561_v7 = vsel %vm3059_vm2, %v7328_v25, %v5517_v22 }
 0x997   :  { %v5577_v4 = vmax.f32 %v5561_v7, 1e-30  ;;  %v5515_v37 = vpop.permute.xlu0 %5514 }
 0x998   :  { %v5560_v35 = vsel %vm3059_vm2, %v4827_v14, %v5515_v37 }
 0x999   :  { %7887 = vrcp.f32 %v5577_v4  ;;  %v5576_v21 = vmax.f32 %v5560_v35, 1e-30 }
 0x99b   :  { %7889 = vrcp.f32 %v5576_v21 }
 0x99c   :  { %v5521_v6 = vpop.permute.xlu1 %5520 }
 0x99d   :  { %v5563_v27 = vsel %vm3059_vm2, %v7331_v31, %v5521_v6 }
 0x99e   :  { %v5579_v32 = vmax.f32 %v5563_v27, 1e-30  ;;  %v5519_v2 = vpop.permute.xlu0 %5518 }
 0x99f   :  { %v5562_v34 = vsel %vm3059_vm2, %v11178_v18, %v5519_v2 }
 0x9a0   :  { %7891 = vrcp.f32 %v5579_v32  ;;  %v5578_v11 = vmax.f32 %v5562_v34, 1e-30 }
 0x9a1   :  { %v7884_v49 = vpop.eup %7883  ;;  %v5525_v26 = vpop.permute.xlu1 %5524 }
 0x9a2   :  { %v5607_v63 = vmul.f32 %v7884_v49, %v5575_v19  ;;  %7893 = vrcp.f32 %v5578_v11  ;;  %v5565_v12 = vsel %vm3059_vm2, %v11180_v60, %v5525_v26 }
 0x9a3   :  { %v7886_v40 = vpop.eup %7885  ;;  %v5581_v58 = vmax.f32 %v5565_v12, 1e-30  ;;  %v5523_v17 = vpop.permute.xlu0 %5522 }
 0x9a4   :  { %v5623_v16 = vsub.f32 2.0, %v5607_v63  ;;  %v5606_v9 = vmul.f32 %v7886_v40, %v5574_v38  ;;  %v5564_v48 = vsel %vm3059_vm2, %v11182_v43, %v5523_v17 }
 0x9a5   :  { %7895 = vrcp.f32 %v5581_v58  ;;  %v5580_v53 = vmax.f32 %v5564_v48, 1e-30  ;;  %v5529_v62 = vpop.permute.xlu1 %5528 }
 0x9a6   :  { %v7888_v3 = vpop.eup %7887  ;;  %v5639_v1 = vmul.f32 %v7884_v49, %v5623_v16  ;;  %v11229_v25 = vsel %vm3059_vm2, %v11184_v56, %v5529_v62  ;;  %v5622_v14 = vsub.f32 2.0, %v5606_v9 }
 0x9a7   :  { %v5609_v31 = vmul.f32 %v7888_v3, %v5577_v4  ;;  %7897 = vrcp.f32 %v5580_v53  ;;  %v5583_v18 = vmax.f32 %v11229_v25, 1e-30  ;;  %v5527_v60 = vpop.permute.xlu0 %5526 }
 0x9a8   :  { %v7890_v33 = vpop.eup %7889  ;;  %v11234_v30 = vsel %vm3059_vm2, %v11186_v51, %v5527_v60  ;;  %5755 = vperm.xlu0 %7620, %v5639_v1   ;;  %5661 = vperm.xlu1 %7619, %v5639_v1   ;;  %v5638_v15 = vmul.f32 %v7886_v40, %v5622_v14 }
 0x9a9   :  { %7899 = vrcp.f32 %v5583_v18  ;;  %v5582_v43 = vmax.f32 %v11234_v30, 1e-30  ;;  %v5533_v0 = vpop.permute.xlu1 %5532  ;;  %v5608_v20 = vmul.f32 %v7890_v33, %v5576_v21  ;;  %v5625_v42 = vsub.f32 2.0, %v5609_v31 }
 0x9aa   :  { %v5569_v56 = vsel %vm3059_vm2, %v11188_v8, %v5533_v0 }
 0x9ab   :  { %7901 = vrcp.f32 %v5582_v43  ;;  %v5585_v5 = vmax.f32 %v5569_v56, 1e-30  ;;  %v5531_v52 = vpop.permute.xlu0 %5530  ;;  %v5624_v10 = vsub.f32 2.0, %v5608_v20  ;;  %v11245_v55 = vmul.f32 %v7888_v3, %v5625_v42 }
 0x9ac   :  { %v5568_v47 = vsel %vm3059_vm2, %v11190_v44, %v5531_v52  ;;  %7621 = vset.pattern.permute.xlu0 %v7962_v54  ;;  %7622 = vset.pattern.permute.xlu1 %v11700_v29 }
 0x9ad   :  { %v7892_v51 = vpop.eup %7891  ;;  %7903 = vrcp.f32 %v5585_v5  ;;  %v5584_v24 = vmax.f32 %v5568_v47, 1e-30  ;;  %5656 = vperm.xlu0 %7621, %v5638_v15   ;;  %5751 = vperm.xlu1 %7622, %v5638_v15   ;;  %v5537_v59 = vpop.permute.xlu1 %5536  ;;  %v11251_v45 = vmul.f32 %v7890_v33, %v5624_v10 }
 0x9ae   :  { %v5571_v8 = vsel %vm3059_vm2, %v11192_v50, %v5537_v59  ;;  %v5611_v41 = vmul.f32 %v7892_v51, %v5579_v32  ;;  %v11262_v59 = vpop.f32.mrf.mxu0 }
 0x9af   :  { %v7894_v28 = vpop.eup %7893  ;;  %7905 = vrcp.f32 %v5584_v24  ;;  %v5587_v44 = vmax.f32 %v5571_v8, 1e-30  ;;  %v5535_v36 = vpop.permute.xlu0 %5534 }
 0x9b0   :  { %v5610_v57 = vmul.f32 %v7894_v28, %v5578_v11  ;;  %v5570_v39 = vsel %vm3059_vm2, %v11194_v23, %v5535_v36  ;;  %v5627_v22 = vsub.f32 2.0, %v5611_v41  ;;  %v11264_v10 = vpop.f32.mrf.mxu0 }
 0x9b1   :  { %7907 = vrcp.f32 %v5587_v44  ;;  %v5586_v19 = vmax.f32 %v5570_v39, 1e-30  ;;  %5763 = vperm.xlu1 %7622, %v11245_v55   ;;  %7623 = vset.pattern.permute.xlu0 %v11700_v29 }
 0x9b2   :  { %v7896_v13 = vpop.eup %7895  ;;  %v5626_v50 = vsub.f32 2.0, %v5610_v57  ;;  %v5541_v38 = vpop.permute.xlu1 %5540  ;;  %v5643_v34 = vmul.f32 %v7892_v51, %v5627_v22 }
 0x9b3   :  { %v5613_v7 = vmul.f32 %v7896_v13, %v5581_v58  ;;  %7909 = vrcp.f32 %v5586_v19  ;;  %v5573_v4 = vsel %vm3059_vm2, %v11196_v61, %v5541_v38  ;;  %v11266_v8 = vpop.f32.mrf.mxu0 }
 0x9b4   :  { %v7898_v37 = vpop.eup %7897  ;;  %v5642_v35 = vmul.f32 %v7894_v28, %v5626_v50  ;;  %v5589_v23 = vmax.f32 %v5573_v4, 1e-30  ;;  %v5539_v21 = vpop.permute.xlu0 %5538 }
 0x9b5   :  { %v5612_v6 = vmul.f32 %v7898_v37, %v5580_v53  ;;  %v5572_v27 = vsel %vm3059_vm2, %v11198_v46, %v5539_v21  ;;  %5759 = vperm.xlu1 %7622, %v11251_v45   ;;  %v5629_v11 = vsub.f32 2.0, %v5613_v7  ;;  %v11268_v28 = vpop.f32.mrf.mxu0  ;;  %vm5894_vm2 = vcmask 130048  }
 0x9b6   :  { %v7900_v32 = vpop.eup %7899  ;;  %7911 = vrcp.f32 %v5589_v23  ;;  %v5588_v2 = vmax.f32 %v5572_v27, 1e-30  ;;  %5767 = vperm.xlu0 %7623, %v5642_v35  }
 0x9b7   :  { %v5628_v49 = vsub.f32 2.0, %v5612_v6  ;;  %v5615_v26 = vmul.f32 %v7900_v32, %v5583_v18  ;;  %v5645_v58 = vmul.f32 %v7896_v13, %v5629_v11 }
 0x9b8   :  { %v7902_v63 = vpop.eup %7901  ;;  %7913 = vrcp.f32 %v5588_v2 }
 0x9b9   :  { %v5644_v61 = vmul.f32 %v7898_v37, %v5628_v49  ;;  %v5614_v12 = vmul.f32 %v7902_v63, %v5582_v43  ;;  %5771 = vperm.xlu1 %7622, %v5643_v34   ;;  %v5631_v17 = vsub.f32 2.0, %v5615_v26 }
 0x9ba   :  { %v7904_v40 = vpop.eup %7903 }
 0x9bb   :  { %v5630_v16 = vsub.f32 2.0, %v5614_v12  ;;  %v5617_v46 = vmul.f32 %v7904_v40, %v5585_v5  ;;  %5775 = vperm.xlu0 %7623, %v5644_v61   ;;  %v5647_v3 = vmul.f32 %v7900_v32, %v5631_v17 }
 0x9bc   :  { %v7906_v9 = vpop.eup %7905 }
 0x9bd   :  { %v5646_v48 = vmul.f32 %v7902_v63, %v5630_v16  ;;  %v5616_v53 = vmul.f32 %v7906_v9, %v5584_v24  ;;  %5779 = vperm.xlu1 %7622, %v5645_v58   ;;  %v5633_v1 = vsub.f32 2.0, %v5617_v46 }
 0x9be   :  { %v7908_v62 = vpop.eup %7907 }
 0x9bf   :  { %v5632_v25 = vsub.f32 2.0, %v5616_v53  ;;  %v5619_v14 = vmul.f32 %v7908_v62, %v5587_v44  ;;  %5783 = vperm.xlu0 %7623, %v5646_v48   ;;  %v5649_v30 = vmul.f32 %v7904_v40, %v5633_v1 }
 0x9c0   :  { %v7910_v31 = vpop.eup %7909 }
 0x9c1   :  { %v5648_v18 = vmul.f32 %v7906_v9, %v5632_v25  ;;  %v5618_v60 = vmul.f32 %v7910_v31, %v5586_v19  ;;  %5787 = vperm.xlu1 %7622, %v5647_v3   ;;  %v5635_v43 = vsub.f32 2.0, %v5619_v14 }
 0x9c3   :  { %v7912_v33 = vpop.eup %7911  ;;  %v5634_v0 = vsub.f32 2.0, %v5618_v60  ;;  %5791 = vperm.xlu0 %7623, %v5648_v18   ;;  %v5651_v5 = vmul.f32 %v7908_v62, %v5635_v43 }
 0x9c4   :  { %v5621_v20 = vmul.f32 %v7912_v33, %v5589_v23 }
 0x9c5   :  { %v7914_v56 = vpop.eup %7913  ;;  %v5650_v15 = vmul.f32 %v7910_v31, %v5634_v0  ;;  %5795 = vperm.xlu1 %7622, %v5649_v30  }
 0x9c6   :  { %v5620_v42 = vmul.f32 %v7914_v56, %v5588_v2  ;;  %v5637_v52 = vsub.f32 2.0, %v5621_v20 }
 0x9c7   :  { %5799 = vperm.xlu0 %7623, %v5650_v15  }
 0x9c8   :  { %v5636_v47 = vsub.f32 2.0, %v5620_v42  ;;  %v5653_v24 = vmul.f32 %v7912_v33, %v5637_v52 }
 0x9c9   :  { %5803 = vperm.xlu1 %7622, %v5651_v5  }
 0x9ca   :  { %v5652_v51 = vmul.f32 %v7914_v56, %v5636_v47 }
 0x9cc   :  { %5807 = vperm.xlu0 %7623, %v5652_v51  }
 0x9cd   :  { %5811 = vperm.xlu1 %7622, %v5653_v24  }
 0x9d0   :  { %7624 = vset.pattern.permute.xlu0 %v7962_v54 }
 0x9d1   :  { %5666 = vperm.xlu0 %7624, %v11251_v45   ;;  %7625 = vset.pattern.permute.xlu1 %v7962_v54  ;;  %v11270_v54 = vpop.f32.mrf.mxu0 }
 0x9d2   :  { %5671 = vperm.xlu1 %7625, %v11245_v55  }
 0x9d3   :  { %v11272_v55 = vpop.f32.mrf.mxu0 }
 0x9d5   :  { %5681 = vperm.xlu0 %7624, %v5643_v34   ;;  %v11275_v41 = vpop.f32.mrf.mxu0 }
 0x9d6   :  { %5676 = vperm.xlu1 %7625, %v5642_v35  }
 0x9d7   :  { %v11277_v44 = vpop.f32.mrf.mxu0 }
 0x9d9   :  { %5691 = vperm.xlu0 %7624, %v5645_v58   ;;  %v11279_v36 = vpop.f32.mrf.mxu0 }
 0x9da   :  { %5686 = vperm.xlu1 %7625, %v5644_v61  }
 0x9db   :  { %v11281_v57 = vpop.f32.mrf.mxu0 }
 0x9dd   :  { %5701 = vperm.xlu0 %7624, %v5647_v3   ;;  %v11283_v39 = vpop.f32.mrf.mxu0 }
 0x9de   :  { %5696 = vperm.xlu1 %7625, %v5646_v48  }
 0x9df   :  { %v11285_v19 = vpop.f32.mrf.mxu0 }
 0x9e1   :  { %5711 = vperm.xlu0 %7624, %v5649_v30   ;;  %v11287_v13 = vpop.f32.mrf.mxu0 }
 0x9e2   :  { %5706 = vperm.xlu1 %7625, %v5648_v18  }
 0x9e3   :  { %v11289_v45 = vpop.f32.mrf.mxu0 }
 0x9e5   :  { %5721 = vperm.xlu0 %7624, %v5651_v5   ;;  %v11291_v50 = vpop.f32.mrf.mxu0 }
 0x9e6   :  { %5716 = vperm.xlu1 %7625, %v5650_v15  }
 0x9e7   :  { %v11293_v38 = vpop.f32.mrf.mxu0 }
 0x9e9   :  { %5731 = vperm.xlu0 %7624, %v5653_v24  }
 0x9ea   :  { %5726 = vperm.xlu1 %7625, %v5652_v51  }
 0x9ed   :  { %7626 = vset.pattern.permute.xlu0 %v11700_v29  ;;  %v7381_v29 = vpop.f32.mrf.mxu0 }
 0x9ef   :  { %v5270_v22 = vpop.f32.mrf.mxu0 }
 0x9f1   :  { %v7384_v7 = vpop.f32.mrf.mxu0 }
 0x9f3   :  { %v5280_v4 = vpop.f32.mrf.mxu0 }
 0x9f5   :  { %v7387_v37 = vpop.f32.mrf.mxu0 }
 0x9f7   :  { %v5290_v35 = vpop.f32.mrf.mxu0 }
 0x9f9   :  { %v7390_v6 = vpop.f32.mrf.mxu0 }
 0x9fb   :  { %v5300_v32 = vpop.f32.mrf.mxu0 }
 0x9fd   :  { %v7393_v11 = vpop.f32.mrf.mxu0 }
 0x9ff   :  { %v5310_v61 = vpop.f32.mrf.mxu0 }
 0xa01   :  { %v7396_v17 = vpop.f32.mrf.mxu0 }
 0xa03   :  { %v5320_v53 = vpop.f32.mrf.mxu0 }
 0xa05   :  { %v7399_v14 = vpop.f32.mrf.mxu0 }
 0xa07   :  { %v5330_v30 = vpop.f32.mrf.mxu0 }
 0xa09   :  { %v7402_v15 = vpop.f32.mrf.mxu0 }
 0xa0b   :  { %v5340_v51 = vpop.f32.mrf.mxu0 }
 0xa23   :  { %v5756_v23 = vpop.permute.xlu0 %5755  ;;  %v11295_v21 = vpop.permute.xlu1 %5661 }
 0xa24   :  { %v5815_v27 = vmul.f32 %v7381_v29, %v5756_v23 }
 0xa26   :  { %5848 = vrot.lane.b32.xlu0 %v5815_v27, %s7964_s1 }
 0xa28   :  { %v5752_v2 = vpop.permute.xlu1 %5751  ;;  %v11299_v26 = vpop.permute.xlu0 %5656 }
 0xa29   :  { %v5814_v34 = vmul.f32 %v5752_v2, %v5270_v22 }
 0xa2b   :  { %5846 = vrot.lane.b32.xlu1 %v5814_v34, %s7964_s1 }
 0xa2c   :  { %v5764_v49 = vpop.permute.xlu1 %5763 }
 0xa2d   :  { %v5817_v63 = vmul.f32 %v7384_v7, %v5764_v49 }
 0xa2f   :  { %5852 = vrot.lane.b32.xlu0 %v5817_v63, %s7964_s1 }
 0xa30   :  { %v5760_v12 = vpop.permute.xlu1 %5759 }
 0xa31   :  { %v5816_v40 = vmul.f32 %v5760_v12, %v5280_v4  ;;  %v5768_v58 = vpop.permute.xlu0 %5767  ;;  %v11326_v12 = vld [vmem:[%s11533_s7] ss:$0 sm:$0xff] }
 0xa32   :  { %v5818_v46 = vmul.f32 %v5768_v58, %v5290_v35 }
 0xa33   :  { %5850 = vrot.lane.b32.xlu1 %v5816_v40, %s7964_s1 }
 0xa34   :  { %v5772_v16 = vpop.permute.xlu1 %5771 }
 0xa35   :  { %v5819_v9 = vmul.f32 %v7387_v37, %v5772_v16 }
 0xa36   :  { %v5776_v48 = vpop.permute.xlu0 %5775 }
 0xa37   :  { %5854 = vrot.lane.b32.xlu1 %v5818_v46, %s7964_s1  ;;  %5856 = vrot.lane.b32.xlu0 %v5819_v9, %s7964_s1  ;;  %v5820_v3 = vmul.f32 %v5776_v48, %v5300_v32  ;;  %v5734_v46 = vmul.f32 %v11299_v26, %v11264_v10 }
 0xa38   :  { %v5780_v62 = vpop.permute.xlu1 %5779 }
 0xa39   :  { %v5821_v1 = vmul.f32 %v7390_v6, %v5780_v62 }
 0xa3a   :  { %v5784_v25 = vpop.permute.xlu0 %5783 }
 0xa3b   :  { %5858 = vrot.lane.b32.xlu1 %v5820_v3, %s7964_s1  ;;  %5860 = vrot.lane.b32.xlu0 %v5821_v1, %s7964_s1  ;;  %v5822_v18 = vmul.f32 %v5784_v25, %v5310_v61  ;;  %v5735_v61 = vmul.f32 %v11262_v59, %v11295_v21 }
 0xa3c   :  { %v5788_v31 = vpop.permute.xlu1 %5787 }
 0xa3d   :  { %v5823_v60 = vmul.f32 %v7393_v11, %v5788_v31 }
 0xa3e   :  { %v5792_v33 = vpop.permute.xlu0 %5791 }
 0xa3f   :  { %5862 = vrot.lane.b32.xlu1 %v5822_v18, %s7964_s1  ;;  %5864 = vrot.lane.b32.xlu0 %v5823_v60, %s7964_s1  ;;  %v5824_v0 = vmul.f32 %v5792_v33, %v5320_v53 }
 0xa40   :  { %v5796_v43 = vpop.permute.xlu1 %5795 }
 0xa41   :  { %v5825_v20 = vmul.f32 %v7396_v17, %v5796_v43 }
 0xa42   :  { %v5800_v56 = vpop.permute.xlu0 %5799 }
 0xa43   :  { %5866 = vrot.lane.b32.xlu1 %v5824_v0, %s7964_s1  ;;  %5868 = vrot.lane.b32.xlu0 %v5825_v20, %s7964_s1  ;;  %v5826_v5 = vmul.f32 %v5800_v56, %v5330_v30 }
 0xa44   :  { %v5804_v42 = vpop.permute.xlu1 %5803 }
 0xa45   :  { %v5827_v52 = vmul.f32 %v7399_v14, %v5804_v42 }
 0xa47   :  { %v5808_v47 = vpop.permute.xlu0 %5807  ;;  %5870 = vrot.lane.b32.xlu1 %v5826_v5, %s7964_s1  ;;  %5872 = vrot.lane.b32.xlu0 %v5827_v52, %s7964_s1 }
 0xa48   :  { %v5812_v24 = vpop.permute.xlu1 %5811  ;;  %v5828_v29 = vmul.f32 %v5808_v47, %v5340_v51 }
 0xa49   :  { %v5829_v22 = vmul.f32 %v7402_v15, %v5812_v24 }
 0xa4b   :  { %5874 = vrot.lane.b32.xlu1 %v5828_v29, %s7964_s1  ;;  %5876 = vrot.lane.b32.xlu0 %v5829_v22, %s7964_s1 }
 0xa4c   :  { %v5667_v7 = vpop.permute.xlu0 %5666 }
 0xa4d   :  { %v5672_v4 = vpop.permute.xlu1 %5671  ;;  %v5736_v10 = vmul.f32 %v5667_v7, %v11268_v28 }
 0xa4e   :  { %v5737_v48 = vmul.f32 %v11266_v8, %v5672_v4 }
 0xa50   :  { %v5682_v37 = vpop.permute.xlu0 %5681 }
 0xa51   :  { %v5677_v35 = vpop.permute.xlu1 %5676  ;;  %v5739_v8 = vmul.f32 %v11270_v54, %v5682_v37 }
 0xa52   :  { %v5738_v14 = vmul.f32 %v5677_v35, %v11272_v55 }
 0xa54   :  { %v5692_v23 = vpop.permute.xlu0 %5691 }
 0xa55   :  { %v5687_v6 = vpop.permute.xlu1 %5686  ;;  %v5741_v43 = vmul.f32 %v11275_v41, %v5692_v23 }
 0xa56   :  { %v5740_v54 = vmul.f32 %v5687_v6, %v11277_v44 }
 0xa58   :  { %v5702_v27 = vpop.permute.xlu0 %5701 }
 0xa59   :  { %v5697_v32 = vpop.permute.xlu1 %5696  ;;  %v5743_v41 = vmul.f32 %v11279_v36, %v5702_v27 }
 0xa5a   :  { %v5742_v44 = vmul.f32 %v5697_v32, %v11281_v57 }
 0xa5c   :  { %v5712_v2 = vpop.permute.xlu0 %5711 }
 0xa5d   :  { %v5707_v34 = vpop.permute.xlu1 %5706  ;;  %v5745_v36 = vmul.f32 %v11283_v39, %v5712_v2 }
 0xa5e   :  { %v5744_v57 = vmul.f32 %v5707_v34, %v11285_v19 }
 0xa60   :  { %v11315_v11 = vpop.permute.xlu0 %5721 }
 0xa61   :  { %v11317_v49 = vpop.permute.xlu1 %5716  ;;  %v5747_v39 = vmul.f32 %v11287_v13, %v11315_v11 }
 0xa62   :  { %v5746_v19 = vmul.f32 %v11317_v49, %v11289_v45 }
 0xa64   :  { %v11319_v63 = vpop.permute.xlu0 %5731 }
 0xa65   :  { %v11328_v58 = vpop.permute.xlu1 %5726  ;;  %v5749_v45 = vmul.f32 %v11291_v50, %v11319_v63 }
 0xa66   :  { %v5748_v11 = vmul.f32 %v11328_v58, %v11293_v38 }
 0xa98   :  { %v5849_v40 = vpop.permute.xlu0 %5848 }
 0xa99   :  { %v5896_v17 = vsel %vm5894_vm2, %v5735_v61, %v5849_v40 }
 0xa9a   :  { %v11332_v16 = vadd.f32 %v11326_v12, %v5896_v17 }
 0xa9c   :  { %5951 = vrot.lane.b32.xlu0 %v11332_v16, %s7963_s4 }
 0xa9d   :  { %v5847_v59 = vpop.permute.xlu1 %5846 }
 0xa9e   :  { %v5895_v21 = vsel %vm5894_vm2, %v5734_v46, %v5847_v59 }
 0xa9f   :  { %v11340_v9 = vadd.f32 %v11326_v12, %v5895_v21 }
 0xaa1   :  { %v5853_v53 = vpop.permute.xlu0 %5852  ;;  %5949 = vrot.lane.b32.xlu1 %v11340_v9, %s7963_s4 }
 0xaa2   :  { %v5898_v62 = vsel %vm5894_vm2, %v5737_v48, %v5853_v53 }
 0xaa3   :  { %v11347_v3 = vadd.f32 %v11326_v12, %v5898_v62 }
 0xaa5   :  { %5955 = vrot.lane.b32.xlu0 %v11347_v3, %s7963_s4  ;;  %v5851_v26 = vpop.permute.xlu1 %5850 }
 0xaa6   :  { %v5897_v1 = vsel %vm5894_vm2, %v5736_v10, %v5851_v26 }
 0xaa7   :  { %v11354_v25 = vadd.f32 %v11326_v12, %v5897_v1 }
 0xaa9   :  { %v5857_v31 = vpop.permute.xlu0 %5856  ;;  %5953 = vrot.lane.b32.xlu1 %v11354_v25, %s7963_s4  ;;  %v5855_v18 = vpop.permute.xlu1 %5854 }
 0xaaa   :  { %v5900_v28 = vsel %vm5894_vm2, %v5739_v8, %v5857_v31  ;;  %v5899_v60 = vsel %vm5894_vm2, %v5738_v14, %v5855_v18 }
 0xaab   :  { %v11363_v33 = vadd.f32 %v11326_v12, %v5900_v28  ;;  %v11366_v30 = vadd.f32 %v11326_v12, %v5899_v60 }
 0xaad   :  { %v5861_v55 = vpop.permute.xlu0 %5860  ;;  %5959 = vrot.lane.b32.xlu0 %v11363_v33, %s7963_s4  ;;  %5957 = vrot.lane.b32.xlu1 %v11366_v30, %s7963_s4  ;;  %v5859_v0 = vpop.permute.xlu1 %5858 }
 0xaae   :  { %v5902_v20 = vsel %vm5894_vm2, %v5741_v43, %v5861_v55  ;;  %v5901_v56 = vsel %vm5894_vm2, %v5740_v54, %v5859_v0 }
 0xaaf   :  { %v11377_v15 = vadd.f32 %v11326_v12, %v5902_v20  ;;  %v11380_v42 = vadd.f32 %v11326_v12, %v5901_v56 }
 0xab1   :  { %v5865_v5 = vpop.permute.xlu0 %5864  ;;  %5963 = vrot.lane.b32.xlu0 %v11377_v15, %s7963_s4  ;;  %5961 = vrot.lane.b32.xlu1 %v11380_v42, %s7963_s4  ;;  %v5863_v52 = vpop.permute.xlu1 %5862 }
 0xab2   :  { %v5904_v47 = vsel %vm5894_vm2, %v5743_v41, %v5865_v5  ;;  %v5903_v51 = vsel %vm5894_vm2, %v5742_v44, %v5863_v52 }
 0xab3   :  { %v11391_v24 = vadd.f32 %v11326_v12, %v5904_v47  ;;  %v11394_v29 = vadd.f32 %v11326_v12, %v5903_v51 }
 0xab5   :  { %v5869_v22 = vpop.permute.xlu0 %5868  ;;  %5967 = vrot.lane.b32.xlu0 %v11391_v24, %s7963_s4  ;;  %5965 = vrot.lane.b32.xlu1 %v11394_v29, %s7963_s4  ;;  %v5867_v7 = vpop.permute.xlu1 %5866 }
 0xab6   :  { %v5906_v4 = vsel %vm5894_vm2, %v5745_v36, %v5869_v22  ;;  %v5905_v37 = vsel %vm5894_vm2, %v5744_v57, %v5867_v7 }
 0xab7   :  { %v11405_v35 = vadd.f32 %v11326_v12, %v5906_v4  ;;  %v11408_v23 = vadd.f32 %v11326_v12, %v5905_v37 }
 0xab9   :  { %v5873_v6 = vpop.permute.xlu0 %5872  ;;  %5971 = vrot.lane.b32.xlu0 %v11405_v35, %s7963_s4  ;;  %5969 = vrot.lane.b32.xlu1 %v11408_v23, %s7963_s4  ;;  %v5871_v27 = vpop.permute.xlu1 %5870 }
 0xaba   :  { %v5908_v32 = vsel %vm5894_vm2, %v5747_v39, %v5873_v6  ;;  %v5907_v2 = vsel %vm5894_vm2, %v5746_v19, %v5871_v27 }
 0xabb   :  { %v11421_v34 = vadd.f32 %v11326_v12, %v5908_v32  ;;  %v11424_v13 = vadd.f32 %v11326_v12, %v5907_v2 }
 0xabd   :  { %v5877_v49 = vpop.permute.xlu0 %5876  ;;  %5975 = vrot.lane.b32.xlu0 %v11421_v34, %s7963_s4  ;;  %5973 = vrot.lane.b32.xlu1 %v11424_v13, %s7963_s4  ;;  %v5875_v61 = vpop.permute.xlu1 %5874 }
 0xabe   :  { %v5910_v40 = vsel %vm5894_vm2, %v5749_v45, %v5877_v49  ;;  %v5909_v17 = vsel %vm5894_vm2, %v5748_v11, %v5875_v61 }
 0xabf   :  { %v11437_v46 = vadd.f32 %v11326_v12, %v5910_v40  ;;  %v11440_v50 = vadd.f32 %v11326_v12, %v5909_v17 }
 0xac1   :  { %5979 = vrot.lane.b32.xlu0 %v11437_v46, %s7963_s4  ;;  %5977 = vrot.lane.b32.xlu1 %v11440_v50, %s7963_s4 }
 0xb0e   :  { %v5952_v38 = vpop.permute.xlu0 %5951 }
 0xb0f   :  { %v5998_v63 = vadd.f32 %v5952_v38, %v11332_v16 }
 0xb11   :  { %v6014_v58 = vmul.f32 0.5, %v5998_v63 }
 0xb13   :  { %6030 = vst.msk [vmem:[%s11534_s8 + $0x8] sm:$0xff] %vm5894_vm2, %v6014_v58  ;;  %v5950_v59 = vpop.permute.xlu1 %5949 }
 0xb14   :  { %v5997_v21 = vadd.f32 %v5950_v59, %v11340_v9 }
 0xb16   :  { %v6013_v12 = vmul.f32 0.5, %v5997_v21 }
 0xb17   :  { %v5956_v48 = vpop.permute.xlu0 %5955 }
 0xb18   :  { %6029 = vst.msk [vmem:[%s11534_s8] sm:$0xff] %vm5894_vm2, %v6013_v12  ;;  %v6000_v53 = vadd.f32 %v5956_v48, %v11347_v3 }
 0xb1a   :  { %v6016_v62 = vmul.f32 0.5, %v6000_v53 }
 0xb1b   :  { %v5954_v16 = vpop.permute.xlu1 %5953 }
 0xb1c   :  { %6032 = vst.msk [vmem:[%s11534_s8 + $0x18] sm:$0xff] %vm5894_vm2, %v6016_v62  ;;  %v5999_v10 = vadd.f32 %v5954_v16, %v11354_v25 }
 0xb1e   :  { %v6015_v26 = vmul.f32 0.5, %v5999_v10 }
 0xb1f   :  { %v5960_v9 = vpop.permute.xlu0 %5959  ;;  %v5958_v1 = vpop.permute.xlu1 %5957 }
 0xb20   :  { %6031 = vst.msk [vmem:[%s11534_s8 + $0x10] sm:$0xff] %vm5894_vm2, %v6015_v26  ;;  %v6002_v8 = vadd.f32 %v5960_v9, %v11363_v33  ;;  %v6001_v3 = vadd.f32 %v5958_v1, %v11366_v30 }
 0xb22   :  { %v6018_v14 = vmul.f32 0.5, %v6002_v8  ;;  %v6017_v31 = vmul.f32 0.5, %v6001_v3 }
 0xb23   :  { %v5964_v18 = vpop.permute.xlu0 %5963  ;;  %v5962_v28 = vpop.permute.xlu1 %5961 }
 0xb24   :  { %6034 = vst.msk [vmem:[%s11534_s8 + $0x28] sm:$0xff] %vm5894_vm2, %v6018_v14  ;;  %6033 = vst.msk [vmem:[%s11534_s8 + $0x20] sm:$0xff] %vm5894_vm2, %v6017_v31  ;;  %v6004_v25 = vadd.f32 %v5964_v18, %v11377_v15  ;;  %v6003_v60 = vadd.f32 %v5962_v28, %v11380_v42 }
 0xb26   :  { %v6020_v33 = vmul.f32 0.5, %v6004_v25  ;;  %v6019_v30 = vmul.f32 0.5, %v6003_v60 }
 0xb27   :  { %v5968_v43 = vpop.permute.xlu0 %5967  ;;  %v5966_v54 = vpop.permute.xlu1 %5965 }
 0xb28   :  { %6036 = vst.msk [vmem:[%s11534_s8 + $0x38] sm:$0xff] %vm5894_vm2, %v6020_v33  ;;  %6035 = vst.msk [vmem:[%s11534_s8 + $0x30] sm:$0xff] %vm5894_vm2, %v6019_v30  ;;  %v6006_v55 = vadd.f32 %v5968_v43, %v11391_v24  ;;  %v6005_v0 = vadd.f32 %v5966_v54, %v11394_v29 }
 0xb2a   :  { %v6022_v20 = vmul.f32 0.5, %v6006_v55  ;;  %v6021_v56 = vmul.f32 0.5, %v6005_v0 }
 0xb2b   :  { %v5972_v15 = vpop.permute.xlu0 %5971  ;;  %v5970_v42 = vpop.permute.xlu1 %5969 }
 0xb2c   :  { %6038 = vst.msk [vmem:[%s11534_s8 + $0x48] sm:$0xff] %vm5894_vm2, %v6022_v20  ;;  %6037 = vst.msk [vmem:[%s11534_s8 + $0x40] sm:$0xff] %vm5894_vm2, %v6021_v56  ;;  %v6008_v41 = vadd.f32 %v5972_v15, %v11405_v35  ;;  %v6007_v44 = vadd.f32 %v5970_v42, %v11408_v23 }
 0xb2e   :  { %v6024_v5 = vmul.f32 0.5, %v6008_v41  ;;  %v6023_v52 = vmul.f32 0.5, %v6007_v44 }
 0xb2f   :  { %v5976_v47 = vpop.permute.xlu0 %5975  ;;  %v5974_v51 = vpop.permute.xlu1 %5973 }
 0xb30   :  { %6040 = vst.msk [vmem:[%s11534_s8 + $0x58] sm:$0xff] %vm5894_vm2, %v6024_v5  ;;  %6039 = vst.msk [vmem:[%s11534_s8 + $0x50] sm:$0xff] %vm5894_vm2, %v6023_v52  ;;  %v6010_v24 = vadd.f32 %v5976_v47, %v11421_v34  ;;  %v6009_v29 = vadd.f32 %v5974_v51, %v11424_v13 }
 0xb32   :  { %v6026_v36 = vmul.f32 0.5, %v6010_v24  ;;  %v6025_v57 = vmul.f32 0.5, %v6009_v29 }
 0xb33   :  { %v5980_v22 = vpop.permute.xlu0 %5979  ;;  %v5978_v7 = vpop.permute.xlu1 %5977 }
 0xb34   :  { %6042 = vst.msk [vmem:[%s11534_s8 + $0x68] sm:$0xff] %vm5894_vm2, %v6026_v36  ;;  %6041 = vst.msk [vmem:[%s11534_s8 + $0x60] sm:$0xff] %vm5894_vm2, %v6025_v57  ;;  %v6012_v4 = vadd.f32 %v5980_v22, %v11437_v46  ;;  %v6011_v37 = vadd.f32 %v5978_v7, %v11440_v50 }
 0xb36   :  { %v6028_v35 = vmul.f32 0.5, %v6012_v4  ;;  %v6027_v23 = vmul.f32 0.5, %v6011_v37 }
 0xb38   :  { %6044 = vst.msk [vmem:[%s11534_s8 + $0x78] sm:$0xff] %vm5894_vm2, %v6028_v35  ;;  %6043 = vst.msk [vmem:[%s11534_s8 + $0x70] sm:$0xff] %vm5894_vm2, %v6027_v23 }

</bundles_post_ra>
